<compile_context>
chip_gen: v5e
topology: v5e:2x2
jax: 0.10.0
libtpu: 0.0.40
codegen_flags: <defaults>
</compile_context>

<pallas_src>
import jax
import jax.numpy as jnp
from jax import lax
from jax.experimental import pallas as pl
from jax.experimental.pallas import tpu as pltpu


# -----------------------------------------------------------------------------
# Layer schedule over the 3-slot ping-pong buffer
#   slots: 0 / 1 / 2.  Trunk = layers 0..4, branch1 = 5..7, branch2 = 8..10.
#   Branch-1's result (slot 0) must survive branch-2, and the trunk (slot 1)
#   must survive until layer 8 reads it.
# -----------------------------------------------------------------------------
_SRC_SLOT = (0, 1, 0, 1, 0, 1, 0, 2, 1, 2, 1)
_DST_SLOT = (1, 0, 1, 0, 1, 0, 2, 0, 2, 1, 2)
_HEAD_SLOT = (0, 2)          # branch-1 result slot, branch-2 result slot
_N_LAYERS = len(_SRC_SLOT)


# -----------------------------------------------------------------------------
# Fused whole-network kernel
# -----------------------------------------------------------------------------
def _make_encoder_kernel(H, W, C, RG):
    Hp, Wp = H + 2, W + 2
    NG = H // RG
    M = RG * W

    def kernel(sched_ref, x_ref, wbody_ref, bbody_ref, whead_ref, bhead_ref,
               out1_ref, out2_ref, bufs):
        # sched_ref : (2, 11)  i32   SMEM  src / dst slot per body layer
        # x_ref     : (1, H, W, C)   f32   input image, channels zero-padded 3->C
        # wbody_ref : (11, 3, 3, C, C) bf16  per-tap conv weights (BN folded in)
        # bbody_ref : (11, 1, C)     f32   folded conv-bias + BN shift
        # whead_ref : (2, 3, 3, 1, C) f32  Cout=1 head weights (BN folded in)
        # bhead_ref : (2,)           f32   SMEM head biases
        # out*_ref  : (1, H, W)      f32
        # bufs      : (3, Hp, Wp, C) f32   zero-halo activation ping-pong slots
        f32 = jnp.float32

        # ---- halo-only init (borders; interiors are rewritten before read) ----
        zrow = jnp.zeros((3, 1, Wp, C), f32)
        bufs[:, 0:1, :, :] = zrow
        bufs[:, Hp - 1:Hp, :, :] = zrow
        zcol = jnp.zeros((3, Hp, 1, C), f32)
        bufs[:, :, 0:1, :] = zcol
        bufs[:, :, Wp - 1:Wp, :] = zcol

        # ---- stage the input image into slot 0's interior ----
        bufs[0, 1:1 + H, 1:1 + W, :] = x_ref[0]

        # ---- 11 x [3x3 conv (C->C) + folded BN + ReLU], one fori_loop ----
        def layer_step(layer, carry):
            src = sched_ref[0, layer]
            dst = sched_ref[1, layer]
            bias = bbody_ref[layer]                              # (1, C) f32
            for g in range(NG):
                r0 = g * RG
                acc = jnp.zeros((M, C), f32)
                for dy in range(3):
                    for dx in range(3):
                        slab = bufs[src, r0 + dy:r0 + dy + RG, dx:dx + W, :]
                        patch = slab.reshape(M, C).astype(jnp.bfloat16)
                        acc = acc + jnp.dot(patch, wbody_ref[layer, dy, dx],
                                            preferred_element_type=f32)
                y = jnp.maximum(acc + bias, 0.0)                 # bias + ReLU
                bufs[dst, 1 + r0:1 + r0 + RG, 1:1 + W, :] = y.reshape(RG, W, C)
            return carry

        lax.fori_loop(0, _N_LAYERS, layer_step, 0)

        # ---- Cout=1 heads: per-tap VPU MAC, single lane reduction, ReLU ----
        def conv_head(slot, out_ref, h):
            bias = bhead_ref[h]                                  # SMEM scalar
            for g in range(NG):
                r0 = g * RG
                acc = jnp.zeros((RG, W, C), f32)
                for dy in range(3):
                    for dx in range(3):
                        slab = bufs[slot, r0 + dy:r0 + dy + RG, dx:dx + W, :]
                        acc = acc + slab * whead_ref[h, dy, dx][None]
                o = jnp.maximum(jnp.sum(acc, axis=-1) + bias, 0.0)
                out_ref[0, r0:r0 + RG, :] = o

        conv_head(_HEAD_SLOT[0], out1_ref, 0)
        conv_head(_HEAD_SLOT[1], out2_ref, 1)

    return kernel


def encoder_forward(params, x_nchw, *, row_group=16):
    """Full encoder forward (matches encoder.forward); returns (out1, out2) NCHW."""
    x = jnp.transpose(x_nchw, (0, 2, 3, 1))                 # NCHW -> NHWC
    N, H, W, Cin = x.shape
    C = params["bbody"].shape[-1]
    RG = row_group if H % row_group == 0 else H

    # Zero-extend the 3 input channels to C once (layer-0 extra weights are 0).
    x = jnp.pad(x, ((0, 0), (0, 0), (0, 0), (0, C - Cin)))

    wbody, bbody = params["wbody"], params["bbody"]
    whead, bhead = params["whead"], params["bhead"]
    sched = jnp.array([_SRC_SLOT, _DST_SLOT], dtype=jnp.int32)
    kernel = _make_encoder_kernel(H, W, C, RG)

    out1, out2 = pl.pallas_call(
        kernel,
        grid=(N,),
        out_shape=(jax.ShapeDtypeStruct((N, H, W), jnp.float32),
                   jax.ShapeDtypeStruct((N, H, W), jnp.float32)),
        in_specs=[
            pl.BlockSpec(memory_space=pltpu.MemorySpace.SMEM),           # sched
            pl.BlockSpec((1, H, W, C), lambda n: (n, 0, 0, 0)),          # image
            pl.BlockSpec(wbody.shape, lambda n: (0, 0, 0, 0, 0)),
            pl.BlockSpec(bbody.shape, lambda n: (0, 0, 0)),
            pl.BlockSpec(whead.shape, lambda n: (0, 0, 0, 0, 0)),
            pl.BlockSpec(memory_space=pltpu.MemorySpace.SMEM),           # bhead
        ],
        out_specs=(pl.BlockSpec((1, H, W), lambda n: (n, 0, 0)),
                   pl.BlockSpec((1, H, W), lambda n: (n, 0, 0))),
        scratch_shapes=[pltpu.VMEM((3, H + 2, W + 2, C), jnp.float32)],
        compiler_params=pltpu.CompilerParams(
            dimension_semantics=("parallel",),
            vmem_limit_bytes=64 * 1024 * 1024),
    )(sched, x, wbody, bbody, whead, bhead)

    # back to PyTorch NCHW return shapes (N, 1, H, W)
    return out1[:, None, :, :], out2[:, None, :, :]


# -----------------------------------------------------------------------------
# Deterministic parameter initialization (shapes from encoder.__init__)
# -----------------------------------------------------------------------------
def _init_conv(key, cin, cout, with_bn, eps=1e-5):
    """Conv weight (dy, dx, cin, cout) + bias, eval-mode BatchNorm folded in."""
    kw, kb = jax.random.split(key)
    bound = (cin * 9) ** -0.5                     # PyTorch Conv2d default init
    w = jax.random.uniform(kw, (3, 3, cin, cout), jnp.float32, -bound, bound)
    b = jax.random.uniform(kb, (cout,), jnp.float32, -bound, bound)
    if with_bn:
        gamma = jnp.ones((cout,), jnp.float32)
        beta = jnp.zeros((cout,), jnp.float32)
        mean = jnp.zeros((cout,), jnp.float32)
        var = jnp.ones((cout,), jnp.float32)
        s = gamma / jnp.sqrt(var + eps)
        w = w * s
        b = (b - mean) * s + beta
    return w, b


def init_encoder_params(key, num_features=32):
    C = num_features
    keys = jax.random.split(key, 13)

    body = [_init_conv(keys[0], 3, C, with_bn=False)]           # layers_0 (no BN)
    for i in range(10):                                          # layers_1/_2/_3
        body.append(_init_conv(keys[1 + i], C, C, with_bn=True))
    heads = [_init_conv(keys[11 + i], C, 1, with_bn=True) for i in range(2)]
    # TODO(synk): the PyTorch module also defines layers_4, but forward() never
    # uses it, so it is intentionally omitted here.

    # pack for the kernel ------------------------------------------------------
    packed = []
    for li, (w, _) in enumerate(body):
        if li == 0:                                # zero-extend cin 3 -> C
            w = jnp.zeros((3, 3, C, C), jnp.float32).at[:, :, :3, :].set(w)
        packed.append(w)
    wbody = jnp.stack(packed).astype(jnp.bfloat16)               # (11,3,3,C,C)
    bbody = jnp.stack([b for _, b in body]).reshape(_N_LAYERS, 1, C)
    whead = jnp.stack([jnp.transpose(w[..., 0:1], (0, 1, 3, 2))  # (2,3,3,1,C)
                       for w, _ in heads])
    bhead = jnp.stack([b[0] for _, b in heads])                  # (2,)

    params = dict(wbody=wbody, bbody=bbody, whead=whead, bhead=bhead)
    ref_params = dict(body=body, heads=heads)      # f32 copies for the reference
    return params, ref_params


# -----------------------------------------------------------------------------
# Pure-XLA f32 reference (same folded parameters) for a numerical sanity check
# -----------------------------------------------------------------------------
def _conv_ref(x, w, b):
    y = lax.conv_general_dilated(
        x, w, window_strides=(1, 1), padding="SAME",
        dimension_numbers=("NHWC", "HWIO", "NHWC"))
    return jax.nn.relu(y + b)


def encoder_reference(ref_params, x_nchw):
    h = jnp.transpose(x_nchw, (0, 2, 3, 1))
    body, heads = ref_params["body"], ref_params["heads"]
    for w, b in body[:5]:                          # layers_0 + layers_1
        h = _conv_ref(h, w, b)
    h1, h2 = h, h
    for w, b in body[5:8]:                         # layers_2
        h1 = _conv_ref(h1, w, b)
    for w, b in body[8:11]:                        # layers_3
        h2 = _conv_ref(h2, w, b)
    o1 = _conv_ref(h1, *heads[0])                  # layers_5
    o2 = _conv_ref(h2, *heads[1])                  # layers_6
    return (jnp.transpose(o1, (0, 3, 1, 2)), jnp.transpose(o2, (0, 3, 1, 2)))


if __name__ == "__main__":
    key = jax.random.PRNGKey(0)
    k_param, k_input = jax.random.split(key)

    NUM_FEATURES = 32                               # small config (module default 64)
    params, ref_params = init_encoder_params(k_param, num_features=NUM_FEATURES)

    # PyTorch-style NCHW input: batch=2, channels=3, spatial=16x16
    x = jax.random.normal(k_input, (2, 3, 16, 16), dtype=jnp.float32)

    fwd = jax.jit(encoder_forward)
    out1, out2 = fwd(params, x)
    jax.block_until_ready((out1, out2))

    assert out1.shape == (2, 1, 16, 16), out1.shape
    assert out2.shape == (2, 1, 16, 16), out2.shape
    assert bool(jnp.all(out1 >= 0)) and bool(jnp.all(out2 >= 0))   # ReLU outputs

    # numerical check vs. the pure-XLA f32 reference (kernel uses bf16 MXU inputs)
    ref1, ref2 = encoder_reference(ref_params, x)
    err = max(float(jnp.max(jnp.abs(out1 - ref1))),
              float(jnp.max(jnp.abs(out2 - ref2))))
    assert err < 5e-2, f"max abs error vs reference = {err}"

    print("KERNEL_OK")
</pallas_src>

<mosaic_0001>
module attributes {stable_mosaic.version = 11 : i64} {
  func.func @kernel(%arg0: i32, %arg1: memref<2x11xi32, #tpu.memory_space<smem>>, %arg2: memref<1x16x16x32xf32, #tpu.memory_space<vmem>>, %arg3: memref<11x3x3x32x32xbf16, #tpu.memory_space<vmem>>, %arg4: memref<11x1x32xf32, #tpu.memory_space<vmem>>, %arg5: memref<2x3x3x1x32xf32, #tpu.memory_space<vmem>>, %arg6: memref<2xf32, #tpu.memory_space<smem>>, %arg7: memref<1x16x16xf32, #tpu.memory_space<vmem>>, %arg8: memref<1x16x16xf32, #tpu.memory_space<vmem>>, %arg9: memref<3x18x18x32xf32, #tpu.memory_space<vmem>>) attributes {dimension_semantics = [#tpu.dimension_semantics<parallel>], iteration_bounds = array<i64: 2>, scalar_prefetch = 0 : i64, scratch_operands = 1 : i64, tpu.core_type = #tpu.core_type<tc>, window_params = [{transform_indices = @transform_0, window_bounds = array<i64: 2, 11>}, {transform_indices = @transform_1, window_bounds = array<i64: 1, 16, 16, 32>}, {pipeline_mode = #tpu.pipeline_mode<synchronous>, transform_indices = @transform_2, window_bounds = array<i64: 11, 3, 3, 32, 32>}, {pipeline_mode = #tpu.pipeline_mode<synchronous>, transform_indices = @transform_3, window_bounds = array<i64: 11, 1, 32>}, {pipeline_mode = #tpu.pipeline_mode<synchronous>, transform_indices = @transform_4, window_bounds = array<i64: 2, 3, 3, 1, 32>}, {transform_indices = @transform_5, window_bounds = array<i64: 2>}, {transform_indices = @transform_6, window_bounds = array<i64: 1, 16, 16>}, {transform_indices = @transform_7, window_bounds = array<i64: 1, 16, 16>}]} {
    %cst = arith.constant 0.000000e+00 : f32
    %0 = vector.broadcast %cst : f32 to vector<3x1x18x32xf32>
    %c0 = arith.constant 0 : index
    %c0_0 = arith.constant 0 : index
    %c0_1 = arith.constant 0 : index
    %c0_2 = arith.constant 0 : index
    %1 = vector.load %arg9[%c0, %c0_0, %c0_1, %c0_2] : memref<3x18x18x32xf32, #tpu.memory_space<vmem>>, vector<3x1x18x32xf32>
    tpu.vector_store %arg9[%c0, %c0_0, %c0_1, %c0_2], %0 {strides = array<i32>} : memref<3x18x18x32xf32, #tpu.memory_space<vmem>>, vector<3x1x18x32xf32>,
    %c0_3 = arith.constant 0 : index
    %c17 = arith.constant 17 : index
    %c0_4 = arith.constant 0 : index
    %c0_5 = arith.constant 0 : index
    %2 = vector.load %arg9[%c0_3, %c17, %c0_4, %c0_5] : memref<3x18x18x32xf32, #tpu.memory_space<vmem>>, vector<3x1x18x32xf32>
    tpu.vector_store %arg9[%c0_3, %c17, %c0_4, %c0_5], %0 {strides = array<i32>} : memref<3x18x18x32xf32, #tpu.memory_space<vmem>>, vector<3x1x18x32xf32>,
    %cst_6 = arith.constant 0.000000e+00 : f32
    %3 = vector.broadcast %cst_6 : f32 to vector<3x18x1x32xf32>
    %c0_7 = arith.constant 0 : index
    %c0_8 = arith.constant 0 : index
    %c0_9 = arith.constant 0 : index
    %c0_10 = arith.constant 0 : index
    %4 = vector.load %arg9[%c0_7, %c0_8, %c0_9, %c0_10] : memref<3x18x18x32xf32, #tpu.memory_space<vmem>>, vector<3x18x1x32xf32>
    tpu.vector_store %arg9[%c0_7, %c0_8, %c0_9, %c0_10], %3 {strides = array<i32>} : memref<3x18x18x32xf32, #tpu.memory_space<vmem>>, vector<3x18x1x32xf32>,
    %c0_11 = arith.constant 0 : index
    %c0_12 = arith.constant 0 : index
    %c17_13 = arith.constant 17 : index
    %c0_14 = arith.constant 0 : index
    %5 = vector.load %arg9[%c0_11, %c0_12, %c17_13, %c0_14] : memref<3x18x18x32xf32, #tpu.memory_space<vmem>>, vector<3x18x1x32xf32>
    tpu.vector_store %arg9[%c0_11, %c0_12, %c17_13, %c0_14], %3 {strides = array<i32>} : memref<3x18x18x32xf32, #tpu.memory_space<vmem>>, vector<3x18x1x32xf32>,
    %c0_15 = arith.constant 0 : index
    %c0_16 = arith.constant 0 : index
    %c0_17 = arith.constant 0 : index
    %c0_18 = arith.constant 0 : index
    %6 = vector.load %arg2[%c0_15, %c0_16, %c0_17, %c0_18] : memref<1x16x16x32xf32, #tpu.memory_space<vmem>>, vector<1x16x16x32xf32>
    %7 = vector.shape_cast %6 : vector<1x16x16x32xf32> to vector<16x16x32xf32>
    %c0_19 = arith.constant 0 : index
    %c1 = arith.constant 1 : index
    %c1_20 = arith.constant 1 : index
    %c0_21 = arith.constant 0 : index
    %8 = vector.load %arg9[%c0_19, %c1, %c1_20, %c0_21] : memref<3x18x18x32xf32, #tpu.memory_space<vmem>>, vector<1x16x16x32xf32>
    %9 = vector.shape_cast %8 : vector<1x16x16x32xf32> to vector<16x16x32xf32>
    %10 = vector.shape_cast %7 : vector<16x16x32xf32> to vector<1x16x16x32xf32>
    tpu.vector_store %arg9[%c0_19, %c1, %c1_20, %c0_21], %10 {strides = array<i32>} : memref<3x18x18x32xf32, #tpu.memory_space<vmem>>, vector<1x16x16x32xf32>,
    %c0_i32 = arith.constant 0 : i32
    %c11_i32 = arith.constant 11 : i32
    %11 = arith.addi %c0_i32, %c11_i32 : i32
    %c1_i32 = arith.constant 1 : i32
    scf.for %arg10 = %c0_i32 to %11 step %c1_i32  : i32 {
      %c0_198 = arith.constant 0 : index
      %176 = arith.index_cast %arg10 : i32 to index
      %177 = memref.load %arg1[%c0_198, %176] : memref<2x11xi32, #tpu.memory_space<smem>>
      %c1_199 = arith.constant 1 : index
      %178 = arith.index_cast %arg10 : i32 to index
      %179 = memref.load %arg1[%c1_199, %178] : memref<2x11xi32, #tpu.memory_space<smem>>
      %180 = arith.index_cast %arg10 : i32 to index
      %c0_200 = arith.constant 0 : index
      %c0_201 = arith.constant 0 : index
      %181 = vector.load %arg4[%180, %c0_200, %c0_201] : memref<11x1x32xf32, #tpu.memory_space<vmem>>, vector<1x1x32xf32>
      %182 = vector.shape_cast %181 : vector<1x1x32xf32> to vector<1x32xf32>
      %cst_202 = arith.constant 0.000000e+00 : f32
      %183 = vector.broadcast %cst_202 : f32 to vector<256x32xf32>
      %184 = arith.index_cast %177 : i32 to index
      %c0_203 = arith.constant 0 : index
      %c0_204 = arith.constant 0 : index
      %c0_205 = arith.constant 0 : index
      %185 = vector.load %arg9[%184, %c0_203, %c0_204, %c0_205] : memref<3x18x18x32xf32, #tpu.memory_space<vmem>>, vector<1x16x16x32xf32>
      %186 = vector.shape_cast %185 : vector<1x16x16x32xf32> to vector<16x16x32xf32>
      %187 = vector.shape_cast %186 : vector<16x16x32xf32> to vector<256x32xf32>
      %188 = arith.truncf %187 : vector<256x32xf32> to vector<256x32xbf16>
      %189 = arith.index_cast %arg10 : i32 to index
      %c0_206 = arith.constant 0 : index
      %c0_207 = arith.constant 0 : index
      %c0_208 = arith.constant 0 : index
      %c0_209 = arith.constant 0 : index
      %190 = vector.load %arg3[%189, %c0_206, %c0_207, %c0_208, %c0_209] : memref<11x3x3x32x32xbf16, #tpu.memory_space<vmem>>, vector<1x1x1x32x32xbf16>
      %191 = vector.shape_cast %190 : vector<1x1x1x32x32xbf16> to vector<32x32xbf16>
      %cst_210 = arith.constant dense<0.000000e+00> : vector<256x32xf32>
      %192 = tpu.matmul %188, %191, %cst_210 {dimension_numbers = #tpu.dot_dimension_numbers<[1], [0], [0], [1], [0, 0, 1, 1], [], []>} : vector<256x32xbf16>, vector<32x32xbf16>, vector<256x32xf32> -> vector<256x32xf32>
      %193 = arith.addf %183, %192 : vector<256x32xf32>
      %194 = arith.index_cast %177 : i32 to index
      %c0_211 = arith.constant 0 : index
      %c1_212 = arith.constant 1 : index
      %c0_213 = arith.constant 0 : index
      %195 = vector.load %arg9[%194, %c0_211, %c1_212, %c0_213] : memref<3x18x18x32xf32, #tpu.memory_space<vmem>>, vector<1x16x16x32xf32>
      %196 = vector.shape_cast %195 : vector<1x16x16x32xf32> to vector<16x16x32xf32>
      %197 = vector.shape_cast %196 : vector<16x16x32xf32> to vector<256x32xf32>
      %198 = arith.truncf %197 : vector<256x32xf32> to vector<256x32xbf16>
      %199 = arith.index_cast %arg10 : i32 to index
      %c0_214 = arith.constant 0 : index
      %c1_215 = arith.constant 1 : index
      %c0_216 = arith.constant 0 : index
      %c0_217 = arith.constant 0 : index
      %200 = vector.load %arg3[%199, %c0_214, %c1_215, %c0_216, %c0_217] : memref<11x3x3x32x32xbf16, #tpu.memory_space<vmem>>, vector<1x1x1x32x32xbf16>
      %201 = vector.shape_cast %200 : vector<1x1x1x32x32xbf16> to vector<32x32xbf16>
      %cst_218 = arith.constant dense<0.000000e+00> : vector<256x32xf32>
      %202 = tpu.matmul %198, %201, %cst_218 {dimension_numbers = #tpu.dot_dimension_numbers<[1], [0], [0], [1], [0, 0, 1, 1], [], []>} : vector<256x32xbf16>, vector<32x32xbf16>, vector<256x32xf32> -> vector<256x32xf32>
      %203 = arith.addf %193, %202 : vector<256x32xf32>
      %204 = arith.index_cast %177 : i32 to index
      %c0_219 = arith.constant 0 : index
      %c2_220 = arith.constant 2 : index
      %c0_221 = arith.constant 0 : index
      %205 = vector.load %arg9[%204, %c0_219, %c2_220, %c0_221] : memref<3x18x18x32xf32, #tpu.memory_space<vmem>>, vector<1x16x16x32xf32>
      %206 = vector.shape_cast %205 : vector<1x16x16x32xf32> to vector<16x16x32xf32>
      %207 = vector.shape_cast %206 : vector<16x16x32xf32> to vector<256x32xf32>
      %208 = arith.truncf %207 : vector<256x32xf32> to vector<256x32xbf16>
      %209 = arith.index_cast %arg10 : i32 to index
      %c0_222 = arith.constant 0 : index
      %c2_223 = arith.constant 2 : index
      %c0_224 = arith.constant 0 : index
      %c0_225 = arith.constant 0 : index
      %210 = vector.load %arg3[%209, %c0_222, %c2_223, %c0_224, %c0_225] : memref<11x3x3x32x32xbf16, #tpu.memory_space<vmem>>, vector<1x1x1x32x32xbf16>
      %211 = vector.shape_cast %210 : vector<1x1x1x32x32xbf16> to vector<32x32xbf16>
      %cst_226 = arith.constant dense<0.000000e+00> : vector<256x32xf32>
      %212 = tpu.matmul %208, %211, %cst_226 {dimension_numbers = #tpu.dot_dimension_numbers<[1], [0], [0], [1], [0, 0, 1, 1], [], []>} : vector<256x32xbf16>, vector<32x32xbf16>, vector<256x32xf32> -> vector<256x32xf32>
      %213 = arith.addf %203, %212 : vector<256x32xf32>
      %214 = arith.index_cast %177 : i32 to index
      %c1_227 = arith.constant 1 : index
      %c0_228 = arith.constant 0 : index
      %c0_229 = arith.constant 0 : index
      %215 = vector.load %arg9[%214, %c1_227, %c0_228, %c0_229] : memref<3x18x18x32xf32, #tpu.memory_space<vmem>>, vector<1x16x16x32xf32>
      %216 = vector.shape_cast %215 : vector<1x16x16x32xf32> to vector<16x16x32xf32>
      %217 = vector.shape_cast %216 : vector<16x16x32xf32> to vector<256x32xf32>
      %218 = arith.truncf %217 : vector<256x32xf32> to vector<256x32xbf16>
      %219 = arith.index_cast %arg10 : i32 to index
      %c1_230 = arith.constant 1 : index
      %c0_231 = arith.constant 0 : index
      %c0_232 = arith.constant 0 : index
      %c0_233 = arith.constant 0 : index
      %220 = vector.load %arg3[%219, %c1_230, %c0_231, %c0_232, %c0_233] : memref<11x3x3x32x32xbf16, #tpu.memory_space<vmem>>, vector<1x1x1x32x32xbf16>
      %221 = vector.shape_cast %220 : vector<1x1x1x32x32xbf16> to vector<32x32xbf16>
      %cst_234 = arith.constant dense<0.000000e+00> : vector<256x32xf32>
      %222 = tpu.matmul %218, %221, %cst_234 {dimension_numbers = #tpu.dot_dimension_numbers<[1], [0], [0], [1], [0, 0, 1, 1], [], []>} : vector<256x32xbf16>, vector<32x32xbf16>, vector<256x32xf32> -> vector<256x32xf32>
      %223 = arith.addf %213, %222 : vector<256x32xf32>
      %224 = arith.index_cast %177 : i32 to index
      %c1_235 = arith.constant 1 : index
      %c1_236 = arith.constant 1 : index
      %c0_237 = arith.constant 0 : index
      %225 = vector.load %arg9[%224, %c1_235, %c1_236, %c0_237] : memref<3x18x18x32xf32, #tpu.memory_space<vmem>>, vector<1x16x16x32xf32>
      %226 = vector.shape_cast %225 : vector<1x16x16x32xf32> to vector<16x16x32xf32>
      %227 = vector.shape_cast %226 : vector<16x16x32xf32> to vector<256x32xf32>
      %228 = arith.truncf %227 : vector<256x32xf32> to vector<256x32xbf16>
      %229 = arith.index_cast %arg10 : i32 to index
      %c1_238 = arith.constant 1 : index
      %c1_239 = arith.constant 1 : index
      %c0_240 = arith.constant 0 : index
      %c0_241 = arith.constant 0 : index
      %230 = vector.load %arg3[%229, %c1_238, %c1_239, %c0_240, %c0_241] : memref<11x3x3x32x32xbf16, #tpu.memory_space<vmem>>, vector<1x1x1x32x32xbf16>
      %231 = vector.shape_cast %230 : vector<1x1x1x32x32xbf16> to vector<32x32xbf16>
      %cst_242 = arith.constant dense<0.000000e+00> : vector<256x32xf32>
      %232 = tpu.matmul %228, %231, %cst_242 {dimension_numbers = #tpu.dot_dimension_numbers<[1], [0], [0], [1], [0, 0, 1, 1], [], []>} : vector<256x32xbf16>, vector<32x32xbf16>, vector<256x32xf32> -> vector<256x32xf32>
      %233 = arith.addf %223, %232 : vector<256x32xf32>
      %234 = arith.index_cast %177 : i32 to index
      %c1_243 = arith.constant 1 : index
      %c2_244 = arith.constant 2 : index
      %c0_245 = arith.constant 0 : index
      %235 = vector.load %arg9[%234, %c1_243, %c2_244, %c0_245] : memref<3x18x18x32xf32, #tpu.memory_space<vmem>>, vector<1x16x16x32xf32>
      %236 = vector.shape_cast %235 : vector<1x16x16x32xf32> to vector<16x16x32xf32>
      %237 = vector.shape_cast %236 : vector<16x16x32xf32> to vector<256x32xf32>
      %238 = arith.truncf %237 : vector<256x32xf32> to vector<256x32xbf16>
      %239 = arith.index_cast %arg10 : i32 to index
      %c1_246 = arith.constant 1 : index
      %c2_247 = arith.constant 2 : index
      %c0_248 = arith.constant 0 : index
      %c0_249 = arith.constant 0 : index
      %240 = vector.load %arg3[%239, %c1_246, %c2_247, %c0_248, %c0_249] : memref<11x3x3x32x32xbf16, #tpu.memory_space<vmem>>, vector<1x1x1x32x32xbf16>
      %241 = vector.shape_cast %240 : vector<1x1x1x32x32xbf16> to vector<32x32xbf16>
      %cst_250 = arith.constant dense<0.000000e+00> : vector<256x32xf32>
      %242 = tpu.matmul %238, %241, %cst_250 {dimension_numbers = #tpu.dot_dimension_numbers<[1], [0], [0], [1], [0, 0, 1, 1], [], []>} : vector<256x32xbf16>, vector<32x32xbf16>, vector<256x32xf32> -> vector<256x32xf32>
      %243 = arith.addf %233, %242 : vector<256x32xf32>
      %244 = arith.index_cast %177 : i32 to index
      %c2_251 = arith.constant 2 : index
      %c0_252 = arith.constant 0 : index
      %c0_253 = arith.constant 0 : index
      %245 = vector.load %arg9[%244, %c2_251, %c0_252, %c0_253] : memref<3x18x18x32xf32, #tpu.memory_space<vmem>>, vector<1x16x16x32xf32>
      %246 = vector.shape_cast %245 : vector<1x16x16x32xf32> to vector<16x16x32xf32>
      %247 = vector.shape_cast %246 : vector<16x16x32xf32> to vector<256x32xf32>
      %248 = arith.truncf %247 : vector<256x32xf32> to vector<256x32xbf16>
      %249 = arith.index_cast %arg10 : i32 to index
      %c2_254 = arith.constant 2 : index
      %c0_255 = arith.constant 0 : index
      %c0_256 = arith.constant 0 : index
      %c0_257 = arith.constant 0 : index
      %250 = vector.load %arg3[%249, %c2_254, %c0_255, %c0_256, %c0_257] : memref<11x3x3x32x32xbf16, #tpu.memory_space<vmem>>, vector<1x1x1x32x32xbf16>
      %251 = vector.shape_cast %250 : vector<1x1x1x32x32xbf16> to vector<32x32xbf16>
      %cst_258 = arith.constant dense<0.000000e+00> : vector<256x32xf32>
      %252 = tpu.matmul %248, %251, %cst_258 {dimension_numbers = #tpu.dot_dimension_numbers<[1], [0], [0], [1], [0, 0, 1, 1], [], []>} : vector<256x32xbf16>, vector<32x32xbf16>, vector<256x32xf32> -> vector<256x32xf32>
      %253 = arith.addf %243, %252 : vector<256x32xf32>
      %254 = arith.index_cast %177 : i32 to index
      %c2_259 = arith.constant 2 : index
      %c1_260 = arith.constant 1 : index
      %c0_261 = arith.constant 0 : index
      %255 = vector.load %arg9[%254, %c2_259, %c1_260, %c0_261] : memref<3x18x18x32xf32, #tpu.memory_space<vmem>>, vector<1x16x16x32xf32>
      %256 = vector.shape_cast %255 : vector<1x16x16x32xf32> to vector<16x16x32xf32>
      %257 = vector.shape_cast %256 : vector<16x16x32xf32> to vector<256x32xf32>
      %258 = arith.truncf %257 : vector<256x32xf32> to vector<256x32xbf16>
      %259 = arith.index_cast %arg10 : i32 to index
      %c2_262 = arith.constant 2 : index
      %c1_263 = arith.constant 1 : index
      %c0_264 = arith.constant 0 : index
      %c0_265 = arith.constant 0 : index
      %260 = vector.load %arg3[%259, %c2_262, %c1_263, %c0_264, %c0_265] : memref<11x3x3x32x32xbf16, #tpu.memory_space<vmem>>, vector<1x1x1x32x32xbf16>
      %261 = vector.shape_cast %260 : vector<1x1x1x32x32xbf16> to vector<32x32xbf16>
      %cst_266 = arith.constant dense<0.000000e+00> : vector<256x32xf32>
      %262 = tpu.matmul %258, %261, %cst_266 {dimension_numbers = #tpu.dot_dimension_numbers<[1], [0], [0], [1], [0, 0, 1, 1], [], []>} : vector<256x32xbf16>, vector<32x32xbf16>, vector<256x32xf32> -> vector<256x32xf32>
      %263 = arith.addf %253, %262 : vector<256x32xf32>
      %264 = arith.index_cast %177 : i32 to index
      %c2_267 = arith.constant 2 : index
      %c2_268 = arith.constant 2 : index
      %c0_269 = arith.constant 0 : index
      %265 = vector.load %arg9[%264, %c2_267, %c2_268, %c0_269] : memref<3x18x18x32xf32, #tpu.memory_space<vmem>>, vector<1x16x16x32xf32>
      %266 = vector.shape_cast %265 : vector<1x16x16x32xf32> to vector<16x16x32xf32>
      %267 = vector.shape_cast %266 : vector<16x16x32xf32> to vector<256x32xf32>
      %268 = arith.truncf %267 : vector<256x32xf32> to vector<256x32xbf16>
      %269 = arith.index_cast %arg10 : i32 to index
      %c2_270 = arith.constant 2 : index
      %c2_271 = arith.constant 2 : index
      %c0_272 = arith.constant 0 : index
      %c0_273 = arith.constant 0 : index
      %270 = vector.load %arg3[%269, %c2_270, %c2_271, %c0_272, %c0_273] : memref<11x3x3x32x32xbf16, #tpu.memory_space<vmem>>, vector<1x1x1x32x32xbf16>
      %271 = vector.shape_cast %270 : vector<1x1x1x32x32xbf16> to vector<32x32xbf16>
      %cst_274 = arith.constant dense<0.000000e+00> : vector<256x32xf32>
      %272 = tpu.matmul %268, %271, %cst_274 {dimension_numbers = #tpu.dot_dimension_numbers<[1], [0], [0], [1], [0, 0, 1, 1], [], []>} : vector<256x32xbf16>, vector<32x32xbf16>, vector<256x32xf32> -> vector<256x32xf32>
      %273 = arith.addf %263, %272 : vector<256x32xf32>
      %274 = vector.broadcast %182 : vector<1x32xf32> to vector<256x32xf32>
      %275 = arith.addf %273, %274 : vector<256x32xf32>
      %cst_275 = arith.constant 0.000000e+00 : f32
      %276 = vector.broadcast %cst_275 : f32 to vector<256x32xf32>
      %277 = arith.maximumf %275, %276 : vector<256x32xf32>
      %278 = vector.shape_cast %277 : vector<256x32xf32> to vector<16x16x32xf32>
      %279 = arith.index_cast %179 : i32 to index
      %c1_276 = arith.constant 1 : index
      %c1_277 = arith.constant 1 : index
      %c0_278 = arith.constant 0 : index
      %280 = vector.load %arg9[%279, %c1_276, %c1_277, %c0_278] : memref<3x18x18x32xf32, #tpu.memory_space<vmem>>, vector<1x16x16x32xf32>
      %281 = vector.shape_cast %280 : vector<1x16x16x32xf32> to vector<16x16x32xf32>
      %282 = vector.shape_cast %278 : vector<16x16x32xf32> to vector<1x16x16x32xf32>
      tpu.vector_store %arg9[%279, %c1_276, %c1_277, %c0_278], %282 {strides = array<i32>} : memref<3x18x18x32xf32, #tpu.memory_space<vmem>>, vector<1x16x16x32xf32>,
    }
    %c11_i32_22 = arith.constant 11 : i32
    %c0_23 = arith.constant 0 : index
    %12 = memref.load %arg6[%c0_23] : memref<2xf32, #tpu.memory_space<smem>>
    %cst_24 = arith.constant 0.000000e+00 : f32
    %13 = vector.broadcast %cst_24 : f32 to vector<16x16x32xf32>
    %c0_25 = arith.constant 0 : index
    %c0_26 = arith.constant 0 : index
    %c0_27 = arith.constant 0 : index
    %c0_28 = arith.constant 0 : index
    %14 = vector.load %arg9[%c0_25, %c0_26, %c0_27, %c0_28] : memref<3x18x18x32xf32, #tpu.memory_space<vmem>>, vector<1x16x16x32xf32>
    %15 = vector.shape_cast %14 : vector<1x16x16x32xf32> to vector<16x16x32xf32>
    %c0_29 = arith.constant 0 : index
    %c0_30 = arith.constant 0 : index
    %c0_31 = arith.constant 0 : index
    %c0_32 = arith.constant 0 : index
    %c0_33 = arith.constant 0 : index
    %16 = vector.load %arg5[%c0_29, %c0_30, %c0_31, %c0_32, %c0_33] : memref<2x3x3x1x32xf32, #tpu.memory_space<vmem>>, vector<1x1x1x1x32xf32>
    %17 = vector.shape_cast %16 : vector<1x1x1x1x32xf32> to vector<1x32xf32>
    %18 = vector.shape_cast %17 : vector<1x32xf32> to vector<1x1x32xf32>
    %19 = vector.broadcast %18 : vector<1x1x32xf32> to vector<16x16x32xf32>
    %20 = arith.mulf %15, %19 : vector<16x16x32xf32>
    %21 = arith.addf %13, %20 : vector<16x16x32xf32>
    %c0_34 = arith.constant 0 : index
    %c0_35 = arith.constant 0 : index
    %c1_36 = arith.constant 1 : index
    %c0_37 = arith.constant 0 : index
    %22 = vector.load %arg9[%c0_34, %c0_35, %c1_36, %c0_37] : memref<3x18x18x32xf32, #tpu.memory_space<vmem>>, vector<1x16x16x32xf32>
    %23 = vector.shape_cast %22 : vector<1x16x16x32xf32> to vector<16x16x32xf32>
    %c0_38 = arith.constant 0 : index
    %c0_39 = arith.constant 0 : index
    %c1_40 = arith.constant 1 : index
    %c0_41 = arith.constant 0 : index
    %c0_42 = arith.constant 0 : index
    %24 = vector.load %arg5[%c0_38, %c0_39, %c1_40, %c0_41, %c0_42] : memref<2x3x3x1x32xf32, #tpu.memory_space<vmem>>, vector<1x1x1x1x32xf32>
    %25 = vector.shape_cast %24 : vector<1x1x1x1x32xf32> to vector<1x32xf32>
    %26 = vector.shape_cast %25 : vector<1x32xf32> to vector<1x1x32xf32>
    %27 = vector.broadcast %26 : vector<1x1x32xf32> to vector<16x16x32xf32>
    %28 = arith.mulf %23, %27 : vector<16x16x32xf32>
    %29 = arith.addf %21, %28 : vector<16x16x32xf32>
    %c0_43 = arith.constant 0 : index
    %c0_44 = arith.constant 0 : index
    %c2 = arith.constant 2 : index
    %c0_45 = arith.constant 0 : index
    %30 = vector.load %arg9[%c0_43, %c0_44, %c2, %c0_45] : memref<3x18x18x32xf32, #tpu.memory_space<vmem>>, vector<1x16x16x32xf32>
    %31 = vector.shape_cast %30 : vector<1x16x16x32xf32> to vector<16x16x32xf32>
    %c0_46 = arith.constant 0 : index
    %c0_47 = arith.constant 0 : index
    %c2_48 = arith.constant 2 : index
    %c0_49 = arith.constant 0 : index
    %c0_50 = arith.constant 0 : index
    %32 = vector.load %arg5[%c0_46, %c0_47, %c2_48, %c0_49, %c0_50] : memref<2x3x3x1x32xf32, #tpu.memory_space<vmem>>, vector<1x1x1x1x32xf32>
    %33 = vector.shape_cast %32 : vector<1x1x1x1x32xf32> to vector<1x32xf32>
    %34 = vector.shape_cast %33 : vector<1x32xf32> to vector<1x1x32xf32>
    %35 = vector.broadcast %34 : vector<1x1x32xf32> to vector<16x16x32xf32>
    %36 = arith.mulf %31, %35 : vector<16x16x32xf32>
    %37 = arith.addf %29, %36 : vector<16x16x32xf32>
    %c0_51 = arith.constant 0 : index
    %c1_52 = arith.constant 1 : index
    %c0_53 = arith.constant 0 : index
    %c0_54 = arith.constant 0 : index
    %38 = vector.load %arg9[%c0_51, %c1_52, %c0_53, %c0_54] : memref<3x18x18x32xf32, #tpu.memory_space<vmem>>, vector<1x16x16x32xf32>
    %39 = vector.shape_cast %38 : vector<1x16x16x32xf32> to vector<16x16x32xf32>
    %c0_55 = arith.constant 0 : index
    %c1_56 = arith.constant 1 : index
    %c0_57 = arith.constant 0 : index
    %c0_58 = arith.constant 0 : index
    %c0_59 = arith.constant 0 : index
    %40 = vector.load %arg5[%c0_55, %c1_56, %c0_57, %c0_58, %c0_59] : memref<2x3x3x1x32xf32, #tpu.memory_space<vmem>>, vector<1x1x1x1x32xf32>
    %41 = vector.shape_cast %40 : vector<1x1x1x1x32xf32> to vector<1x32xf32>
    %42 = vector.shape_cast %41 : vector<1x32xf32> to vector<1x1x32xf32>
    %43 = vector.broadcast %42 : vector<1x1x32xf32> to vector<16x16x32xf32>
    %44 = arith.mulf %39, %43 : vector<16x16x32xf32>
    %45 = arith.addf %37, %44 : vector<16x16x32xf32>
    %c0_60 = arith.constant 0 : index
    %c1_61 = arith.constant 1 : index
    %c1_62 = arith.constant 1 : index
    %c0_63 = arith.constant 0 : index
    %46 = vector.load %arg9[%c0_60, %c1_61, %c1_62, %c0_63] : memref<3x18x18x32xf32, #tpu.memory_space<vmem>>, vector<1x16x16x32xf32>
    %47 = vector.shape_cast %46 : vector<1x16x16x32xf32> to vector<16x16x32xf32>
    %c0_64 = arith.constant 0 : index
    %c1_65 = arith.constant 1 : index
    %c1_66 = arith.constant 1 : index
    %c0_67 = arith.constant 0 : index
    %c0_68 = arith.constant 0 : index
    %48 = vector.load %arg5[%c0_64, %c1_65, %c1_66, %c0_67, %c0_68] : memref<2x3x3x1x32xf32, #tpu.memory_space<vmem>>, vector<1x1x1x1x32xf32>
    %49 = vector.shape_cast %48 : vector<1x1x1x1x32xf32> to vector<1x32xf32>
    %50 = vector.shape_cast %49 : vector<1x32xf32> to vector<1x1x32xf32>
    %51 = vector.broadcast %50 : vector<1x1x32xf32> to vector<16x16x32xf32>
    %52 = arith.mulf %47, %51 : vector<16x16x32xf32>
    %53 = arith.addf %45, %52 : vector<16x16x32xf32>
    %c0_69 = arith.constant 0 : index
    %c1_70 = arith.constant 1 : index
    %c2_71 = arith.constant 2 : index
    %c0_72 = arith.constant 0 : index
    %54 = vector.load %arg9[%c0_69, %c1_70, %c2_71, %c0_72] : memref<3x18x18x32xf32, #tpu.memory_space<vmem>>, vector<1x16x16x32xf32>
    %55 = vector.shape_cast %54 : vector<1x16x16x32xf32> to vector<16x16x32xf32>
    %c0_73 = arith.constant 0 : index
    %c1_74 = arith.constant 1 : index
    %c2_75 = arith.constant 2 : index
    %c0_76 = arith.constant 0 : index
    %c0_77 = arith.constant 0 : index
    %56 = vector.load %arg5[%c0_73, %c1_74, %c2_75, %c0_76, %c0_77] : memref<2x3x3x1x32xf32, #tpu.memory_space<vmem>>, vector<1x1x1x1x32xf32>
    %57 = vector.shape_cast %56 : vector<1x1x1x1x32xf32> to vector<1x32xf32>
    %58 = vector.shape_cast %57 : vector<1x32xf32> to vector<1x1x32xf32>
    %59 = vector.broadcast %58 : vector<1x1x32xf32> to vector<16x16x32xf32>
    %60 = arith.mulf %55, %59 : vector<16x16x32xf32>
    %61 = arith.addf %53, %60 : vector<16x16x32xf32>
    %c0_78 = arith.constant 0 : index
    %c2_79 = arith.constant 2 : index
    %c0_80 = arith.constant 0 : index
    %c0_81 = arith.constant 0 : index
    %62 = vector.load %arg9[%c0_78, %c2_79, %c0_80, %c0_81] : memref<3x18x18x32xf32, #tpu.memory_space<vmem>>, vector<1x16x16x32xf32>
    %63 = vector.shape_cast %62 : vector<1x16x16x32xf32> to vector<16x16x32xf32>
    %c0_82 = arith.constant 0 : index
    %c2_83 = arith.constant 2 : index
    %c0_84 = arith.constant 0 : index
    %c0_85 = arith.constant 0 : index
    %c0_86 = arith.constant 0 : index
    %64 = vector.load %arg5[%c0_82, %c2_83, %c0_84, %c0_85, %c0_86] : memref<2x3x3x1x32xf32, #tpu.memory_space<vmem>>, vector<1x1x1x1x32xf32>
    %65 = vector.shape_cast %64 : vector<1x1x1x1x32xf32> to vector<1x32xf32>
    %66 = vector.shape_cast %65 : vector<1x32xf32> to vector<1x1x32xf32>
    %67 = vector.broadcast %66 : vector<1x1x32xf32> to vector<16x16x32xf32>
    %68 = arith.mulf %63, %67 : vector<16x16x32xf32>
    %69 = arith.addf %61, %68 : vector<16x16x32xf32>
    %c0_87 = arith.constant 0 : index
    %c2_88 = arith.constant 2 : index
    %c1_89 = arith.constant 1 : index
    %c0_90 = arith.constant 0 : index
    %70 = vector.load %arg9[%c0_87, %c2_88, %c1_89, %c0_90] : memref<3x18x18x32xf32, #tpu.memory_space<vmem>>, vector<1x16x16x32xf32>
    %71 = vector.shape_cast %70 : vector<1x16x16x32xf32> to vector<16x16x32xf32>
    %c0_91 = arith.constant 0 : index
    %c2_92 = arith.constant 2 : index
    %c1_93 = arith.constant 1 : index
    %c0_94 = arith.constant 0 : index
    %c0_95 = arith.constant 0 : index
    %72 = vector.load %arg5[%c0_91, %c2_92, %c1_93, %c0_94, %c0_95] : memref<2x3x3x1x32xf32, #tpu.memory_space<vmem>>, vector<1x1x1x1x32xf32>
    %73 = vector.shape_cast %72 : vector<1x1x1x1x32xf32> to vector<1x32xf32>
    %74 = vector.shape_cast %73 : vector<1x32xf32> to vector<1x1x32xf32>
    %75 = vector.broadcast %74 : vector<1x1x32xf32> to vector<16x16x32xf32>
    %76 = arith.mulf %71, %75 : vector<16x16x32xf32>
    %77 = arith.addf %69, %76 : vector<16x16x32xf32>
    %c0_96 = arith.constant 0 : index
    %c2_97 = arith.constant 2 : index
    %c2_98 = arith.constant 2 : index
    %c0_99 = arith.constant 0 : index
    %78 = vector.load %arg9[%c0_96, %c2_97, %c2_98, %c0_99] : memref<3x18x18x32xf32, #tpu.memory_space<vmem>>, vector<1x16x16x32xf32>
    %79 = vector.shape_cast %78 : vector<1x16x16x32xf32> to vector<16x16x32xf32>
    %c0_100 = arith.constant 0 : index
    %c2_101 = arith.constant 2 : index
    %c2_102 = arith.constant 2 : index
    %c0_103 = arith.constant 0 : index
    %c0_104 = arith.constant 0 : index
    %80 = vector.load %arg5[%c0_100, %c2_101, %c2_102, %c0_103, %c0_104] : memref<2x3x3x1x32xf32, #tpu.memory_space<vmem>>, vector<1x1x1x1x32xf32>
    %81 = vector.shape_cast %80 : vector<1x1x1x1x32xf32> to vector<1x32xf32>
    %82 = vector.shape_cast %81 : vector<1x32xf32> to vector<1x1x32xf32>
    %83 = vector.broadcast %82 : vector<1x1x32xf32> to vector<16x16x32xf32>
    %84 = arith.mulf %79, %83 : vector<16x16x32xf32>
    %85 = arith.addf %77, %84 : vector<16x16x32xf32>
    %cst_105 = arith.constant dense<0.000000e+00> : vector<16x16xf32>
    %86 = vector.multi_reduction <add>, %85, %cst_105 [2] : vector<16x16x32xf32> to vector<16x16xf32>
    %87 = vector.broadcast %12 : f32 to vector<16x16xf32>
    %88 = arith.addf %86, %87 : vector<16x16xf32>
    %cst_106 = arith.constant 0.000000e+00 : f32
    %89 = vector.broadcast %cst_106 : f32 to vector<16x16xf32>
    %90 = arith.maximumf %88, %89 : vector<16x16xf32>
    %c0_107 = arith.constant 0 : index
    %c0_108 = arith.constant 0 : index
    %c0_109 = arith.constant 0 : index
    %91 = vector.load %arg7[%c0_107, %c0_108, %c0_109] : memref<1x16x16xf32, #tpu.memory_space<vmem>>, vector<1x16x16xf32>
    %92 = vector.shape_cast %91 : vector<1x16x16xf32> to vector<16x16xf32>
    %93 = vector.shape_cast %90 : vector<16x16xf32> to vector<1x16x16xf32>
    tpu.vector_store %arg7[%c0_107, %c0_108, %c0_109], %93 {strides = array<i32>} : memref<1x16x16xf32, #tpu.memory_space<vmem>>, vector<1x16x16xf32>,
    %c1_110 = arith.constant 1 : index
    %94 = memref.load %arg6[%c1_110] : memref<2xf32, #tpu.memory_space<smem>>
    %cst_111 = arith.constant 0.000000e+00 : f32
    %95 = vector.broadcast %cst_111 : f32 to vector<16x16x32xf32>
    %c2_112 = arith.constant 2 : index
    %c0_113 = arith.constant 0 : index
    %c0_114 = arith.constant 0 : index
    %c0_115 = arith.constant 0 : index
    %96 = vector.load %arg9[%c2_112, %c0_113, %c0_114, %c0_115] : memref<3x18x18x32xf32, #tpu.memory_space<vmem>>, vector<1x16x16x32xf32>
    %97 = vector.shape_cast %96 : vector<1x16x16x32xf32> to vector<16x16x32xf32>
    %c1_116 = arith.constant 1 : index
    %c0_117 = arith.constant 0 : index
    %c0_118 = arith.constant 0 : index
    %c0_119 = arith.constant 0 : index
    %c0_120 = arith.constant 0 : index
    %98 = vector.load %arg5[%c1_116, %c0_117, %c0_118, %c0_119, %c0_120] : memref<2x3x3x1x32xf32, #tpu.memory_space<vmem>>, vector<1x1x1x1x32xf32>
    %99 = vector.shape_cast %98 : vector<1x1x1x1x32xf32> to vector<1x32xf32>
    %100 = vector.shape_cast %99 : vector<1x32xf32> to vector<1x1x32xf32>
    %101 = vector.broadcast %100 : vector<1x1x32xf32> to vector<16x16x32xf32>
    %102 = arith.mulf %97, %101 : vector<16x16x32xf32>
    %103 = arith.addf %95, %102 : vector<16x16x32xf32>
    %c2_121 = arith.constant 2 : index
    %c0_122 = arith.constant 0 : index
    %c1_123 = arith.constant 1 : index
    %c0_124 = arith.constant 0 : index
    %104 = vector.load %arg9[%c2_121, %c0_122, %c1_123, %c0_124] : memref<3x18x18x32xf32, #tpu.memory_space<vmem>>, vector<1x16x16x32xf32>
    %105 = vector.shape_cast %104 : vector<1x16x16x32xf32> to vector<16x16x32xf32>
    %c1_125 = arith.constant 1 : index
    %c0_126 = arith.constant 0 : index
    %c1_127 = arith.constant 1 : index
    %c0_128 = arith.constant 0 : index
    %c0_129 = arith.constant 0 : index
    %106 = vector.load %arg5[%c1_125, %c0_126, %c1_127, %c0_128, %c0_129] : memref<2x3x3x1x32xf32, #tpu.memory_space<vmem>>, vector<1x1x1x1x32xf32>
    %107 = vector.shape_cast %106 : vector<1x1x1x1x32xf32> to vector<1x32xf32>
    %108 = vector.shape_cast %107 : vector<1x32xf32> to vector<1x1x32xf32>
    %109 = vector.broadcast %108 : vector<1x1x32xf32> to vector<16x16x32xf32>
    %110 = arith.mulf %105, %109 : vector<16x16x32xf32>
    %111 = arith.addf %103, %110 : vector<16x16x32xf32>
    %c2_130 = arith.constant 2 : index
    %c0_131 = arith.constant 0 : index
    %c2_132 = arith.constant 2 : index
    %c0_133 = arith.constant 0 : index
    %112 = vector.load %arg9[%c2_130, %c0_131, %c2_132, %c0_133] : memref<3x18x18x32xf32, #tpu.memory_space<vmem>>, vector<1x16x16x32xf32>
    %113 = vector.shape_cast %112 : vector<1x16x16x32xf32> to vector<16x16x32xf32>
    %c1_134 = arith.constant 1 : index
    %c0_135 = arith.constant 0 : index
    %c2_136 = arith.constant 2 : index
    %c0_137 = arith.constant 0 : index
    %c0_138 = arith.constant 0 : index
    %114 = vector.load %arg5[%c1_134, %c0_135, %c2_136, %c0_137, %c0_138] : memref<2x3x3x1x32xf32, #tpu.memory_space<vmem>>, vector<1x1x1x1x32xf32>
    %115 = vector.shape_cast %114 : vector<1x1x1x1x32xf32> to vector<1x32xf32>
    %116 = vector.shape_cast %115 : vector<1x32xf32> to vector<1x1x32xf32>
    %117 = vector.broadcast %116 : vector<1x1x32xf32> to vector<16x16x32xf32>
    %118 = arith.mulf %113, %117 : vector<16x16x32xf32>
    %119 = arith.addf %111, %118 : vector<16x16x32xf32>
    %c2_139 = arith.constant 2 : index
    %c1_140 = arith.constant 1 : index
    %c0_141 = arith.constant 0 : index
    %c0_142 = arith.constant 0 : index
    %120 = vector.load %arg9[%c2_139, %c1_140, %c0_141, %c0_142] : memref<3x18x18x32xf32, #tpu.memory_space<vmem>>, vector<1x16x16x32xf32>
    %121 = vector.shape_cast %120 : vector<1x16x16x32xf32> to vector<16x16x32xf32>
    %c1_143 = arith.constant 1 : index
    %c1_144 = arith.constant 1 : index
    %c0_145 = arith.constant 0 : index
    %c0_146 = arith.constant 0 : index
    %c0_147 = arith.constant 0 : index
    %122 = vector.load %arg5[%c1_143, %c1_144, %c0_145, %c0_146, %c0_147] : memref<2x3x3x1x32xf32, #tpu.memory_space<vmem>>, vector<1x1x1x1x32xf32>
    %123 = vector.shape_cast %122 : vector<1x1x1x1x32xf32> to vector<1x32xf32>
    %124 = vector.shape_cast %123 : vector<1x32xf32> to vector<1x1x32xf32>
    %125 = vector.broadcast %124 : vector<1x1x32xf32> to vector<16x16x32xf32>
    %126 = arith.mulf %121, %125 : vector<16x16x32xf32>
    %127 = arith.addf %119, %126 : vector<16x16x32xf32>
    %c2_148 = arith.constant 2 : index
    %c1_149 = arith.constant 1 : index
    %c1_150 = arith.constant 1 : index
    %c0_151 = arith.constant 0 : index
    %128 = vector.load %arg9[%c2_148, %c1_149, %c1_150, %c0_151] : memref<3x18x18x32xf32, #tpu.memory_space<vmem>>, vector<1x16x16x32xf32>
    %129 = vector.shape_cast %128 : vector<1x16x16x32xf32> to vector<16x16x32xf32>
    %c1_152 = arith.constant 1 : index
    %c1_153 = arith.constant 1 : index
    %c1_154 = arith.constant 1 : index
    %c0_155 = arith.constant 0 : index
    %c0_156 = arith.constant 0 : index
    %130 = vector.load %arg5[%c1_152, %c1_153, %c1_154, %c0_155, %c0_156] : memref<2x3x3x1x32xf32, #tpu.memory_space<vmem>>, vector<1x1x1x1x32xf32>
    %131 = vector.shape_cast %130 : vector<1x1x1x1x32xf32> to vector<1x32xf32>
    %132 = vector.shape_cast %131 : vector<1x32xf32> to vector<1x1x32xf32>
    %133 = vector.broadcast %132 : vector<1x1x32xf32> to vector<16x16x32xf32>
    %134 = arith.mulf %129, %133 : vector<16x16x32xf32>
    %135 = arith.addf %127, %134 : vector<16x16x32xf32>
    %c2_157 = arith.constant 2 : index
    %c1_158 = arith.constant 1 : index
    %c2_159 = arith.constant 2 : index
    %c0_160 = arith.constant 0 : index
    %136 = vector.load %arg9[%c2_157, %c1_158, %c2_159, %c0_160] : memref<3x18x18x32xf32, #tpu.memory_space<vmem>>, vector<1x16x16x32xf32>
    %137 = vector.shape_cast %136 : vector<1x16x16x32xf32> to vector<16x16x32xf32>
    %c1_161 = arith.constant 1 : index
    %c1_162 = arith.constant 1 : index
    %c2_163 = arith.constant 2 : index
    %c0_164 = arith.constant 0 : index
    %c0_165 = arith.constant 0 : index
    %138 = vector.load %arg5[%c1_161, %c1_162, %c2_163, %c0_164, %c0_165] : memref<2x3x3x1x32xf32, #tpu.memory_space<vmem>>, vector<1x1x1x1x32xf32>
    %139 = vector.shape_cast %138 : vector<1x1x1x1x32xf32> to vector<1x32xf32>
    %140 = vector.shape_cast %139 : vector<1x32xf32> to vector<1x1x32xf32>
    %141 = vector.broadcast %140 : vector<1x1x32xf32> to vector<16x16x32xf32>
    %142 = arith.mulf %137, %141 : vector<16x16x32xf32>
    %143 = arith.addf %135, %142 : vector<16x16x32xf32>
    %c2_166 = arith.constant 2 : index
    %c2_167 = arith.constant 2 : index
    %c0_168 = arith.constant 0 : index
    %c0_169 = arith.constant 0 : index
    %144 = vector.load %arg9[%c2_166, %c2_167, %c0_168, %c0_169] : memref<3x18x18x32xf32, #tpu.memory_space<vmem>>, vector<1x16x16x32xf32>
    %145 = vector.shape_cast %144 : vector<1x16x16x32xf32> to vector<16x16x32xf32>
    %c1_170 = arith.constant 1 : index
    %c2_171 = arith.constant 2 : index
    %c0_172 = arith.constant 0 : index
    %c0_173 = arith.constant 0 : index
    %c0_174 = arith.constant 0 : index
    %146 = vector.load %arg5[%c1_170, %c2_171, %c0_172, %c0_173, %c0_174] : memref<2x3x3x1x32xf32, #tpu.memory_space<vmem>>, vector<1x1x1x1x32xf32>
    %147 = vector.shape_cast %146 : vector<1x1x1x1x32xf32> to vector<1x32xf32>
    %148 = vector.shape_cast %147 : vector<1x32xf32> to vector<1x1x32xf32>
    %149 = vector.broadcast %148 : vector<1x1x32xf32> to vector<16x16x32xf32>
    %150 = arith.mulf %145, %149 : vector<16x16x32xf32>
    %151 = arith.addf %143, %150 : vector<16x16x32xf32>
    %c2_175 = arith.constant 2 : index
    %c2_176 = arith.constant 2 : index
    %c1_177 = arith.constant 1 : index
    %c0_178 = arith.constant 0 : index
    %152 = vector.load %arg9[%c2_175, %c2_176, %c1_177, %c0_178] : memref<3x18x18x32xf32, #tpu.memory_space<vmem>>, vector<1x16x16x32xf32>
    %153 = vector.shape_cast %152 : vector<1x16x16x32xf32> to vector<16x16x32xf32>
    %c1_179 = arith.constant 1 : index
    %c2_180 = arith.constant 2 : index
    %c1_181 = arith.constant 1 : index
    %c0_182 = arith.constant 0 : index
    %c0_183 = arith.constant 0 : index
    %154 = vector.load %arg5[%c1_179, %c2_180, %c1_181, %c0_182, %c0_183] : memref<2x3x3x1x32xf32, #tpu.memory_space<vmem>>, vector<1x1x1x1x32xf32>
    %155 = vector.shape_cast %154 : vector<1x1x1x1x32xf32> to vector<1x32xf32>
    %156 = vector.shape_cast %155 : vector<1x32xf32> to vector<1x1x32xf32>
    %157 = vector.broadcast %156 : vector<1x1x32xf32> to vector<16x16x32xf32>
    %158 = arith.mulf %153, %157 : vector<16x16x32xf32>
    %159 = arith.addf %151, %158 : vector<16x16x32xf32>
    %c2_184 = arith.constant 2 : index
    %c2_185 = arith.constant 2 : index
    %c2_186 = arith.constant 2 : index
    %c0_187 = arith.constant 0 : index
    %160 = vector.load %arg9[%c2_184, %c2_185, %c2_186, %c0_187] : memref<3x18x18x32xf32, #tpu.memory_space<vmem>>, vector<1x16x16x32xf32>
    %161 = vector.shape_cast %160 : vector<1x16x16x32xf32> to vector<16x16x32xf32>
    %c1_188 = arith.constant 1 : index
    %c2_189 = arith.constant 2 : index
    %c2_190 = arith.constant 2 : index
    %c0_191 = arith.constant 0 : index
    %c0_192 = arith.constant 0 : index
    %162 = vector.load %arg5[%c1_188, %c2_189, %c2_190, %c0_191, %c0_192] : memref<2x3x3x1x32xf32, #tpu.memory_space<vmem>>, vector<1x1x1x1x32xf32>
    %163 = vector.shape_cast %162 : vector<1x1x1x1x32xf32> to vector<1x32xf32>
    %164 = vector.shape_cast %163 : vector<1x32xf32> to vector<1x1x32xf32>
    %165 = vector.broadcast %164 : vector<1x1x32xf32> to vector<16x16x32xf32>
    %166 = arith.mulf %161, %165 : vector<16x16x32xf32>
    %167 = arith.addf %159, %166 : vector<16x16x32xf32>
    %cst_193 = arith.constant dense<0.000000e+00> : vector<16x16xf32>
    %168 = vector.multi_reduction <add>, %167, %cst_193 [2] : vector<16x16x32xf32> to vector<16x16xf32>
    %169 = vector.broadcast %94 : f32 to vector<16x16xf32>
    %170 = arith.addf %168, %169 : vector<16x16xf32>
    %cst_194 = arith.constant 0.000000e+00 : f32
    %171 = vector.broadcast %cst_194 : f32 to vector<16x16xf32>
    %172 = arith.maximumf %170, %171 : vector<16x16xf32>
    %c0_195 = arith.constant 0 : index
    %c0_196 = arith.constant 0 : index
    %c0_197 = arith.constant 0 : index
    %173 = vector.load %arg8[%c0_195, %c0_196, %c0_197] : memref<1x16x16xf32, #tpu.memory_space<vmem>>, vector<1x16x16xf32>
    %174 = vector.shape_cast %173 : vector<1x16x16xf32> to vector<16x16xf32>
    %175 = vector.shape_cast %172 : vector<16x16xf32> to vector<1x16x16xf32>
    tpu.vector_store %arg8[%c0_195, %c0_196, %c0_197], %175 {strides = array<i32>} : memref<1x16x16xf32, #tpu.memory_space<vmem>>, vector<1x16x16xf32>,
    return
  }
  func.func @transform_0(%arg0: i32) -> (i32, i32) {
    %c0_i32 = arith.constant 0 : i32
    %c0_i32_0 = arith.constant 0 : i32
    %c0_i32_1 = arith.constant 0 : i32
    return %c0_i32, %c0_i32_0 : i32, i32
  }
  func.func @transform_1(%arg0: i32) -> (i32, i32, i32, i32) {
    %c0_i32 = arith.constant 0 : i32
    %c0_i32_0 = arith.constant 0 : i32
    %c0_i32_1 = arith.constant 0 : i32
    %c0_i32_2 = arith.constant 0 : i32
    return %arg0, %c0_i32, %c0_i32_0, %c0_i32_1 : i32, i32, i32, i32
  }
  func.func @transform_2(%arg0: i32) -> (i32, i32, i32, i32, i32) {
    %c0_i32 = arith.constant 0 : i32
    %c0_i32_0 = arith.constant 0 : i32
    %c0_i32_1 = arith.constant 0 : i32
    %c0_i32_2 = arith.constant 0 : i32
    %c0_i32_3 = arith.constant 0 : i32
    %c0_i32_4 = arith.constant 0 : i32
    return %c0_i32, %c0_i32_0, %c0_i32_1, %c0_i32_2, %c0_i32_3 : i32, i32, i32, i32, i32
  }
  func.func @transform_3(%arg0: i32) -> (i32, i32, i32) {
    %c0_i32 = arith.constant 0 : i32
    %c0_i32_0 = arith.constant 0 : i32
    %c0_i32_1 = arith.constant 0 : i32
    %c0_i32_2 = arith.constant 0 : i32
    return %c0_i32, %c0_i32_0, %c0_i32_1 : i32, i32, i32
  }
  func.func @transform_4(%arg0: i32) -> (i32, i32, i32, i32, i32) {
    %c0_i32 = arith.constant 0 : i32
    %c0_i32_0 = arith.constant 0 : i32
    %c0_i32_1 = arith.constant 0 : i32
    %c0_i32_2 = arith.constant 0 : i32
    %c0_i32_3 = arith.constant 0 : i32
    %c0_i32_4 = arith.constant 0 : i32
    return %c0_i32, %c0_i32_0, %c0_i32_1, %c0_i32_2, %c0_i32_3 : i32, i32, i32, i32, i32
  }
  func.func @transform_5(%arg0: i32) -> i32 {
    %c0_i32 = arith.constant 0 : i32
    %c0_i32_0 = arith.constant 0 : i32
    return %c0_i32 : i32
  }
  func.func @transform_6(%arg0: i32) -> (i32, i32, i32) {
    %c0_i32 = arith.constant 0 : i32
    %c0_i32_0 = arith.constant 0 : i32
    %c0_i32_1 = arith.constant 0 : i32
    return %arg0, %c0_i32, %c0_i32_0 : i32, i32, i32
  }
  func.func @transform_7(%arg0: i32) -> (i32, i32, i32) {
    %c0_i32 = arith.constant 0 : i32
    %c0_i32_0 = arith.constant 0 : i32
    %c0_i32_1 = arith.constant 0 : i32
    return %arg0, %c0_i32, %c0_i32_0 : i32, i32, i32
  }
}

</mosaic_0001>

<bundles_post_ra>
// kernel: encoder_forward.1
= control target key start
LH: loop header
LB: loop body
LE: loop exit
PB: predicated region body
PF: predicated region fallthrough
CT: control target
= control target key end

     0   :  { %13 = vsyncpa [#allocation5], 0  ;;  %s9333_s0 = inlined_call_operand.vmem [shape: s32[2,11], index: 0, kind: input, shape index: {}]   ;;  %s9334_s1 = inlined_call_operand.vmem [shape: f32[2,16,16,32], index: 1, kind: input, shape index: {}]   ;;  %s9335_s2 = inlined_call_operand.vmem [shape: bf16[11,3,3,32,32], index: 2, kind: input, shape index: {}]   ;;  %s9336_s3 = inlined_call_operand.vmem [shape: f32[11,1,32], index: 3, kind: input, shape index: {}]   ;;  %s9337_s4 = inlined_call_operand.vmem [shape: f32[2,3,3,1,32], index: 4, kind: input, shape index: {}]   ;;  %s9338_s5 = inlined_call_operand.vmem [shape: f32[2], index: 5, kind: input, shape index: {}]   ;;  %s9339_s6 = inlined_call_operand.hbm [shape: f32[2,16,16], index: 6, kind: output, shape index: {0}]   ;;  %s9340_s7 = inlined_call_operand.hbm [shape: f32[2,16,16], index: 7, kind: output, shape index: {1}]  }
   0x1   :  { %14 = vsyncpa [#allocation7], 0 }
   0x2   :  { %15 = vsyncpa [#allocation4], 0 }
   0x3   :  { %17 = vsyncpa [#allocation4 + $0x1], 0 }
   0x4   :  { %18 = vsyncpa [#allocation10], 0 }
   0x5   :  { %20 = vsyncpa [#allocation10 + $0x1], 0  ;;  %s6105_s24 = smov 0   ;;  %s6107_s25 = smov 0  }
   0x6   :  { %s6109_s26 = smov 0   ;;  %s6111_s27 = smov 0  }
   0x7 LB: > { %s6126_s28 = sadd.s32 4294967295, %s6054_s27   ;;  %s5255_s29 = sadd.s32 4294967294, %s6054_s27   ;;  %s6054_s27 = sphi %s6111_s27, %s9419_s27   ;;  %s6050_s26 = sphi %s6109_s26, %s9418_s26   ;;  %s6046_s25 = sphi %s6107_s25, %s9417_s25   ;;  %s6042_s24 = sphi %s6105_s24, %s9416_s24  }
   0x8   : > { %s6130_s30 = sadd.s32 1, %s6054_s27   ;;  %s164_s8 = sadd.s32 1, %s6050_s26 }
   0x9   : > { %s161_s9 = ssub.s32 %s6054_s27, %s6130_s30  ;;  %p174_p0 = scmp.ne.s32.totalorder %s6050_s26, %s6046_s25 }
   0xa   : > { %p162_p1 = scmp.eq.s32.totalorder %s161_s9, 0  ;;  %p175_p2 = scmp.eq.s32.totalorder %s6126_s28, 1 }
   0xb   : > { %p180_p3 = scmp.ne.s32.totalorder %s6046_s25, %s6042_s24  ;;  %p181_p4 = scmp.eq.s32.totalorder %s5255_s29, 1 }
   0xc   : > { %s6141_s10 = scalar_select %p162_p1, %s6050_s26, %s164_s8  }
   0xd   : > { %p6143_p5 = por %p175_p2, %p174_p0  ;;  %p6147_p6 = por %p181_p4, %p180_p3 }
   0xe   : > { %p5256_p7 = scmp.ge.s32.totalorder %s6054_s27, 1  ;;  %p214_p8 = scmp.lt.s32.totalorder %s6054_s27, 3 }
   0xf   : > { %p5831_p9 = scmp.eq.s32.totalorder %s6126_s28, 0  ;;  %s226_s15 = sshll.u32 %s9333_s0, 4  ;;  %s227_s15 = int_to_ptr.vmem [resolvable:$true] %s226_s15 }
  0x10   : > { %p215_p10 = pnand %p5256_p7, %p214_p8  ;;  %s245_s18 = sshll.u32 %s9338_s5, 4  ;;  %s246_s18 = int_to_ptr.vmem [resolvable:$true] %s245_s18 }
  0x11   : > { %s6060_s19 = smov [#allocation3]   ;;  %s6061_s20 = smov [#allocation6]  }
  0x12   : > { %p5817_p11 = pneg %p215_p10 }
  0x13   : > { %266 = sbr.rel (%p215_p10) target bundleno = 1368 (0x558), region = 44 }
  0x14   : > { %p5818_p12 = pnand %p5831_p9, %p5817_p11 }
  0x16   : > { %5820 = dma.vmem_to_smem (!%p5818_p12), %s227_s15, 32, %s6060_s19, [#allocation5]  }
  0x17   : > { %5823 = dma.vmem_to_smem (!%p5818_p12), %s246_s18, 16, %s6061_s20, [#allocation7]  }
  0x18   : > { %6025 = dma.done.wait (%p5831_p9), [#allocation5], 32  }
  0x19   : > { %6027 = vsyncadd (%p5831_p9), [#allocation5], 4294967264 }
  0x1a   : > { %6029 = dma.done.wait (%p5831_p9), [#allocation7], 16  }
  0x1b   : > { %6031 = vsyncadd (%p5831_p9), [#allocation7], 4294967280 }
  0x1c   : > { %278 = sfence }
  0x1d   : > { %s6171_s21 = sand.u32 1, %s6046_s25   ;;  %vm316_vm0 = vcmask 261120   ;;  %v6062_v0 = vmov 0.0   ;;  %vm319_vm1 = vcmask 254976   ;;  %vm337_vm2 = vcmask 253952   ;;  %p310_p13 = scmp.lt.s32.totalorder %s6126_s28, 1 }
  0x1e   : > { %s5263_s22 = sshll.u32 %s6171_s21, 4  ;;  %317 = vst.msk [vmem:[#allocation2] sm:$0xff] %vm316_vm0, %v6062_v0  ;;  %s6499_s16 = smov 0  }
  0x1f   : > { %318 = vst.msk [vmem:[#allocation2 + $0x8] sm:$0xff] %vm316_vm0, %v6062_v0  ;;  %s311_s23 = scalar_select %p310_p13, %s6126_s28, 1 }
  0x20   : > { %321 = vst.msk [vmem:[#allocation2 + $0x1b0] sm:$0xff] %vm316_vm0, %v6062_v0  ;;  %s6493_s14 = scalar_lea.vmem [#allocation8], %s5263_s22  ;;  %s6497_s15 = scalar_lea.vmem [#allocation9], %s5263_s22 }
  0x21   : > { %322 = vst.msk [vmem:[#allocation2 + $0x1b8] sm:$0xff] %vm316_vm0, %v6062_v0  ;;  %s5775_s29 = sshll.u32 %s311_s23, 8 }
  0x22   : > { %324 = vst.msk [vmem:[#allocation2 + $0x360] sm:$0xff] %vm316_vm0, %v6062_v0  ;;  %s6415_s13 = scalar_lea.vmem %s9334_s1, %s5775_s29 }
  0x23   : > { %325 = vst.msk [vmem:[#allocation2 + $0x368] sm:$0xff] %vm316_vm0, %v6062_v0  ;;  %v446_v1 = vld [vmem:[%s6415_s13] sm:$0xff]  ;;  %v447_v2 = vld [vmem:[%s6415_s13 + $0x8] sm:$0xff]  ;;  %v448_v3 = vld [vmem:[%s6415_s13 + $0x10] sm:$0xff] }
  0x24   : > { %328 = vst.msk [vmem:[#allocation2 + $0x198] sm:$0xff] %vm316_vm0, %v6062_v0  ;;  %v449_v4 = vld [vmem:[%s6415_s13 + $0x18] sm:$0xff]  ;;  %v450_v5 = vld [vmem:[%s6415_s13 + $0x20] sm:$0xff]  ;;  %v451_v6 = vld [vmem:[%s6415_s13 + $0x28] sm:$0xff] }
  0x25   : > { %329 = vst.msk [vmem:[#allocation2 + $0x1a0] sm:$0xff] %vm316_vm0, %v6062_v0  ;;  %v452_v7 = vld [vmem:[%s6415_s13 + $0x30] sm:$0xff]  ;;  %v453_v8 = vld [vmem:[%s6415_s13 + $0x38] sm:$0xff]  ;;  %v454_v9 = vld [vmem:[%s6415_s13 + $0x40] sm:$0xff] }
  0x26   : > { %331 = vst.msk [vmem:[#allocation2 + $0x348] sm:$0xff] %vm316_vm0, %v6062_v0  ;;  %v455_v10 = vld [vmem:[%s6415_s13 + $0x48] sm:$0xff]  ;;  %v456_v11 = vld [vmem:[%s6415_s13 + $0x50] sm:$0xff]  ;;  %v457_v12 = vld [vmem:[%s6415_s13 + $0x58] sm:$0xff] }
  0x27   : > { %332 = vst.msk [vmem:[#allocation2 + $0x350] sm:$0xff] %vm316_vm0, %v6062_v0  ;;  %v458_v13 = vld [vmem:[%s6415_s13 + $0x60] sm:$0xff]  ;;  %v459_v14 = vld [vmem:[%s6415_s13 + $0x68] sm:$0xff]  ;;  %v460_v15 = vld [vmem:[%s6415_s13 + $0x70] sm:$0xff] }
  0x28   : > { %334 = vst.msk [vmem:[#allocation2 + $0x4f8] sm:$0xff] %vm316_vm0, %v6062_v0  ;;  %v461_v16 = vld [vmem:[%s6415_s13 + $0x78] sm:$0xff]  ;;  %v462_v17 = vld [vmem:[%s6415_s13 + $0x80] sm:$0xff]  ;;  %v463_v18 = vld [vmem:[%s6415_s13 + $0x88] sm:$0xff] }
  0x29   : > { %335 = vst.msk [vmem:[#allocation2 + $0x500] sm:$0xff] %vm316_vm0, %v6062_v0  ;;  %v464_v19 = vld [vmem:[%s6415_s13 + $0x90] sm:$0xff]  ;;  %v465_v20 = vld [vmem:[%s6415_s13 + $0x98] sm:$0xff]  ;;  %v466_v21 = vld [vmem:[%s6415_s13 + $0xa0] sm:$0xff] }
  0x2a   : > { %320 = vst.msk [vmem:[#allocation2 + $0x10] sm:$0x3] %vm319_vm1, %v6062_v0  ;;  %v467_v22 = vld [vmem:[%s6415_s13 + $0xa8] sm:$0xff]  ;;  %v468_v23 = vld [vmem:[%s6415_s13 + $0xb0] sm:$0xff]  ;;  %v469_v24 = vld [vmem:[%s6415_s13 + $0xb8] sm:$0xff] }
  0x2b   : > { %323 = vst.msk [vmem:[#allocation2 + $0x1c0] sm:$0x3] %vm319_vm1, %v6062_v0  ;;  %v470_v25 = vld [vmem:[%s6415_s13 + $0xc0] sm:$0xff]  ;;  %v471_v26 = vld [vmem:[%s6415_s13 + $0xc8] sm:$0xff]  ;;  %v472_v27 = vld [vmem:[%s6415_s13 + $0xd0] sm:$0xff] }
  0x2c   : > { %326 = vst.msk [vmem:[#allocation2 + $0x370] sm:$0x3] %vm319_vm1, %v6062_v0  ;;  %v473_v28 = vld [vmem:[%s6415_s13 + $0xd8] sm:$0xff]  ;;  %v474_v29 = vld [vmem:[%s6415_s13 + $0xe0] sm:$0xff]  ;;  %v475_v30 = vld [vmem:[%s6415_s13 + $0xe8] sm:$0xff] }
  0x2d   : > { %330 = vst.msk [vmem:[#allocation2 + $0x1a8] sm:$0x3] %vm319_vm1, %v6062_v0  ;;  %v476_v31 = vld [vmem:[%s6415_s13 + $0xf0] sm:$0xff]  ;;  %v477_v32 = vld [vmem:[%s6415_s13 + $0xf8] sm:$0xff] }
  0x2e   : > { %333 = vst.msk [vmem:[#allocation2 + $0x358] sm:$0x3] %vm319_vm1, %v6062_v0 }
  0x2f   : > { %336 = vst.msk [vmem:[#allocation2 + $0x508] sm:$0x3] %vm319_vm1, %v6062_v0 }
  0x30   : > { %338 = vst.msk [vmem:[#allocation2] sm:$0x1] %vm337_vm2, %v6062_v0 }
  0x31   : > { %339 = vst.msk [vmem:[#allocation2 + $0x18] sm:$0x1] %vm337_vm2, %v6062_v0 }
  0x32   : > { %340 = vst.msk [vmem:[#allocation2 + $0x30] sm:$0x1] %vm337_vm2, %v6062_v0 }
  0x33   : > { %341 = vst.msk [vmem:[#allocation2 + $0x48] sm:$0x1] %vm337_vm2, %v6062_v0 }
  0x34   : > { %342 = vst.msk [vmem:[#allocation2 + $0x60] sm:$0x1] %vm337_vm2, %v6062_v0 }
  0x35   : > { %343 = vst.msk [vmem:[#allocation2 + $0x78] sm:$0x1] %vm337_vm2, %v6062_v0 }
  0x36   : > { %344 = vst.msk [vmem:[#allocation2 + $0x90] sm:$0x1] %vm337_vm2, %v6062_v0 }
  0x37   : > { %345 = vst.msk [vmem:[#allocation2 + $0xa8] sm:$0x1] %vm337_vm2, %v6062_v0 }
  0x38   : > { %346 = vst.msk [vmem:[#allocation2 + $0xc0] sm:$0x1] %vm337_vm2, %v6062_v0 }
  0x39   : > { %347 = vst.msk [vmem:[#allocation2 + $0xd8] sm:$0x1] %vm337_vm2, %v6062_v0 }
  0x3a   : > { %348 = vst.msk [vmem:[#allocation2 + $0xf0] sm:$0x1] %vm337_vm2, %v6062_v0 }
  0x3b   : > { %349 = vst.msk [vmem:[#allocation2 + $0x108] sm:$0x1] %vm337_vm2, %v6062_v0 }
  0x3c   : > { %350 = vst.msk [vmem:[#allocation2 + $0x120] sm:$0x1] %vm337_vm2, %v6062_v0 }
  0x3d   : > { %351 = vst.msk [vmem:[#allocation2 + $0x138] sm:$0x1] %vm337_vm2, %v6062_v0 }
  0x3e   : > { %352 = vst.msk [vmem:[#allocation2 + $0x150] sm:$0x1] %vm337_vm2, %v6062_v0 }
  0x3f   : > { %353 = vst.msk [vmem:[#allocation2 + $0x168] sm:$0x1] %vm337_vm2, %v6062_v0 }
  0x40   : > { %354 = vst.msk [vmem:[#allocation2 + $0x180] sm:$0x1] %vm337_vm2, %v6062_v0 }
  0x41   : > { %355 = vst.msk [vmem:[#allocation2 + $0x198] sm:$0x1] %vm337_vm2, %v6062_v0 }
  0x42   : > { %356 = vst.msk [vmem:[#allocation2 + $0x1b0] sm:$0x1] %vm337_vm2, %v6062_v0 }
  0x43   : > { %357 = vst.msk [vmem:[#allocation2 + $0x1c8] sm:$0x1] %vm337_vm2, %v6062_v0 }
  0x44   : > { %358 = vst.msk [vmem:[#allocation2 + $0x1e0] sm:$0x1] %vm337_vm2, %v6062_v0 }
  0x45   : > { %359 = vst.msk [vmem:[#allocation2 + $0x1f8] sm:$0x1] %vm337_vm2, %v6062_v0 }
  0x46   : > { %360 = vst.msk [vmem:[#allocation2 + $0x210] sm:$0x1] %vm337_vm2, %v6062_v0 }
  0x47   : > { %361 = vst.msk [vmem:[#allocation2 + $0x228] sm:$0x1] %vm337_vm2, %v6062_v0 }
  0x48   : > { %362 = vst.msk [vmem:[#allocation2 + $0x240] sm:$0x1] %vm337_vm2, %v6062_v0 }
  0x49   : > { %363 = vst.msk [vmem:[#allocation2 + $0x258] sm:$0x1] %vm337_vm2, %v6062_v0 }
  0x4a   : > { %364 = vst.msk [vmem:[#allocation2 + $0x270] sm:$0x1] %vm337_vm2, %v6062_v0 }
  0x4b   : > { %365 = vst.msk [vmem:[#allocation2 + $0x288] sm:$0x1] %vm337_vm2, %v6062_v0 }
  0x4c   : > { %366 = vst.msk [vmem:[#allocation2 + $0x2a0] sm:$0x1] %vm337_vm2, %v6062_v0 }
  0x4d   : > { %367 = vst.msk [vmem:[#allocation2 + $0x2b8] sm:$0x1] %vm337_vm2, %v6062_v0 }
  0x4e   : > { %368 = vst.msk [vmem:[#allocation2 + $0x2d0] sm:$0x1] %vm337_vm2, %v6062_v0 }
  0x4f   : > { %369 = vst.msk [vmem:[#allocation2 + $0x2e8] sm:$0x1] %vm337_vm2, %v6062_v0 }
  0x50   : > { %370 = vst.msk [vmem:[#allocation2 + $0x300] sm:$0x1] %vm337_vm2, %v6062_v0 }
  0x51   : > { %371 = vst.msk [vmem:[#allocation2 + $0x318] sm:$0x1] %vm337_vm2, %v6062_v0 }
  0x52   : > { %372 = vst.msk [vmem:[#allocation2 + $0x330] sm:$0x1] %vm337_vm2, %v6062_v0 }
  0x53   : > { %373 = vst.msk [vmem:[#allocation2 + $0x348] sm:$0x1] %vm337_vm2, %v6062_v0 }
  0x54   : > { %374 = vst.msk [vmem:[#allocation2 + $0x360] sm:$0x1] %vm337_vm2, %v6062_v0 }
  0x55   : > { %375 = vst.msk [vmem:[#allocation2 + $0x378] sm:$0x1] %vm337_vm2, %v6062_v0 }
  0x56   : > { %376 = vst.msk [vmem:[#allocation2 + $0x390] sm:$0x1] %vm337_vm2, %v6062_v0 }
  0x57   : > { %377 = vst.msk [vmem:[#allocation2 + $0x3a8] sm:$0x1] %vm337_vm2, %v6062_v0 }
  0x58   : > { %378 = vst.msk [vmem:[#allocation2 + $0x3c0] sm:$0x1] %vm337_vm2, %v6062_v0 }
  0x59   : > { %379 = vst.msk [vmem:[#allocation2 + $0x3d8] sm:$0x1] %vm337_vm2, %v6062_v0 }
  0x5a   : > { %380 = vst.msk [vmem:[#allocation2 + $0x3f0] sm:$0x1] %vm337_vm2, %v6062_v0 }
  0x5b   : > { %381 = vst.msk [vmem:[#allocation2 + $0x408] sm:$0x1] %vm337_vm2, %v6062_v0 }
  0x5c   : > { %382 = vst.msk [vmem:[#allocation2 + $0x420] sm:$0x1] %vm337_vm2, %v6062_v0 }
  0x5d   : > { %383 = vst.msk [vmem:[#allocation2 + $0x438] sm:$0x1] %vm337_vm2, %v6062_v0 }
  0x5e   : > { %384 = vst.msk [vmem:[#allocation2 + $0x450] sm:$0x1] %vm337_vm2, %v6062_v0 }
  0x5f   : > { %385 = vst.msk [vmem:[#allocation2 + $0x468] sm:$0x1] %vm337_vm2, %v6062_v0 }
  0x60   : > { %386 = vst.msk [vmem:[#allocation2 + $0x480] sm:$0x1] %vm337_vm2, %v6062_v0 }
  0x61   : > { %387 = vst.msk [vmem:[#allocation2 + $0x498] sm:$0x1] %vm337_vm2, %v6062_v0 }
  0x62   : > { %388 = vst.msk [vmem:[#allocation2 + $0x4b0] sm:$0x1] %vm337_vm2, %v6062_v0 }
  0x63   : > { %389 = vst.msk [vmem:[#allocation2 + $0x4c8] sm:$0x1] %vm337_vm2, %v6062_v0 }
  0x64   : > { %390 = vst.msk [vmem:[#allocation2 + $0x4e0] sm:$0x1] %vm337_vm2, %v6062_v0 }
  0x65   : > { %391 = vst.msk [vmem:[#allocation2 + $0x4f8] sm:$0x1] %vm337_vm2, %v6062_v0 }
  0x66   : > { %392 = vst.msk [vmem:[#allocation2 + $0x11] sm:$0x1] %vm337_vm2, %v6062_v0 }
  0x67   : > { %393 = vst.msk [vmem:[#allocation2 + $0x29] sm:$0x1] %vm337_vm2, %v6062_v0 }
  0x68   : > { %394 = vst.msk [vmem:[#allocation2 + $0x41] sm:$0x1] %vm337_vm2, %v6062_v0 }
  0x69   : > { %395 = vst.msk [vmem:[#allocation2 + $0x59] sm:$0x1] %vm337_vm2, %v6062_v0 }
  0x6a   : > { %396 = vst.msk [vmem:[#allocation2 + $0x71] sm:$0x1] %vm337_vm2, %v6062_v0 }
  0x6b   : > { %397 = vst.msk [vmem:[#allocation2 + $0x89] sm:$0x1] %vm337_vm2, %v6062_v0 }
  0x6c   : > { %398 = vst.msk [vmem:[#allocation2 + $0xa1] sm:$0x1] %vm337_vm2, %v6062_v0 }
  0x6d   : > { %399 = vst.msk [vmem:[#allocation2 + $0xb9] sm:$0x1] %vm337_vm2, %v6062_v0 }
  0x6e   : > { %400 = vst.msk [vmem:[#allocation2 + $0xd1] sm:$0x1] %vm337_vm2, %v6062_v0 }
  0x6f   : > { %401 = vst.msk [vmem:[#allocation2 + $0xe9] sm:$0x1] %vm337_vm2, %v6062_v0 }
  0x70   : > { %402 = vst.msk [vmem:[#allocation2 + $0x101] sm:$0x1] %vm337_vm2, %v6062_v0 }
  0x71   : > { %403 = vst.msk [vmem:[#allocation2 + $0x119] sm:$0x1] %vm337_vm2, %v6062_v0 }
  0x72   : > { %404 = vst.msk [vmem:[#allocation2 + $0x131] sm:$0x1] %vm337_vm2, %v6062_v0 }
  0x73   : > { %405 = vst.msk [vmem:[#allocation2 + $0x149] sm:$0x1] %vm337_vm2, %v6062_v0 }
  0x74   : > { %406 = vst.msk [vmem:[#allocation2 + $0x161] sm:$0x1] %vm337_vm2, %v6062_v0 }
  0x75   : > { %407 = vst.msk [vmem:[#allocation2 + $0x179] sm:$0x1] %vm337_vm2, %v6062_v0 }
  0x76   : > { %408 = vst.msk [vmem:[#allocation2 + $0x191] sm:$0x1] %vm337_vm2, %v6062_v0 }
  0x77   : > { %409 = vst.msk [vmem:[#allocation2 + $0x1a9] sm:$0x1] %vm337_vm2, %v6062_v0 }
  0x78   : > { %410 = vst.msk [vmem:[#allocation2 + $0x1c1] sm:$0x1] %vm337_vm2, %v6062_v0 }
  0x79   : > { %411 = vst.msk [vmem:[#allocation2 + $0x1d9] sm:$0x1] %vm337_vm2, %v6062_v0 }
  0x7a   : > { %412 = vst.msk [vmem:[#allocation2 + $0x1f1] sm:$0x1] %vm337_vm2, %v6062_v0 }
  0x7b   : > { %413 = vst.msk [vmem:[#allocation2 + $0x209] sm:$0x1] %vm337_vm2, %v6062_v0 }
  0x7c   : > { %414 = vst.msk [vmem:[#allocation2 + $0x221] sm:$0x1] %vm337_vm2, %v6062_v0 }
  0x7d   : > { %415 = vst.msk [vmem:[#allocation2 + $0x239] sm:$0x1] %vm337_vm2, %v6062_v0 }
  0x7e   : > { %416 = vst.msk [vmem:[#allocation2 + $0x251] sm:$0x1] %vm337_vm2, %v6062_v0 }
  0x7f   : > { %417 = vst.msk [vmem:[#allocation2 + $0x269] sm:$0x1] %vm337_vm2, %v6062_v0 }
  0x80   : > { %418 = vst.msk [vmem:[#allocation2 + $0x281] sm:$0x1] %vm337_vm2, %v6062_v0 }
  0x81   : > { %419 = vst.msk [vmem:[#allocation2 + $0x299] sm:$0x1] %vm337_vm2, %v6062_v0 }
  0x82   : > { %420 = vst.msk [vmem:[#allocation2 + $0x2b1] sm:$0x1] %vm337_vm2, %v6062_v0 }
  0x83   : > { %421 = vst.msk [vmem:[#allocation2 + $0x2c9] sm:$0x1] %vm337_vm2, %v6062_v0 }
  0x84   : > { %422 = vst.msk [vmem:[#allocation2 + $0x2e1] sm:$0x1] %vm337_vm2, %v6062_v0 }
  0x85   : > { %423 = vst.msk [vmem:[#allocation2 + $0x2f9] sm:$0x1] %vm337_vm2, %v6062_v0 }
  0x86   : > { %424 = vst.msk [vmem:[#allocation2 + $0x311] sm:$0x1] %vm337_vm2, %v6062_v0 }
  0x87   : > { %425 = vst.msk [vmem:[#allocation2 + $0x329] sm:$0x1] %vm337_vm2, %v6062_v0 }
  0x88   : > { %426 = vst.msk [vmem:[#allocation2 + $0x341] sm:$0x1] %vm337_vm2, %v6062_v0 }
  0x89   : > { %427 = vst.msk [vmem:[#allocation2 + $0x359] sm:$0x1] %vm337_vm2, %v6062_v0 }
  0x8a   : > { %428 = vst.msk [vmem:[#allocation2 + $0x371] sm:$0x1] %vm337_vm2, %v6062_v0 }
  0x8b   : > { %429 = vst.msk [vmem:[#allocation2 + $0x389] sm:$0x1] %vm337_vm2, %v6062_v0 }
  0x8c   : > { %430 = vst.msk [vmem:[#allocation2 + $0x3a1] sm:$0x1] %vm337_vm2, %v6062_v0 }
  0x8d   : > { %431 = vst.msk [vmem:[#allocation2 + $0x3b9] sm:$0x1] %vm337_vm2, %v6062_v0 }
  0x8e   : > { %432 = vst.msk [vmem:[#allocation2 + $0x3d1] sm:$0x1] %vm337_vm2, %v6062_v0 }
  0x8f   : > { %433 = vst.msk [vmem:[#allocation2 + $0x3e9] sm:$0x1] %vm337_vm2, %v6062_v0 }
  0x90   : > { %434 = vst.msk [vmem:[#allocation2 + $0x401] sm:$0x1] %vm337_vm2, %v6062_v0 }
  0x91   : > { %435 = vst.msk [vmem:[#allocation2 + $0x419] sm:$0x1] %vm337_vm2, %v6062_v0 }
  0x92   : > { %436 = vst.msk [vmem:[#allocation2 + $0x431] sm:$0x1] %vm337_vm2, %v6062_v0 }
  0x93   : > { %437 = vst.msk [vmem:[#allocation2 + $0x449] sm:$0x1] %vm337_vm2, %v6062_v0 }
  0x94   : > { %438 = vst.msk [vmem:[#allocation2 + $0x461] sm:$0x1] %vm337_vm2, %v6062_v0 }
  0x95   : > { %439 = vst.msk [vmem:[#allocation2 + $0x479] sm:$0x1] %vm337_vm2, %v6062_v0 }
  0x96   : > { %440 = vst.msk [vmem:[#allocation2 + $0x491] sm:$0x1] %vm337_vm2, %v6062_v0 }
  0x97   : > { %441 = vst.msk [vmem:[#allocation2 + $0x4a9] sm:$0x1] %vm337_vm2, %v6062_v0 }
  0x98   : > { %442 = vst.msk [vmem:[#allocation2 + $0x4c1] sm:$0x1] %vm337_vm2, %v6062_v0 }
  0x99   : > { %443 = vst.msk [vmem:[#allocation2 + $0x4d9] sm:$0x1] %vm337_vm2, %v6062_v0 }
  0x9a   : > { %444 = vst.msk [vmem:[#allocation2 + $0x4f1] sm:$0x1] %vm337_vm2, %v6062_v0 }
  0x9b   : > { %445 = vst.msk [vmem:[#allocation2 + $0x509] sm:$0x1] %vm337_vm2, %v6062_v0 }
  0x9c   : > { %479 = vst.msk [vmem:[#allocation2 + $0x19] sm:$0xff] %vm316_vm0, %v446_v1 }
  0x9d   : > { %480 = vst.msk [vmem:[#allocation2 + $0x21] sm:$0xff] %vm316_vm0, %v447_v2 }
  0x9e   : > { %481 = vst.msk [vmem:[#allocation2 + $0x31] sm:$0xff] %vm316_vm0, %v448_v3 }
  0x9f   : > { %482 = vst.msk [vmem:[#allocation2 + $0x39] sm:$0xff] %vm316_vm0, %v449_v4 }
  0xa0   : > { %483 = vst.msk [vmem:[#allocation2 + $0x49] sm:$0xff] %vm316_vm0, %v450_v5 }
  0xa1   : > { %484 = vst.msk [vmem:[#allocation2 + $0x51] sm:$0xff] %vm316_vm0, %v451_v6 }
  0xa2   : > { %485 = vst.msk [vmem:[#allocation2 + $0x61] sm:$0xff] %vm316_vm0, %v452_v7 }
  0xa3   : > { %486 = vst.msk [vmem:[#allocation2 + $0x69] sm:$0xff] %vm316_vm0, %v453_v8 }
  0xa4   : > { %487 = vst.msk [vmem:[#allocation2 + $0x79] sm:$0xff] %vm316_vm0, %v454_v9 }
  0xa5   : > { %488 = vst.msk [vmem:[#allocation2 + $0x81] sm:$0xff] %vm316_vm0, %v455_v10 }
  0xa6   : > { %489 = vst.msk [vmem:[#allocation2 + $0x91] sm:$0xff] %vm316_vm0, %v456_v11 }
  0xa7   : > { %490 = vst.msk [vmem:[#allocation2 + $0x99] sm:$0xff] %vm316_vm0, %v457_v12 }
  0xa8   : > { %491 = vst.msk [vmem:[#allocation2 + $0xa9] sm:$0xff] %vm316_vm0, %v458_v13 }
  0xa9   : > { %492 = vst.msk [vmem:[#allocation2 + $0xb1] sm:$0xff] %vm316_vm0, %v459_v14 }
  0xaa   : > { %493 = vst.msk [vmem:[#allocation2 + $0xc1] sm:$0xff] %vm316_vm0, %v460_v15 }
  0xab   : > { %494 = vst.msk [vmem:[#allocation2 + $0xc9] sm:$0xff] %vm316_vm0, %v461_v16 }
  0xac   : > { %495 = vst.msk [vmem:[#allocation2 + $0xd9] sm:$0xff] %vm316_vm0, %v462_v17 }
  0xad   : > { %496 = vst.msk [vmem:[#allocation2 + $0xe1] sm:$0xff] %vm316_vm0, %v463_v18 }
  0xae   : > { %497 = vst.msk [vmem:[#allocation2 + $0xf1] sm:$0xff] %vm316_vm0, %v464_v19 }
  0xaf   : > { %498 = vst.msk [vmem:[#allocation2 + $0xf9] sm:$0xff] %vm316_vm0, %v465_v20 }
  0xb0   : > { %499 = vst.msk [vmem:[#allocation2 + $0x109] sm:$0xff] %vm316_vm0, %v466_v21 }
  0xb1   : > { %500 = vst.msk [vmem:[#allocation2 + $0x111] sm:$0xff] %vm316_vm0, %v467_v22 }
  0xb2   : > { %501 = vst.msk [vmem:[#allocation2 + $0x121] sm:$0xff] %vm316_vm0, %v468_v23 }
  0xb3   : > { %502 = vst.msk [vmem:[#allocation2 + $0x129] sm:$0xff] %vm316_vm0, %v469_v24 }
  0xb4   : > { %503 = vst.msk [vmem:[#allocation2 + $0x139] sm:$0xff] %vm316_vm0, %v470_v25 }
  0xb5   : > { %504 = vst.msk [vmem:[#allocation2 + $0x141] sm:$0xff] %vm316_vm0, %v471_v26 }
  0xb6   : > { %505 = vst.msk [vmem:[#allocation2 + $0x151] sm:$0xff] %vm316_vm0, %v472_v27 }
  0xb7   : > { %506 = vst.msk [vmem:[#allocation2 + $0x159] sm:$0xff] %vm316_vm0, %v473_v28 }
  0xb8   : > { %507 = vst.msk [vmem:[#allocation2 + $0x169] sm:$0xff] %vm316_vm0, %v474_v29 }
  0xb9   : > { %508 = vst.msk [vmem:[#allocation2 + $0x171] sm:$0xff] %vm316_vm0, %v475_v30 }
  0xba   : > { %509 = vst.msk [vmem:[#allocation2 + $0x181] sm:$0xff] %vm316_vm0, %v476_v31 }
  0xbb   : > { %510 = vst.msk [vmem:[#allocation2 + $0x189] sm:$0xff] %vm316_vm0, %v477_v32 }
  0xbc LB: >> { %s517_s17 = sld [smem:[#allocation3 + %s6058_s16]]  ;;  %s526_s20 = scalar_lea.vmem %s9336_s3, %s6058_s16  ;;  %s6058_s16 = sphi %s6499_s16, %s516_s16  }
  0xbd   : >> { %s5778_s23 = smul.u32 144, %s6058_s16 }
  0xbf   : >> { %s6513_s22 = scalar_lea.vmem %s9335_s2, %s5778_s23  ;;  %s523_s23 = sand.u32 127, %s6058_s16 }
  0xc0   : >> { %v5782_v33 = vld [vmem:[%s6513_s22 + $0x18] sm:$0xff]  ;;  %v5781_v34 = vld [vmem:[%s6513_s22 + $0x10] sm:$0xff]  ;;  %v5784_v35 = vld [vmem:[%s6513_s22 + $0x28] sm:$0xff] }
  0xc1   : >> { %5799 = vmatpush.bf16.msra.mxu1 %v5782_v33  ;;  %5800 = vmatpush.bf16.msra.mxu2 %v5782_v33  ;;  %v5786_v36 = vld [vmem:[%s6513_s22 + $0x38] sm:$0xff]  ;;  %v5780_v49 = vld [vmem:[%s6513_s22 + $0x8] sm:$0xff]  ;;  %v5783_v51 = vld [vmem:[%s6513_s22 + $0x20] sm:$0xff] }
  0xc2   : >> { %s528_s9 = smul.u32 432, %s517_s17  ;;  %5801 = vmatpush.bf16.msra.mxu3 %v5782_v33  ;;  %706 = vmatpush.bf16.msra.mxu0 %v5782_v33  ;;  %v5788_v50 = vld [vmem:[%s6513_s22 + $0x48] sm:$0xff]  ;;  %v5785_v52 = vld [vmem:[%s6513_s22 + $0x30] sm:$0xff]  ;;  %v5779_v53 = vld [vmem:[%s6513_s22] sm:$0xff]  ;;  %s518_s17 = sshra.s32 %s6058_s16, 7 }
  0xc3   : >> { %v5787_v54 = vld [vmem:[%s6513_s22 + $0x40] sm:$0xff]  ;;  %v5792_v15 = vld [vmem:[%s6513_s22 + $0x68] sm:$0xff]  ;;  %v5794_v16 = vld [vmem:[%s6513_s22 + $0x78] sm:$0xff]  ;;  %s5776_s18 = sshll.u32 %s518_s17, 7  ;;  %s516_s16 = sadd.s32 1, %s6058_s16  }
  0xc4   : >> { %s6519_s13 = scalar_lea.vmem [#allocation2], %s528_s9  ;;  %v5790_v17 = vld [vmem:[%s6513_s22 + $0x58] sm:$0xff]  ;;  %v5796_v18 = vld [vmem:[%s6513_s22 + $0x88] sm:$0xff]  ;;  %s5777_s19 = sadd.s32 128, %s5776_s18 }
  0xc5   : >> { %v593_v37 = vld [vmem:[%s6519_s13 + $0x61] sm:$0xff]  ;;  %v594_v38 = vld [vmem:[%s6519_s13 + $0x69] sm:$0xff]  ;;  %5802 = vmatpush.bf16.msra.mxu1 %v5781_v34  ;;  %5803 = vmatpush.bf16.msra.mxu2 %v5781_v34  ;;  %v595_v55 = vld [vmem:[%s6519_s13 + $0x79] sm:$0xff]  ;;  %s524_s29 = sadd.s32 %s5777_s19, %s523_s23  ;;  %p513_p0 = scmp.ge.s32.totalorder %s516_s16, 11  }
  0xc6   : >> { %v601_v39 = vld [vmem:[%s6519_s13 + $0xc1] sm:$0xff]  ;;  %v602_v40 = vld [vmem:[%s6519_s13 + $0xc9] sm:$0xff]  ;;  %v6527_v43 = vpack.c.bf16 %v594_v38, %v593_v37  ;;  %5804 = vmatpush.bf16.msra.mxu3 %v5781_v34  ;;  %707 = vmatpush.bf16.msra.mxu0 %v5781_v34  ;;  %v603_v57 = vld [vmem:[%s6519_s13 + $0xd9] sm:$0xff]  ;;  %s7110_s8 = sld [smem:[#allocation3 + %s524_s29]]  ;;  %vm3804_vm3 = vcmask (%p513_p0), 130112   ;;  %vm3851_vm4 = vcmask (%p513_p0), 1041409  }
  0xc7   : >> { %v609_v41 = vld [vmem:[%s6519_s13 + $0x121] sm:$0xff]  ;;  %v610_v42 = vld [vmem:[%s6519_s13 + $0x129] sm:$0xff]  ;;  %v6529_v44 = vpack.c.bf16 %v602_v40, %v601_v39  ;;  %v611_v59 = vld [vmem:[%s6519_s13 + $0x139] sm:$0xff]  ;;  %vm3853_vm5 = vcmask (%p513_p0), 1042434   ;;  %vm3855_vm6 = vcmask (%p513_p0), 1043459   ;;  %vm3857_vm7 = vcmask (%p513_p0), 1044484  }
  0xc8   : >> { %v585_v45 = vld [vmem:[%s6519_s13 + $0x1] sm:$0xff]  ;;  %v586_v46 = vld [vmem:[%s6519_s13 + $0x9] sm:$0xff]  ;;  %v6533_v47 = vpack.c.bf16 %v610_v42, %v609_v41  ;;  %5286 = vmatmul.msk.bf16.vlgmr.msra.gmra.mxu1 %vm316_vm0, %v6527_v43  ;;  %v587_v61 = vld [vmem:[%s6519_s13 + $0x19] sm:$0xff]  ;;  %vm3859_vm8 = vcmask (%p513_p0), 1045509   ;;  %vm3861_vm9 = vcmask (%p513_p0), 1046534   ;;  %vm3863_vm10 = vcmask (%p513_p0), 1047559  }
  0xc9   : >> { %v617_v48 = vpack.c.bf16 %v586_v46, %v585_v45  ;;  %1059 = vmatpush.bf16.msrb.mxu2 %v5784_v35  ;;  %855 = vmatpush.bf16.msrb.mxu1 %v5780_v49  ;;  %v596_v56 = vld [vmem:[%s6519_s13 + $0x81] sm:$0xff]  ;;  %v597_v3 = vld [vmem:[%s6519_s13 + $0x91] sm:$0xff]  ;;  %v598_v4 = vld [vmem:[%s6519_s13 + $0x99] sm:$0xff]  ;;  %vm3874_vm11 = vcmask (%p513_p0), 130048   ;;  %s9352_s9 = sshll.u32 (%p513_p0), %s6126_s28, 4  ;;  %s5067_s18 = sshll.u32 (%p513_p0), %s6493_s14, 4  ;;  %s9170_s18 = int_to_ptr.vmem [resolvable:$true] %s5067_s18 }
  0xca   : >> { %1297 = vmatpush.bf16.msrb.mxu3 %v5786_v36  ;;  %5290 = vmatmul.msk.bf16.vlgmr.msra.gmra.mxu2 %vm316_vm0, %v6529_v44  ;;  %v604_v58 = vld [vmem:[%s6519_s13 + $0xe1] sm:$0xff]  ;;  %v6556_v63 = vpack.c.bf16 %v596_v56, %v595_v55  ;;  %v605_v5 = vld [vmem:[%s6519_s13 + $0xf1] sm:$0xff]  ;;  %v606_v6 = vld [vmem:[%s6519_s13 + $0xf9] sm:$0xff]  ;;  %v6577_v11 = vpack.c.bf16 %v598_v4, %v597_v3  ;;  %s5050_s23 = scalar_lea.sflag (%p513_p0), [#allocation4], %s6171_s21 }
  0xcb   : >> { %5294 = vmatmul.msk.bf16.vlgmr.msra.gmra.mxu3 %vm316_vm0, %v6533_v47  ;;  %5282 = vmatmul.msk.bf16.vlgmr.msra.gmra.mxu0 %vm316_vm0, %v617_v48  ;;  %v612_v60 = vld [vmem:[%s6519_s13 + $0x141] sm:$0xff]  ;;  %v6558_v0 = vpack.c.bf16 %v604_v58, %v603_v57  ;;  %v613_v7 = vld [vmem:[%s6519_s13 + $0x151] sm:$0xff]  ;;  %v614_v8 = vld [vmem:[%s6519_s13 + $0x159] sm:$0xff]  ;;  %v6579_v12 = vpack.c.bf16 %v606_v6, %v605_v5 }
  0xcc   : >> { %1533 = vmatpush.bf16.msrb.mxu0 %v5788_v50  ;;  %v588_v62 = vld [vmem:[%s6519_s13 + $0x21] sm:$0xff]  ;;  %v6560_v1 = vpack.c.bf16 %v612_v60, %v611_v59  ;;  %v589_v9 = vld [vmem:[%s6519_s13 + $0x31] sm:$0xff]  ;;  %v590_v10 = vld [vmem:[%s6519_s13 + $0x39] sm:$0xff]  ;;  %v6581_v13 = vpack.c.bf16 %v614_v8, %v613_v7  ;;  %s5183_s17 = smul.u32 432, %s7110_s8 }
  0xcd   : >> { %1060 = vmatpush.bf16.msrb.mxu2 %v5783_v51  ;;  %856 = vmatpush.bf16.msrb.mxu1 %v5779_v53  ;;  %v618_v2 = vpack.c.bf16 %v588_v62, %v587_v61  ;;  %v6583_v14 = vpack.c.bf16 %v590_v10, %v589_v9  ;;  %v599_v19 = vld [vmem:[%s6519_s13 + $0xa9] sm:$0xff]  ;;  %v600_v20 = vld [vmem:[%s6519_s13 + $0xb1] sm:$0xff]  ;;  %v530_v31 = vld [vmem:[%s6519_s13] sm:$0xff] }
  0xce   : >> { %1298 = vmatpush.bf16.msrb.mxu3 %v5785_v52  ;;  %v607_v21 = vld [vmem:[%s6519_s13 + $0x109] sm:$0xff]  ;;  %v608_v22 = vld [vmem:[%s6519_s13 + $0x111] sm:$0xff]  ;;  %v6605_v27 = vpack.c.bf16 %v600_v20, %v599_v19  ;;  %v5352_v36 = vld [vmem:[%s6519_s13 + $0x20] sm:$0xff] }
  0xcf   : >> { %v615_v23 = vld [vmem:[%s6519_s13 + $0x169] sm:$0xff]  ;;  %v616_v24 = vld [vmem:[%s6519_s13 + $0x171] sm:$0xff]  ;;  %v6607_v28 = vpack.c.bf16 %v608_v22, %v607_v21  ;;  %v940_v40 = vld [vmem:[%s6519_s13 + $0x1a] sm:$0xff] }
  0xd0   : >> { %1534 = vmatpush.bf16.msrb.mxu0 %v5787_v54  ;;  %v591_v25 = vld [vmem:[%s6519_s13 + $0x49] sm:$0xff]  ;;  %v592_v26 = vld [vmem:[%s6519_s13 + $0x51] sm:$0xff]  ;;  %v6609_v29 = vpack.c.bf16 %v616_v24, %v615_v23  ;;  %v943_v50 = vld [vmem:[%s6519_s13 + $0x3a] sm:$0xff] }
  0xd1   : >> { %2007 = vmatpush.bf16.msra.mxu2 %v5792_v15  ;;  %1769 = vmatpush.bf16.msra.mxu1 %v5790_v17  ;;  %v6611_v30 = vpack.c.bf16 %v592_v26, %v591_v25  ;;  %v531_v32 = vld [vmem:[%s6519_s13 + $0x8] sm:$0xff]  ;;  %v5351_v35 = vld [vmem:[%s6519_s13 + $0x18] sm:$0xff]  ;;  %v5353_v42 = vld [vmem:[%s6519_s13 + $0x30] sm:$0xff] }
  0xd2   : >> { %2243 = vmatpush.bf16.msra.mxu3 %v5794_v16  ;;  %v938_v33 = vld [vmem:[%s6519_s13 + $0x2] sm:$0xff]  ;;  %v939_v34 = vld [vmem:[%s6519_s13 + $0xa] sm:$0xff]  ;;  %v562_v37 = vpack.c.bf16 %v531_v32, %v530_v31  ;;  %v1208_v39 = vpack.c.bf16 %v5352_v36, %v5351_v35  ;;  %v5354_v45 = vld [vmem:[%s6519_s13 + $0x38] sm:$0xff] }
  0xd3   : >> { %v970_v38 = vpack.c.bf16 %v939_v34, %v938_v33  ;;  %v941_v41 = vld [vmem:[%s6519_s13 + $0x22] sm:$0xff]  ;;  %v6637_v48 = vpack.c.bf16 %v5354_v45, %v5353_v42  ;;  %v942_v49 = vld [vmem:[%s6519_s13 + $0x32] sm:$0xff]  ;;  %v944_v55 = vld [vmem:[%s6519_s13 + $0x4a] sm:$0xff] }
  0xd4   : >> { %2479 = vmatpush.bf16.msra.mxu0 %v5796_v18  ;;  %v6635_v46 = vpack.c.bf16 %v941_v41, %v940_v40  ;;  %v5355_v51 = vld [vmem:[%s6519_s13 + $0x48] sm:$0xff]  ;;  %v5356_v52 = vld [vmem:[%s6519_s13 + $0x50] sm:$0xff]  ;;  %v6650_v53 = vpack.c.bf16 %v943_v50, %v942_v49  ;;  %v5357_v57 = vld [vmem:[%s6519_s13 + $0x60] sm:$0xff] }
  0xd5   : >> { %v6652_v54 = vpack.c.bf16 %v5356_v52, %v5355_v51  ;;  %v945_v56 = vld [vmem:[%s6519_s13 + $0x52] sm:$0xff]  ;;  %v5358_v58 = vld [vmem:[%s6519_s13 + $0x68] sm:$0xff]  ;;  %v5360_v3 = vld [vmem:[%s6519_s13 + $0x80] sm:$0xff] }
  0xd6   : >> { %v6666_v59 = vpack.c.bf16 %v945_v56, %v944_v55  ;;  %v6668_v60 = vpack.c.bf16 %v5358_v58, %v5357_v57  ;;  %v946_v61 = vld [vmem:[%s6519_s13 + $0x62] sm:$0xff]  ;;  %v947_v62 = vld [vmem:[%s6519_s13 + $0x6a] sm:$0xff]  ;;  %v948_v15 = vld [vmem:[%s6519_s13 + $0x7a] sm:$0xff] }
  0xd7   : >> { %v6682_v4 = vpack.c.bf16 %v947_v62, %v946_v61  ;;  %v949_v16 = vld [vmem:[%s6519_s13 + $0x82] sm:$0xff]  ;;  %v5361_v17 = vld [vmem:[%s6519_s13 + $0x90] sm:$0xff]  ;;  %v5362_v18 = vld [vmem:[%s6519_s13 + $0x98] sm:$0xff] }
  0xd8   : >> { %5287 = vmatmul.msk.bf16.gmra.mxu1 %vm316_vm0, %v6556_v63  ;;  %v6718_v22 = vpack.c.bf16 %v5362_v18, %v5361_v17  ;;  %v950_v32 = vld [vmem:[%s6519_s13 + $0x92] sm:$0xff]  ;;  %v951_v33 = vld [vmem:[%s6519_s13 + $0x9a] sm:$0xff]  ;;  %v5363_v34 = vld [vmem:[%s6519_s13 + $0xa8] sm:$0xff] }
  0xd9   : >> { %v5364_v35 = vld [vmem:[%s6519_s13 + $0xb0] sm:$0xff]  ;;  %v5791_v41 = vld [vmem:[%s6513_s22 + $0x60] sm:$0xff]  ;;  %v5366_v58 = vld [vmem:[%s6519_s13 + $0xc8] sm:$0xff] }
  0xda   : >> { %5291 = vmatmul.msk.bf16.gmra.mxu2 %vm316_vm0, %v6558_v0  ;;  %v5793_v42 = vld [vmem:[%s6513_s22 + $0x70] sm:$0xff]  ;;  %v5795_v55 = vld [vmem:[%s6513_s22 + $0x80] sm:$0xff] }
  0xdb   : >> { %5295 = vmatmul.msk.bf16.gmra.mxu3 %vm316_vm0, %v6560_v1  ;;  %5283 = vmatmul.msk.bf16.gmra.mxu0 %vm316_vm0, %v618_v2  ;;  %v5789_v52 = vld [vmem:[%s6513_s22 + $0x50] sm:$0xff]  ;;  %s9125_s22 = sld [smem:[#allocation6 + $0x1]] (%p513_p0) }
  0xdc   : >> { %2008 = vmatpush.bf16.msra.mxu2 %v5791_v41  ;;  %2244 = vmatpush.bf16.msra.mxu3 %v5793_v42  ;;  %v952_v56 = vld [vmem:[%s6519_s13 + $0xaa] sm:$0xff]  ;;  %v953_v57 = vld [vmem:[%s6519_s13 + $0xb2] sm:$0xff]  ;;  %v5368_v42 = vld [vmem:[%s6519_s13 + $0xe0] sm:$0xff] }
  0xdd   : >> { %1770 = vmatpush.bf16.msra.mxu1 %v5789_v52  ;;  %2480 = vmatpush.bf16.msra.mxu0 %v5795_v55  ;;  %v5367_v41 = vld [vmem:[%s6519_s13 + $0xd8] sm:$0xff] }
  0xe8   : >> { %5288 = vmatmul.msk.bf16.gmra.mxu1 %vm316_vm0, %v6577_v11 }
  0xea   : >> { %5292 = vmatmul.msk.bf16.gmra.mxu2 %vm316_vm0, %v6579_v12 }
  0xeb   : >> { %5296 = vmatmul.msk.bf16.gmra.mxu3 %vm316_vm0, %v6581_v13  ;;  %5284 = vmatmul.msk.bf16.gmra.mxu0 %vm316_vm0, %v6583_v14 }
  0xf8   : >> { %5289 = vmatmul.msk.bf16.gmra.mxu1 %vm316_vm0, %v6605_v27 }
  0xfa   : >> { %5293 = vmatmul.msk.bf16.gmra.mxu2 %vm316_vm0, %v6607_v28 }
  0xfb   : >> { %5297 = vmatmul.msk.bf16.gmra.mxu3 %vm316_vm0, %v6609_v29  ;;  %5285 = vmatmul.msk.bf16.gmra.mxu0 %vm316_vm0, %v6611_v30 }
 0x108   : >> { %5306 = vmatmul.msk.bf16.vlgmr.msrb.gmra.mxu1 %vm316_vm0, %v562_v37 }
 0x10a   : >> { %5335 = vmatmul.msk.bf16.vlgmr.msrb.gmra.mxu2 %vm316_vm0, %v970_v38  ;;  %v6746_v38 = vpack.c.bf16 %v951_v33, %v950_v32 }
 0x10b   : >> { %5396 = vmatmul.msk.bf16.vlgmr.msrb.gmra.mxu3 %vm316_vm0, %v1208_v39  ;;  %5457 = vmatmul.msk.bf16.vlgmr.msrb.gmra.mxu0 %vm316_vm0, %v618_v2  ;;  %v5359_v2 = vld [vmem:[%s6519_s13 + $0x78] sm:$0xff] }
 0x10c   : >> { %v6686_v6 = vpack.c.bf16 %v5360_v3, %v5359_v2  ;;  %v6782_v2 = vpack.c.bf16 %v953_v57, %v952_v56 }
 0x10e   : >> { %9361 = vst [vmem:[#allocation21_spill] sm:$0xff] %v6782_v2 }
 0x118   : >> { %5307 = vmatmul.msk.bf16.gmra.mxu1 %vm316_vm0, %v1208_v39  ;;  %v6750_v39 = vpack.c.bf16 %v5364_v35, %v5363_v34  ;;  %v954_v34 = vld [vmem:[%s6519_s13 + $0xc2] sm:$0xff]  ;;  %v955_v35 = vld [vmem:[%s6519_s13 + $0xca] sm:$0xff] }
 0x119   : >> { %v6814_v56 = vpack.c.bf16 %v955_v35, %v954_v34 }
 0x11a   : >> { %5336 = vmatmul.msk.bf16.gmra.mxu2 %vm316_vm0, %v6635_v46  ;;  %9358 = vst [vmem:[#allocation18_spill] sm:$0xff] %v6750_v39 }
 0x11b   : >> { %5397 = vmatmul.msk.bf16.gmra.mxu3 %vm316_vm0, %v6637_v48  ;;  %5458 = vmatmul.msk.bf16.gmra.mxu0 %vm316_vm0, %v6583_v14  ;;  %9365 = vst [vmem:[#allocation25_spill] sm:$0xff] %v6814_v56 }
 0x128   : >> { %5308 = vmatmul.msk.bf16.gmra.mxu1 %vm316_vm0, %v6637_v48 }
 0x12a   : >> { %5337 = vmatmul.msk.bf16.gmra.mxu2 %vm316_vm0, %v6650_v53 }
 0x12b   : >> { %5398 = vmatmul.msk.bf16.gmra.mxu3 %vm316_vm0, %v6652_v54  ;;  %5459 = vmatmul.msk.bf16.gmra.mxu0 %vm316_vm0, %v6611_v30 }
 0x138   : >> { %5309 = vmatmul.msk.bf16.gmra.mxu1 %vm316_vm0, %v6652_v54 }
 0x13a   : >> { %5338 = vmatmul.msk.bf16.gmra.mxu2 %vm316_vm0, %v6666_v59 }
 0x13b   : >> { %5399 = vmatmul.msk.bf16.gmra.mxu3 %vm316_vm0, %v6668_v60  ;;  %5460 = vmatmul.msk.bf16.gmra.mxu0 %vm316_vm0, %v6527_v43 }
 0x145   : >> { %v6684_v5 = vpop.f32.mrf.mxu1 }
 0x148   : >> { %v6688_v7 = vpop.f32.mrf.mxu0  ;;  %5310 = vmatmul.msk.bf16.gmra.mxu1 %vm316_vm0, %v6668_v60 }
 0x14a   : >> { %5339 = vmatmul.msk.bf16.gmra.mxu2 %vm316_vm0, %v6682_v4 }
 0x14b   : >> { %5400 = vmatmul.msk.bf16.gmra.mxu3 %vm316_vm0, %v6686_v6  ;;  %5461 = vmatmul.msk.bf16.gmra.mxu0 %vm316_vm0, %v6556_v63  ;;  %v6714_v63 = vpack.c.bf16 %v949_v16, %v948_v15 }
 0x14d   : >> { %v6698_v43 = vpop.f32.mrf.mxu2  ;;  %v6702_v9 = vpop.f32.mrf.mxu1 }
 0x14e   : >> { %v6700_v8 = vpop.f32.mrf.mxu3 }
 0x150   : >> { %v6704_v10 = vpop.f32.mrf.mxu0 }
 0x155   : >> { %v6710_v19 = vpop.f32.mrf.mxu2  ;;  %v6716_v21 = vpop.f32.mrf.mxu1 }
 0x156   : >> { %v6712_v20 = vpop.f32.mrf.mxu3 }
 0x157   : >> { %9355 = vst [vmem:[#allocation15_spill] sm:$0xff] %v6712_v20 }
 0x158   : >> { %v6720_v23 = vpop.f32.mrf.mxu0  ;;  %5311 = vmatmul.msk.bf16.gmra.mxu1 %vm316_vm0, %v6686_v6 }
 0x15a   : >> { %5340 = vmatmul.msk.bf16.gmra.mxu2 %vm316_vm0, %v6714_v63 }
 0x15b   : >> { %5401 = vmatmul.msk.bf16.gmra.mxu3 %vm316_vm0, %v6718_v22  ;;  %5462 = vmatmul.msk.bf16.gmra.mxu0 %vm316_vm0, %v6577_v11 }
 0x15d   : >> { %v6730_v24 = vpop.f32.mrf.mxu2  ;;  %v6734_v26 = vpop.f32.mrf.mxu1 }
 0x15e   : >> { %v6732_v25 = vpop.f32.mrf.mxu3 }
 0x15f   : >> { %9356 = vst [vmem:[#allocation16_spill] sm:$0xff] %v6732_v25 }
 0x160   : >> { %v6736_v31 = vpop.f32.mrf.mxu0 }
 0x165   : >> { %v6742_v36 = vpop.f32.mrf.mxu2  ;;  %v6748_v11 = vpop.f32.mrf.mxu1 }
 0x166   : >> { %v6744_v37 = vpop.f32.mrf.mxu3 }
 0x167   : >> { %9357 = vst [vmem:[#allocation17_spill] sm:$0xff] %v6744_v37 }
 0x168   : >> { %v6752_v40 = vpop.f32.mrf.mxu0  ;;  %5312 = vmatmul.msk.bf16.gmra.mxu1 %vm316_vm0, %v6718_v22 }
 0x16a   : >> { %5341 = vmatmul.msk.bf16.gmra.mxu2 %vm316_vm0, %v6746_v38 }
 0x16b   : >> { %5402 = vmatmul.msk.bf16.gmra.mxu3 %vm316_vm0, %v6750_v39  ;;  %5463 = vmatmul.msk.bf16.gmra.mxu0 %vm316_vm0, %v6605_v27  ;;  %v5365_v27 = vld [vmem:[%s6519_s13 + $0xc0] sm:$0xff] }
 0x16c   : >> { %v6786_v15 = vpack.c.bf16 %v5366_v58, %v5365_v27 }
 0x16d   : >> { %v6764_v45 = vpop.f32.mrf.mxu2  ;;  %v6768_v50 = vpop.f32.mrf.mxu1 }
 0x16e   : >> { %v6766_v49 = vpop.f32.mrf.mxu3  ;;  %9362 = vst [vmem:[#allocation22_spill] sm:$0xff] %v6786_v15 }
 0x16f   : >> { %9359 = vst [vmem:[#allocation19_spill] sm:$0xff] %v6766_v49  ;;  %v957_v49 = vld [vmem:[%s6519_s13 + $0xe2] sm:$0xff] }
 0x170   : >> { %v6770_v51 = vpop.f32.mrf.mxu0 }
 0x175   : >> { %v6778_v61 = vpop.f32.mrf.mxu2  ;;  %v6784_v3 = vpop.f32.mrf.mxu1 }
 0x176   : >> { %v6780_v62 = vpop.f32.mrf.mxu3 }
 0x177   : >> { %9360 = vst [vmem:[#allocation20_spill] sm:$0xff] %v6780_v62  ;;  %v956_v62 = vld [vmem:[%s6519_s13 + $0xda] sm:$0xff] }
 0x178   : >> { %v6788_v16 = vpop.f32.mrf.mxu0  ;;  %5313 = vmatmul.msk.bf16.gmra.mxu1 %vm316_vm0, %v6750_v39  ;;  %v6834_v39 = vpack.c.bf16 %v957_v49, %v956_v62 }
 0x17a   : >> { %5342 = vmatmul.msk.bf16.gmra.mxu2 %vm316_vm0, %v6782_v2 }
 0x17b   : >> { %5403 = vmatmul.msk.bf16.gmra.mxu3 %vm316_vm0, %v6786_v15  ;;  %5464 = vmatmul.msk.bf16.gmra.mxu0 %vm316_vm0, %v6529_v44  ;;  %v6816_v44 = vpack.c.bf16 %v5368_v42, %v5367_v41 }
 0x17d   : >> { %v6798_v17 = vpop.f32.mrf.mxu2  ;;  %v6802_v32 = vpop.f32.mrf.mxu1 }
 0x17e   : >> { %v6800_v18 = vpop.f32.mrf.mxu3 }
 0x17f   : >> { %9363 = vst [vmem:[#allocation23_spill] sm:$0xff] %v6800_v18 }
 0x180   : >> { %v6804_v33 = vpop.f32.mrf.mxu0 }
 0x185   : >> { %v6810_v52 = vpop.f32.mrf.mxu2  ;;  %v858_v57 = vpop.f32.mrf.mxu1 }
 0x186   : >> { %v6812_v55 = vpop.f32.mrf.mxu3  ;;  %v859_v27 = vadd.f32 %v858_v57, %v6688_v7 }
 0x187   : >> { %9364 = vst [vmem:[#allocation24_spill] sm:$0xff] %v6812_v55 }
 0x188   : >> { %v1536_v58 = vpop.f32.mrf.mxu0  ;;  %5314 = vmatmul.msk.bf16.gmra.mxu1 %vm316_vm0, %v6786_v15  ;;  %v5369_v15 = vld [vmem:[%s6519_s13 + $0xf0] sm:$0xff] }
 0x18a   : >> { %5343 = vmatmul.msk.bf16.gmra.mxu2 %vm316_vm0, %v6814_v56  ;;  %v5370_v56 = vld [vmem:[%s6519_s13 + $0xf8] sm:$0xff] }
 0x18b   : >> { %5404 = vmatmul.msk.bf16.gmra.mxu3 %vm316_vm0, %v6816_v44  ;;  %5465 = vmatmul.msk.bf16.gmra.mxu0 %vm316_vm0, %v6558_v0  ;;  %v6836_v20 = vpack.c.bf16 %v5370_v56, %v5369_v15 }
 0x18d   : >> { %v1062_v34 = vpop.f32.mrf.mxu2  ;;  %v860_v42 = vpop.f32.mrf.mxu1 }
 0x18e   : >> { %v1142_v35 = vadd.f32 %v1062_v34, %v859_v27  ;;  %v1300_v41 = vpop.f32.mrf.mxu3  ;;  %v861_v57 = vadd.f32 %v860_v42, %v6704_v10  ;;  %v5372_v42 = vld [vmem:[%s6519_s13 + $0x110] sm:$0xff] }
 0x190   : >> { %v1380_v7 = vadd.f32 %v1300_v41, %v1142_v35  ;;  %v1538_v55 = vpop.f32.mrf.mxu0  ;;  %v958_v35 = vld [vmem:[%s6519_s13 + $0xf2] sm:$0xff]  ;;  %v959_v41 = vld [vmem:[%s6519_s13 + $0xfa] sm:$0xff] }
 0x192   : >> { %v6828_v18 = vadd.f32 %v1536_v58, %v1380_v7 }
 0x195   : >> { %v1064_v37 = vpop.f32.mrf.mxu2  ;;  %v863_v0 = vpop.f32.mrf.mxu1 }
 0x196   : >> { %v1143_v25 = vadd.f32 %v1064_v37, %v861_v57  ;;  %v1302_v2 = vpop.f32.mrf.mxu3  ;;  %v864_v34 = vadd.f32 %v863_v0, %v6720_v23 }
 0x198   : >> { %v1381_v27 = vadd.f32 %v1302_v2, %v1143_v25  ;;  %v1541_v10 = vpop.f32.mrf.mxu0  ;;  %5315 = vmatmul.msk.bf16.gmra.mxu1 %vm316_vm0, %v6816_v44 }
 0x19a   : >> { %5344 = vmatmul.msk.bf16.gmra.mxu2 %vm316_vm0, %v6834_v39  ;;  %v6843_v37 = vadd.f32 %v1538_v55, %v1381_v27  ;;  %v5371_v55 = vld [vmem:[%s6519_s13 + $0x108] sm:$0xff]  ;;  %v6856_v27 = vpack.c.bf16 %v959_v41, %v958_v35 }
 0x19b   : >> { %5405 = vmatmul.msk.bf16.gmra.mxu3 %vm316_vm0, %v6836_v20  ;;  %5466 = vmatmul.msk.bf16.gmra.mxu0 %vm316_vm0, %v6579_v12 }
 0x19c   : >> { %9366 = vst [vmem:[#allocation26_spill] sm:$0xff] %v6843_v37  ;;  %v6858_v37 = vpack.c.bf16 %v5372_v42, %v5371_v55  ;;  %v960_v55 = vld [vmem:[%s6519_s13 + $0x10a] sm:$0xff]  ;;  %v961_v42 = vld [vmem:[%s6519_s13 + $0x112] sm:$0xff] }
 0x19d   : >> { %v1067_v25 = vpop.f32.mrf.mxu2  ;;  %v865_v62 = vpop.f32.mrf.mxu1 }
 0x19e   : >> { %v1144_v23 = vadd.f32 %v1067_v25, %v864_v34  ;;  %v1305_v49 = vpop.f32.mrf.mxu3  ;;  %v866_v15 = vadd.f32 %v865_v62, %v6736_v31 }
 0x1a0   : >> { %v1382_v2 = vadd.f32 %v1305_v49, %v1144_v23  ;;  %v1543_v56 = vpop.f32.mrf.mxu0 }
 0x1a2   : >> { %v6850_v58 = vadd.f32 %v1541_v10, %v1382_v2 }
 0x1a5   : >> { %v1069_v7 = vpop.f32.mrf.mxu2  ;;  %v868_v12 = vpop.f32.mrf.mxu1 }
 0x1a6   : >> { %v1145_v57 = vadd.f32 %v1069_v7, %v866_v15  ;;  %v1307_v0 = vpop.f32.mrf.mxu3  ;;  %v869_v25 = vadd.f32 %v868_v12, %v6752_v40  ;;  %v5374_v7 = vld [vmem:[%s6519_s13 + $0x128] sm:$0xff] }
 0x1a8   : >> { %v1383_v34 = vadd.f32 %v1307_v0, %v1145_v57  ;;  %v1546_v31 = vpop.f32.mrf.mxu0  ;;  %5316 = vmatmul.msk.bf16.gmra.mxu1 %vm316_vm0, %v6836_v20 }
 0x1aa   : >> { %5345 = vmatmul.msk.bf16.gmra.mxu2 %vm316_vm0, %v6856_v27  ;;  %v6865_v10 = vadd.f32 %v1543_v56, %v1383_v34  ;;  %v5373_v56 = vld [vmem:[%s6519_s13 + $0x120] sm:$0xff]  ;;  %v6878_v34 = vpack.c.bf16 %v961_v42, %v960_v55 }
 0x1ab   : >> { %5406 = vmatmul.msk.bf16.gmra.mxu3 %vm316_vm0, %v6858_v37  ;;  %5467 = vmatmul.msk.bf16.gmra.mxu0 %vm316_vm0, %v6607_v28 }
 0x1ac   : >> { %9367 = vst [vmem:[#allocation27_spill] sm:$0xff] %v6865_v10  ;;  %v6880_v10 = vpack.c.bf16 %v5374_v7, %v5373_v56  ;;  %v962_v56 = vld [vmem:[%s6519_s13 + $0x122] sm:$0xff]  ;;  %v963_v7 = vld [vmem:[%s6519_s13 + $0x12a] sm:$0xff] }
 0x1ad   : >> { %v1072_v23 = vpop.f32.mrf.mxu2  ;;  %v870_v62 = vpop.f32.mrf.mxu1 }
 0x1ae   : >> { %v1146_v40 = vadd.f32 %v1072_v23, %v869_v25  ;;  %v1310_v49 = vpop.f32.mrf.mxu3  ;;  %v871_v15 = vadd.f32 %v870_v62, %v6770_v51 }
 0x1b0   : >> { %v1384_v2 = vadd.f32 %v1310_v49, %v1146_v40  ;;  %v1548_v35 = vpop.f32.mrf.mxu0 }
 0x1b2   : >> { %v6872_v41 = vadd.f32 %v1546_v31, %v1384_v2 }
 0x1b5   : >> { %v1074_v57 = vpop.f32.mrf.mxu2  ;;  %v873_v28 = vpop.f32.mrf.mxu1 }
 0x1b6   : >> { %v1147_v0 = vadd.f32 %v1074_v57, %v871_v15  ;;  %v1312_v12 = vpop.f32.mrf.mxu3  ;;  %v874_v23 = vadd.f32 %v873_v28, %v6788_v16  ;;  %v5376_v57 = vld [vmem:[%s6519_s13 + $0x140] sm:$0xff] }
 0x1b8   : >> { %v1385_v25 = vadd.f32 %v1312_v12, %v1147_v0  ;;  %v1551_v51 = vpop.f32.mrf.mxu0  ;;  %5317 = vmatmul.msk.bf16.gmra.mxu1 %vm316_vm0, %v6858_v37 }
 0x1ba   : >> { %5346 = vmatmul.msk.bf16.gmra.mxu2 %vm316_vm0, %v6878_v34  ;;  %v6887_v31 = vadd.f32 %v1548_v35, %v1385_v25  ;;  %v5375_v35 = vld [vmem:[%s6519_s13 + $0x138] sm:$0xff]  ;;  %v6900_v25 = vpack.c.bf16 %v963_v7, %v962_v56 }
 0x1bb   : >> { %5407 = vmatmul.msk.bf16.gmra.mxu3 %vm316_vm0, %v6880_v10  ;;  %5468 = vmatmul.msk.bf16.gmra.mxu0 %vm316_vm0, %v6533_v47 }
 0x1bc   : >> { %9368 = vst [vmem:[#allocation28_spill] sm:$0xff] %v6887_v31  ;;  %v6902_v31 = vpack.c.bf16 %v5376_v57, %v5375_v35  ;;  %v964_v35 = vld [vmem:[%s6519_s13 + $0x13a] sm:$0xff]  ;;  %v965_v57 = vld [vmem:[%s6519_s13 + $0x142] sm:$0xff] }
 0x1bd   : >> { %v1077_v40 = vpop.f32.mrf.mxu2  ;;  %v875_v62 = vpop.f32.mrf.mxu1 }
 0x1be   : >> { %v1148_v16 = vadd.f32 %v1077_v40, %v874_v23  ;;  %v1315_v49 = vpop.f32.mrf.mxu3  ;;  %v876_v15 = vadd.f32 %v875_v62, %v6804_v33 }
 0x1c0   : >> { %v1386_v2 = vadd.f32 %v1315_v49, %v1148_v16  ;;  %v1553_v55 = vpop.f32.mrf.mxu0 }
 0x1c2   : >> { %v6894_v42 = vadd.f32 %v1551_v51, %v1386_v2 }
 0x1c5   : >> { %v1079_v0 = vpop.f32.mrf.mxu2  ;;  %v878_v47 = vpop.f32.mrf.mxu1 }
 0x1c6   : >> { %v1149_v12 = vadd.f32 %v1079_v0, %v876_v15  ;;  %v1317_v28 = vpop.f32.mrf.mxu3  ;;  %v879_v51 = vadd.f32 %v878_v47, %v6684_v5  ;;  %v5377_v0 = vld [vmem:[%s6519_s13 + $0x150] sm:$0xff] }
 0x1c8   : >> { %v1387_v23 = vadd.f32 %v1317_v28, %v1149_v12  ;;  %v1556_v40 = vpop.f32.mrf.mxu0  ;;  %5318 = vmatmul.msk.bf16.gmra.mxu1 %vm316_vm0, %v6880_v10  ;;  %v5378_v12 = vld [vmem:[%s6519_s13 + $0x158] sm:$0xff] }
 0x1c9   : >> { %v6924_v47 = vpack.c.bf16 %v5378_v12, %v5377_v0  ;;  %v967_v0 = vld [vmem:[%s6519_s13 + $0x15a] sm:$0xff]  ;;  %v5379_v12 = vld [vmem:[%s6519_s13 + $0x168] sm:$0xff] }
 0x1ca   : >> { %5347 = vmatmul.msk.bf16.gmra.mxu2 %vm316_vm0, %v6900_v25  ;;  %v6908_v33 = vadd.f32 %v1553_v55, %v1387_v23 }
 0x1cb   : >> { %5408 = vmatmul.msk.bf16.gmra.mxu3 %vm316_vm0, %v6902_v31  ;;  %5469 = vmatmul.msk.bf16.gmra.mxu0 %vm316_vm0, %v6560_v1  ;;  %v6922_v1 = vpack.c.bf16 %v965_v57, %v964_v35 }
 0x1cc   : >> { %9369 = vst [vmem:[#allocation29_spill] sm:$0xff] %v6908_v33 }
 0x1cd   : >> { %v1082_v16 = vpop.f32.mrf.mxu2  ;;  %v880_v2 = vpop.f32.mrf.mxu1 }
 0x1ce   : >> { %v1150_v49 = vadd.f32 %v1082_v16, %v879_v51  ;;  %v1320_v62 = vpop.f32.mrf.mxu3  ;;  %v881_v55 = vadd.f32 %v880_v2, %v6702_v9 }
 0x1d0   : >> { %v1388_v15 = vadd.f32 %v1320_v62, %v1150_v49  ;;  %v1558_v56 = vpop.f32.mrf.mxu0 }
 0x1d2   : >> { %v6915_v7 = vadd.f32 %v1556_v40, %v1388_v15 }
 0x1d5   : >> { %v1084_v28 = vpop.f32.mrf.mxu2  ;;  %v883_v5 = vpop.f32.mrf.mxu1 }
 0x1d6   : >> { %v1151_v23 = vadd.f32 %v1084_v28, %v881_v55  ;;  %v1322_v33 = vpop.f32.mrf.mxu3  ;;  %v884_v40 = vadd.f32 %v883_v5, %v6716_v21  ;;  %v966_v55 = vld [vmem:[%s6519_s13 + $0x152] sm:$0xff] }
 0x1d7   : >> { %v5380_v28 = vld [vmem:[%s6519_s13 + $0x170] sm:$0xff] }
 0x1d8   : >> { %v1389_v51 = vadd.f32 %v1322_v33, %v1151_v23  ;;  %v1561_v16 = vpop.f32.mrf.mxu0  ;;  %5319 = vmatmul.msk.bf16.gmra.mxu1 %vm316_vm0, %v6902_v31  ;;  %v6946_v5 = vpack.c.bf16 %v5380_v28, %v5379_v12  ;;  %v5381_v12 = vld [vmem:[%s6519_s13 + $0x180] sm:$0xff] }
 0x1da   : >> { %5348 = vmatmul.msk.bf16.gmra.mxu2 %vm316_vm0, %v6922_v1  ;;  %v6930_v9 = vadd.f32 %v1558_v56, %v1389_v51 }
 0x1db   : >> { %5409 = vmatmul.msk.bf16.gmra.mxu3 %vm316_vm0, %v6924_v47  ;;  %5470 = vmatmul.msk.bf16.gmra.mxu0 %vm316_vm0, %v6581_v13  ;;  %v6944_v13 = vpack.c.bf16 %v967_v0, %v966_v55 }
 0x1dc   : >> { %9370 = vst [vmem:[#allocation30_spill] sm:$0xff] %v6930_v9 }
 0x1dd   : >> { %v1087_v33 = vpop.f32.mrf.mxu2  ;;  %v885_v2 = vpop.f32.mrf.mxu1 }
 0x1de   : >> { %v1152_v49 = vadd.f32 %v1087_v33, %v884_v40  ;;  %v1325_v62 = vpop.f32.mrf.mxu3  ;;  %v886_v56 = vadd.f32 %v885_v2, %v6734_v26 }
 0x1e0   : >> { %v1390_v15 = vadd.f32 %v1325_v62, %v1152_v49  ;;  %v1563_v35 = vpop.f32.mrf.mxu0 }
 0x1e2   : >> { %v6937_v57 = vadd.f32 %v1561_v16, %v1390_v15 }
 0x1e4   : >> { %9371 = vst [vmem:[#allocation31_spill] sm:$0xff] %v6937_v57 }
 0x1e5   : >> { %v1089_v23 = vpop.f32.mrf.mxu2  ;;  %v888_v21 = vpop.f32.mrf.mxu1 }
 0x1e6   : >> { %v1153_v51 = vadd.f32 %v1089_v23, %v886_v56  ;;  %v1327_v9 = vpop.f32.mrf.mxu3  ;;  %v889_v16 = vadd.f32 %v888_v21, %v6748_v11  ;;  %v969_v56 = vld [vmem:[%s6519_s13 + $0x172] sm:$0xff]  ;;  %v5382_v23 = vld [vmem:[%s6519_s13 + $0x188] sm:$0xff] }
 0x1e8   : >> { %v1391_v40 = vadd.f32 %v1327_v9, %v1153_v51  ;;  %v1566_v33 = vpop.f32.mrf.mxu0  ;;  %5320 = vmatmul.msk.bf16.gmra.mxu1 %vm316_vm0, %v6924_v47  ;;  %v5442_v51 = vld [vmem:[%s6519_s13 + $0x181] sm:$0xff] }
 0x1ea   : >> { %5349 = vmatmul.msk.bf16.gmra.mxu2 %vm316_vm0, %v6944_v13  ;;  %v6952_v26 = vadd.f32 %v1563_v35, %v1391_v40  ;;  %v968_v35 = vld [vmem:[%s6519_s13 + $0x16a] sm:$0xff] }
 0x1eb   : >> { %5410 = vmatmul.msk.bf16.gmra.mxu3 %vm316_vm0, %v6946_v5  ;;  %5471 = vmatmul.msk.bf16.gmra.mxu0 %vm316_vm0, %v6609_v29  ;;  %v5443_v40 = vld [vmem:[%s6519_s13 + $0x189] sm:$0xff]  ;;  %v6968_v11 = vpack.c.bf16 %v969_v56, %v968_v35 }
 0x1ec   : >> { %9372 = vst [vmem:[#allocation32_spill] sm:$0xff] %v6952_v26 }
 0x1ed   : >> { %v1092_v9 = vpop.f32.mrf.mxu2  ;;  %v890_v2 = vpop.f32.mrf.mxu1 }
 0x1ee   : >> { %v1154_v49 = vadd.f32 %v1092_v9, %v889_v16  ;;  %v1330_v62 = vpop.f32.mrf.mxu3  ;;  %v891_v28 = vadd.f32 %v890_v2, %v6768_v50  ;;  %v6970_v16 = vpack.c.bf16 %v5382_v23, %v5381_v12  ;;  %v6972_v9 = vpack.c.bf16 %v5443_v40, %v5442_v51 }
 0x1f0   : >> { %v1392_v15 = vadd.f32 %v1330_v62, %v1154_v49  ;;  %v1568_v55 = vpop.f32.mrf.mxu0 }
 0x1f2   : >> { %v6959_v0 = vadd.f32 %v1566_v33, %v1392_v15 }
 0x1f5   : >> { %v1094_v26 = vpop.f32.mrf.mxu2  ;;  %v893_v21 = vpop.f32.mrf.mxu1 }
 0x1f6   : >> { %v1155_v29 = vadd.f32 %v1094_v26, %v891_v28  ;;  %v1332_v57 = vpop.f32.mrf.mxu3  ;;  %v894_v26 = vadd.f32 %v893_v21, %v6784_v3 }
 0x1f8   : >> { %v1393_v33 = vadd.f32 %v1332_v57, %v1155_v29  ;;  %v1571_v49 = vpop.f32.mrf.mxu0  ;;  %5321 = vmatmul.msk.bf16.gmra.mxu1 %vm316_vm0, %v6946_v5 }
 0x1fa   : >> { %5350 = vmatmul.msk.bf16.gmra.mxu2 %vm316_vm0, %v6968_v11  ;;  %v6978_v50 = vadd.f32 %v1568_v55, %v1393_v33 }
 0x1fb   : >> { %5411 = vmatmul.msk.bf16.gmra.mxu3 %vm316_vm0, %v6970_v16  ;;  %5472 = vmatmul.msk.bf16.gmra.mxu0 %vm316_vm0, %v6972_v9 }
 0x1fd   : >> { %v1097_v62 = vpop.f32.mrf.mxu2  ;;  %v895_v15 = vpop.f32.mrf.mxu1 }
 0x1fe   : >> { %v1156_v2 = vadd.f32 %v1097_v62, %v894_v26  ;;  %v1335_v57 = vpop.f32.mrf.mxu3  ;;  %v896_v28 = vadd.f32 %v895_v15, %v6802_v32 }
 0x200   : >> { %v1394_v35 = vadd.f32 %v1335_v57, %v1156_v2  ;;  %v1573_v56 = vpop.f32.mrf.mxu0 }
 0x202   : >> { %v6985_v12 = vadd.f32 %v1571_v49, %v1394_v35 }
 0x205   : >> { %v1099_v55 = vpop.f32.mrf.mxu2  ;;  %v898_v40 = vpop.f32.mrf.mxu1 }
 0x206   : >> { %v1157_v23 = vadd.f32 %v1099_v55, %v896_v28  ;;  %v1337_v51 = vpop.f32.mrf.mxu3  ;;  %v899_v32 = vadd.f32 %v898_v40, %v6698_v43 }
 0x208   : >> { %v1395_v29 = vadd.f32 %v1337_v51, %v1157_v23  ;;  %v1576_v33 = vpop.f32.mrf.mxu0  ;;  %5518 = vmatmul.msk.bf16.vlgmr.msra.gmra.mxu1 %vm316_vm0, %v6635_v46 }
 0x20a   : >> { %5579 = vmatmul.msk.bf16.vlgmr.msra.gmra.mxu2 %vm316_vm0, %v6637_v48  ;;  %v6992_v3 = vadd.f32 %v1573_v56, %v1395_v29 }
 0x20b   : >> { %5640 = vmatmul.msk.bf16.vlgmr.msra.gmra.mxu3 %vm316_vm0, %v6583_v14  ;;  %5701 = vmatmul.msk.bf16.vlgmr.msra.gmra.mxu0 %vm316_vm0, %v6650_v53 }
 0x20d   : >> { %v1102_v21 = vpop.f32.mrf.mxu2  ;;  %v900_v62 = vpop.f32.mrf.mxu1 }
 0x20e   : >> { %v1158_v49 = vadd.f32 %v1102_v21, %v899_v32  ;;  %v1340_v26 = vpop.f32.mrf.mxu3  ;;  %v901_v48 = vadd.f32 %v900_v62, %v6710_v19  ;;  %v5599_v21 = vld [vmem:[%s6519_s13 + $0x61] sm:$0xff] }
 0x210   : >> { %v1396_v2 = vadd.f32 %v1340_v26, %v1158_v49  ;;  %v1578_v57 = vpop.f32.mrf.mxu0  ;;  %v5600_v49 = vld [vmem:[%s6519_s13 + $0x69] sm:$0xff] }
 0x212   : >> { %v6999_v46 = vadd.f32 %v1576_v33, %v1396_v2 }
 0x215   : >> { %v1104_v15 = vpop.f32.mrf.mxu2  ;;  %v903_v28 = vpop.f32.mrf.mxu1 }
 0x216   : >> { %v1159_v35 = vadd.f32 %v1104_v15, %v901_v48  ;;  %v1342_v56 = vpop.f32.mrf.mxu3  ;;  %v904_v19 = vadd.f32 %v903_v28, %v6730_v24 }
 0x218   : >> { %v1397_v14 = vadd.f32 %v1342_v56, %v1159_v35  ;;  %v1581_v55 = vpop.f32.mrf.mxu0  ;;  %5519 = vmatmul.msk.bf16.gmra.mxu1 %vm316_vm0, %v6650_v53 }
 0x21a   : >> { %5580 = vmatmul.msk.bf16.gmra.mxu2 %vm316_vm0, %v6652_v54  ;;  %v7006_v43 = vadd.f32 %v1578_v57, %v1397_v14  ;;  %v2156_v57 = vpack.c.bf16 %v5600_v49, %v5599_v21 }
 0x21b   : >> { %5641 = vmatmul.msk.bf16.gmra.mxu3 %vm316_vm0, %v6611_v30  ;;  %5702 = vmatmul.msk.bf16.gmra.mxu0 %vm316_vm0, %v6666_v59 }
 0x21d   : >> { %v1107_v23 = vpop.f32.mrf.mxu2  ;;  %v905_v29 = vpop.f32.mrf.mxu1 }
 0x21e   : >> { %v1160_v51 = vadd.f32 %v1107_v23, %v904_v19  ;;  %v1345_v40 = vpop.f32.mrf.mxu3  ;;  %v906_v54 = vadd.f32 %v905_v29, %v6742_v36 }
 0x220   : >> { %v1398_v33 = vadd.f32 %v1345_v40, %v1160_v51  ;;  %v1583_v32 = vpop.f32.mrf.mxu0  ;;  %v5602_v51 = vld [vmem:[%s6519_s13 + $0x81] sm:$0xff] }
 0x222   : >> { %v7013_v53 = vadd.f32 %v1581_v55, %v1398_v33 }
 0x225   : >> { %v1109_v26 = vpop.f32.mrf.mxu2  ;;  %v908_v2 = vpop.f32.mrf.mxu1 }
 0x226   : >> { %v1161_v62 = vadd.f32 %v1109_v26, %v906_v54  ;;  %v1347_v30 = vpop.f32.mrf.mxu3  ;;  %v909_v36 = vadd.f32 %v908_v2, %v6764_v45 }
 0x228   : >> { %v1399_v48 = vadd.f32 %v1347_v30, %v1161_v62  ;;  %v1586_v24 = vpop.f32.mrf.mxu0  ;;  %5520 = vmatmul.msk.bf16.gmra.mxu1 %vm316_vm0, %v6666_v59 }
 0x22a   : >> { %5581 = vmatmul.msk.bf16.gmra.mxu2 %vm316_vm0, %v6668_v60  ;;  %v7022_v15 = vadd.f32 %v1583_v32, %v1399_v48  ;;  %v5601_v60 = vld [vmem:[%s6519_s13 + $0x79] sm:$0xff] }
 0x22b   : >> { %5642 = vmatmul.msk.bf16.gmra.mxu3 %vm316_vm0, %v2156_v57  ;;  %5703 = vmatmul.msk.bf16.gmra.mxu0 %vm316_vm0, %v6682_v4  ;;  %v2157_v54 = vpack.c.bf16 %v5602_v51, %v5601_v60 }
 0x22d   : >> { %v1112_v35 = vpop.f32.mrf.mxu2  ;;  %v910_v14 = vpop.f32.mrf.mxu1 }
 0x22e   : >> { %v1162_v56 = vadd.f32 %v1112_v35, %v909_v36  ;;  %v1350_v28 = vpop.f32.mrf.mxu3  ;;  %v911_v59 = vadd.f32 %v910_v14, %v6778_v61  ;;  %v5604_v36 = vld [vmem:[%s6519_s13 + $0x99] sm:$0xff] }
 0x230   : >> { %v1400_v55 = vadd.f32 %v1350_v28, %v1162_v56  ;;  %v1588_v19 = vpop.f32.mrf.mxu0 }
 0x232   : >> { %v7028_v23 = vadd.f32 %v1586_v24, %v1400_v55 }
 0x235   : >> { %v1114_v40 = vpop.f32.mrf.mxu2  ;;  %v913_v32 = vpop.f32.mrf.mxu1 }
 0x236   : >> { %v1163_v29 = vadd.f32 %v1114_v40, %v911_v59  ;;  %v1352_v33 = vpop.f32.mrf.mxu3  ;;  %v914_v61 = vadd.f32 %v913_v32, %v6798_v17 }
 0x238   : >> { %v1401_v21 = vadd.f32 %v1352_v33, %v1163_v29  ;;  %v1591_v45 = vpop.f32.mrf.mxu0  ;;  %5521 = vmatmul.msk.bf16.gmra.mxu1 %vm316_vm0, %v6682_v4 }
 0x23a   : >> { %5582 = vmatmul.msk.bf16.gmra.mxu2 %vm316_vm0, %v6686_v6  ;;  %v7037_v49 = vadd.f32 %v1588_v19, %v1401_v21  ;;  %v5603_v6 = vld [vmem:[%s6519_s13 + $0x91] sm:$0xff] }
 0x23b   : >> { %5643 = vmatmul.msk.bf16.gmra.mxu3 %vm316_vm0, %v2157_v54  ;;  %5704 = vmatmul.msk.bf16.gmra.mxu0 %vm316_vm0, %v6714_v63  ;;  %v2158_v55 = vpack.c.bf16 %v5604_v36, %v5603_v6  ;;  %v9376_v6 = vld [vmem:[#allocation21_spill] sm:$0xff]  ;;  %v9377_v36 = vld [vmem:[#allocation16_spill] sm:$0xff] }
 0x23d   : >> { %v1117_v26 = vpop.f32.mrf.mxu2  ;;  %v915_v2 = vpop.f32.mrf.mxu1 }
 0x23e   : >> { %v1164_v62 = vadd.f32 %v1117_v26, %v914_v61  ;;  %v1355_v30 = vpop.f32.mrf.mxu3  ;;  %v916_v4 = vadd.f32 %v915_v2, %v6810_v52 }
 0x240   : >> { %v1402_v57 = vadd.f32 %v1355_v30, %v1164_v62  ;;  %v1593_v48 = vpop.f32.mrf.mxu0 }
 0x242   : >> { %v7043_v24 = vadd.f32 %v1591_v45, %v1402_v57  ;;  %v5606_v45 = vld [vmem:[%s6519_s13 + $0xb1] sm:$0xff] }
 0x245   : >> { %v1119_v35 = vpop.f32.mrf.mxu2  ;;  %v918_v14 = vpop.f32.mrf.mxu1 }
 0x246   : >> { %v1165_v56 = vadd.f32 %v1119_v35, %v916_v4  ;;  %v1357_v28 = vpop.f32.mrf.mxu3  ;;  %v919_v52 = vadd.f32 %v918_v14, %v6700_v8 }
 0x248   : >> { %v1403_v19 = vadd.f32 %v1357_v28, %v1165_v56  ;;  %v1596_v17 = vpop.f32.mrf.mxu0  ;;  %5522 = vmatmul.msk.bf16.gmra.mxu1 %vm316_vm0, %v6714_v63  ;;  %v9373_v63 = vld [vmem:[#allocation15_spill] sm:$0xff] }
 0x24a   : >> { %5583 = vmatmul.msk.bf16.gmra.mxu2 %vm316_vm0, %v6718_v22  ;;  %v7052_v59 = vadd.f32 %v1593_v48, %v1403_v19  ;;  %v5605_v22 = vld [vmem:[%s6519_s13 + $0xa9] sm:$0xff] }
 0x24b   : >> { %5644 = vmatmul.msk.bf16.gmra.mxu3 %vm316_vm0, %v2158_v55  ;;  %5705 = vmatmul.msk.bf16.gmra.mxu0 %vm316_vm0, %v6746_v38  ;;  %v2159_v2 = vpack.c.bf16 %v5606_v45, %v5605_v22  ;;  %v9374_v48 = vld [vmem:[#allocation18_spill] sm:$0xff] }
 0x24d   : >> { %v1122_v60 = vpop.f32.mrf.mxu2  ;;  %v920_v29 = vpop.f32.mrf.mxu1 }
 0x24e   : >> { %v1166_v51 = vadd.f32 %v1122_v60, %v919_v52  ;;  %v1360_v40 = vpop.f32.mrf.mxu3  ;;  %v921_v21 = vadd.f32 %v920_v29, %v9373_v63 }
 0x250   : >> { %v1404_v33 = vadd.f32 %v1360_v40, %v1166_v51  ;;  %v1598_v32 = vpop.f32.mrf.mxu0  ;;  %v5607_v51 = vld [vmem:[%s6519_s13 + $0xc1] sm:$0xff]  ;;  %v5608_v40 = vld [vmem:[%s6519_s13 + $0xc9] sm:$0xff] }
 0x252   : >> { %v7058_v54 = vadd.f32 %v1596_v17, %v1404_v33 }
 0x255   : >> { %v1124_v61 = vpop.f32.mrf.mxu2  ;;  %v923_v30 = vpop.f32.mrf.mxu1 }
 0x256   : >> { %v1167_v26 = vadd.f32 %v1124_v61, %v921_v21  ;;  %v1362_v62 = vpop.f32.mrf.mxu3  ;;  %v924_v35 = vadd.f32 %v923_v30, %v9377_v36  ;;  %v2160_v21 = vpack.c.bf16 %v5608_v40, %v5607_v51  ;;  %v9380_v61 = vld [vmem:[#allocation22_spill] sm:$0xff]  ;;  %v9383_v30 = vld [vmem:[#allocation19_spill] sm:$0xff] }
 0x258   : >> { %v1405_v57 = vadd.f32 %v1362_v62, %v1167_v26  ;;  %v1601_v8 = vpop.f32.mrf.mxu0  ;;  %5523 = vmatmul.msk.bf16.gmra.mxu1 %vm316_vm0, %v6746_v38  ;;  %v9379_v38 = vld [vmem:[#allocation17_spill] sm:$0xff] }
 0x259   : >> { %v9382_v62 = vld [vmem:[#allocation25_spill] sm:$0xff] }
 0x25a   : >> { %5584 = vmatmul.msk.bf16.gmra.mxu2 %vm316_vm0, %v9374_v48  ;;  %v7067_v4 = vadd.f32 %v1598_v32, %v1405_v57 }
 0x25b   : >> { %5645 = vmatmul.msk.bf16.gmra.mxu3 %vm316_vm0, %v2159_v2  ;;  %5706 = vmatmul.msk.bf16.gmra.mxu0 %vm316_vm0, %v9376_v6 }
 0x25c   : >> { %9375 = vst [vmem:[#allocation15_spill] sm:$0xff] %v7067_v4 }
 0x25d   : >> { %v1127_v56 = vpop.f32.mrf.mxu2  ;;  %v925_v55 = vpop.f32.mrf.mxu1 }
 0x25e   : >> { %v1168_v28 = vadd.f32 %v1127_v56, %v924_v35  ;;  %v1365_v14 = vpop.f32.mrf.mxu3  ;;  %v926_v60 = vadd.f32 %v925_v55, %v9379_v38  ;;  %v5609_v55 = vld [vmem:[%s6519_s13 + $0xd9] sm:$0xff] }
 0x260   : >> { %v1406_v19 = vadd.f32 %v1365_v14, %v1168_v28  ;;  %v1603_v17 = vpop.f32.mrf.mxu0 }
 0x262   : >> { %v7073_v52 = vadd.f32 %v1601_v8, %v1406_v19  ;;  %v5610_v19 = vld [vmem:[%s6519_s13 + $0xe1] sm:$0xff] }
 0x263   : >> { %v2161_v40 = vpack.c.bf16 %v5610_v19, %v5609_v55 }
 0x264   : >> { %9378 = vst [vmem:[#allocation18_spill] sm:$0xff] %v7073_v52 }
 0x265   : >> { %v1129_v29 = vpop.f32.mrf.mxu2  ;;  %v928_v63 = vpop.f32.mrf.mxu1 }
 0x266   : >> { %v1169_v33 = vadd.f32 %v1129_v29, %v926_v60  ;;  %v1367_v32 = vpop.f32.mrf.mxu3  ;;  %v929_v2 = vadd.f32 %v928_v63, %v9383_v30  ;;  %v9387_v63 = vld [vmem:[#allocation23_spill] sm:$0xff] }
 0x268   : >> { %v1407_v22 = vadd.f32 %v1367_v32, %v1169_v33  ;;  %v1606_v45 = vpop.f32.mrf.mxu0  ;;  %5524 = vmatmul.msk.bf16.gmra.mxu1 %vm316_vm0, %v9376_v6  ;;  %v9385_v6 = vld [vmem:[#allocation20_spill] sm:$0xff] }
 0x26a   : >> { %5585 = vmatmul.msk.bf16.gmra.mxu2 %vm316_vm0, %v9380_v61  ;;  %v7082_v26 = vadd.f32 %v1603_v17, %v1407_v22 }
 0x26b   : >> { %5646 = vmatmul.msk.bf16.gmra.mxu3 %vm316_vm0, %v2160_v21  ;;  %5707 = vmatmul.msk.bf16.gmra.mxu0 %vm316_vm0, %v9382_v62 }
 0x26c   : >> { %9381 = vst [vmem:[#allocation21_spill] sm:$0xff] %v7082_v26 }
 0x26d   : >> { %v1132_v57 = vpop.f32.mrf.mxu2  ;;  %v930_v36 = vpop.f32.mrf.mxu1 }
 0x26e   : >> { %v1170_v8 = vadd.f32 %v1132_v57, %v929_v2  ;;  %v1370_v48 = vpop.f32.mrf.mxu3  ;;  %v931_v14 = vadd.f32 %v930_v36, %v9385_v6  ;;  %v9389_v57 = vld [vmem:[#allocation24_spill] sm:$0xff] }
 0x26f   : >> { %v5612_v36 = vld [vmem:[%s6519_s13 + $0xf9] sm:$0xff] }
 0x270   : >> { %v1408_v35 = vadd.f32 %v1370_v48, %v1170_v8  ;;  %v1608_v56 = vpop.f32.mrf.mxu0  ;;  %v5611_v48 = vld [vmem:[%s6519_s13 + $0xf1] sm:$0xff] }
 0x271   : >> { %v2162_v55 = vpack.c.bf16 %v5612_v36, %v5611_v48  ;;  %v7150_v48 = vld [vmem:[%s6519_s13 + $0x171] sm:$0xff]  ;;  %v7153_v36 = vld [vmem:[%s6519_s13 + $0x182] sm:$0xff] }
 0x272   : >> { %v7088_v28 = vadd.f32 %v1606_v45, %v1408_v35 }
 0x274   : >> { %9384 = vst [vmem:[#allocation16_spill] sm:$0xff] %v7088_v28 }
 0x275   : >> { %v1134_v17 = vpop.f32.mrf.mxu2  ;;  %v933_v51 = vpop.f32.mrf.mxu1 }
 0x276   : >> { %v1171_v38 = vadd.f32 %v1134_v17, %v931_v14  ;;  %v1372_v60 = vpop.f32.mrf.mxu3  ;;  %v934_v21 = vadd.f32 %v933_v51, %v9387_v63 }
 0x278   : >> { %v1409_v29 = vadd.f32 %v1372_v60, %v1171_v38  ;;  %v1611_v33 = vpop.f32.mrf.mxu0  ;;  %5525 = vmatmul.msk.bf16.gmra.mxu1 %vm316_vm0, %v9382_v62 }
 0x27a   : >> { %5586 = vmatmul.msk.bf16.gmra.mxu2 %vm316_vm0, %v6816_v44  ;;  %v7097_v32 = vadd.f32 %v1608_v56, %v1409_v29  ;;  %v7127_v29 = vld [vmem:[%s526_s20] ss:$0 sm:$0xff]  ;;  %s7178_s20 = scalar_lea.vmem [#allocation2], %s5183_s17  ;;  %s5968_s17 = scalar_lea.hbm (%p513_p0), %s9339_s6, 32 }
 0x27b   : >> { %5647 = vmatmul.msk.bf16.gmra.mxu3 %vm316_vm0, %v2161_v40  ;;  %5708 = vmatmul.msk.bf16.gmra.mxu0 %vm316_vm0, %v6834_v39 }
 0x27c   : >> { %9386 = vst [vmem:[#allocation17_spill] sm:$0xff] %v7097_v32 }
 0x27d   : >> { %v1137_v22 = vpop.f32.mrf.mxu2  ;;  %v935_v62 = vpop.f32.mrf.mxu1 }
 0x27e   : >> { %v1172_v45 = vadd.f32 %v1137_v22, %v934_v21  ;;  %v1375_v61 = vpop.f32.mrf.mxu3  ;;  %v936_v8 = vadd.f32 %v935_v62, %v9389_v57  ;;  %v5613_v21 = vld [vmem:[%s6519_s13 + $0x109] sm:$0xff]  ;;  %v5614_v22 = vld [vmem:[%s6519_s13 + $0x111] sm:$0xff]  ;;  %v7135_v62 = vld [vmem:[%s6519_s13 + $0x139] sm:$0xff] }
 0x27f   : >> { %v7144_v57 = vld [vmem:[%s6519_s13 + $0x159] sm:$0xff] }
 0x280   : >> { %v1410_v30 = vadd.f32 %v1375_v61, %v1172_v45  ;;  %v1613_v2 = vpop.f32.mrf.mxu0  ;;  %v5615_v45 = vld [vmem:[%s6519_s13 + $0x121] sm:$0xff]  ;;  %v5616_v61 = vld [vmem:[%s6519_s13 + $0x129] sm:$0xff] }
 0x282   : >> { %v7104_v44 = vadd.f32 %v1611_v33, %v1410_v30  ;;  %v7138_v30 = vld [vmem:[%s6519_s13 + $0x141] sm:$0xff] }
 0x284   : >> { %9388 = vst [vmem:[#allocation22_spill] sm:$0xff] %v7104_v44 }
 0x285   : >> { %v1139_v35 = vpop.f32.mrf.mxu2  ;;  %v1772_v14 = vpop.f32.mrf.mxu1 }
 0x286   : >> { %v1173_v56 = vadd.f32 %v1139_v35, %v936_v8  ;;  %v1377_v6 = vpop.f32.mrf.mxu3  ;;  %v1852_v60 = vadd.f32 %v1772_v14, %v6828_v18  ;;  %v7147_v8 = vld [vmem:[%s6519_s13 + $0x169] sm:$0xff] }
 0x287   : >> { %v7156_v35 = vld [vmem:[%s6519_s13 + $0x18a] sm:$0xff] }
 0x288   : >> { %v1411_v19 = vadd.f32 %v1377_v6, %v1173_v56  ;;  %v2482_v17 = vpop.f32.mrf.mxu0  ;;  %5526 = vmatmul.msk.bf16.gmra.mxu1 %vm316_vm0, %v6834_v39  ;;  %v9391_v6 = vld [vmem:[#allocation26_spill] sm:$0xff] }
 0x28a   : >> { %5587 = vmatmul.msk.bf16.gmra.mxu2 %vm316_vm0, %v6836_v20  ;;  %v7116_v38 = vadd.f32 %v1613_v2, %v1411_v19  ;;  %v7141_v2 = vld [vmem:[%s6519_s13 + $0x151] sm:$0xff]  ;;  %v7164_v19 = vld [vmem:[%s6519_s13 + $0x1a0] sm:$0xff] }
 0x28b   : >> { %5648 = vmatmul.msk.bf16.gmra.mxu3 %vm316_vm0, %v2162_v55  ;;  %5709 = vmatmul.msk.bf16.gmra.mxu0 %vm316_vm0, %v6856_v27  ;;  %v7161_v55 = vld [vmem:[%s6519_s13 + $0x198] sm:$0xff] }
 0x28c   : >> { %9390 = vst [vmem:[#allocation25_spill] sm:$0xff] %v7116_v38 }
 0x28d   : >> { %v2010_v51 = vpop.f32.mrf.mxu2  ;;  %v1774_v20 = vpop.f32.mrf.mxu1 }
 0x28e   : >> { %v2090_v39 = vadd.f32 %v2010_v51, %v1852_v60  ;;  %v2246_v40 = vpop.f32.mrf.mxu3  ;;  %v1853_v14 = vadd.f32 %v1774_v20, %v9391_v6  ;;  %v7170_v51 = vld [vmem:[%s6519_s13 + $0x1a1] sm:$0xff] }
 0x290   : >> { %v2326_v33 = vadd.f32 %v2246_v40, %v2090_v39  ;;  %v2484_v63 = vpop.f32.mrf.mxu0  ;;  %v7173_v39 = vld [vmem:[%s6519_s13 + $0x19a] sm:$0xff]  ;;  %v7176_v40 = vld [vmem:[%s6519_s13 + $0x1a2] sm:$0xff] }
 0x292   : >> { %v2562_v18 = vadd.f32 %v2482_v17, %v2326_v33  ;;  %v7167_v17 = vld [vmem:[%s6519_s13 + $0x199] sm:$0xff]  ;;  %s5066_s13 = scalar_lea.hbm (%p513_p0), %s9339_s6, %s9352_s9 }
 0x293   : > { %s5069_s19 = sshll.u32 (%p513_p0), %s5066_s13, 4  ;;  %s9172_s19 = int_to_ptr.hbm [resolvable:$true] %s5069_s19 }
 0x294   : >> { %v2597_v56 = vadd.f32 %v7127_v29, %v2562_v18  ;;  %v2163_v18 = vpack.c.bf16 %v5614_v22, %v5613_v21  ;;  %s5962_s29 = sshra.s32 (%p513_p0), %s9172_s19, 4  ;;  %s5963_s29 = int_to_ptr.hbm [resolvable:$true] %s5962_s29 }
 0x295   : >> { %v2012_v60 = vpop.f32.mrf.mxu2  ;;  %v1777_v32 = vpop.f32.mrf.mxu1  ;;  %s5964_s8 = scalar_lea.hbm (%p513_p0), %s5963_s29, 16  ;;  %p5969_p4 = scmp.lt.s32.totalorder (%p513_p0), %s5963_s29, %s9339_s6 }
 0x296   : >> { %v2629_v33 = vmax.f32 %v2597_v56, 0.0  ;;  %v2091_v38 = vadd.f32 %v2012_v60, %v1853_v14  ;;  %v2248_v44 = vpop.f32.mrf.mxu3  ;;  %p5965_p1 = scmp.ne.s32.totalorder (%p513_p0), %s5963_s29, %s5964_s8  ;;  %p5970_p7 = scmp.lt.s32.totalorder (%p513_p0), %s5968_s17, %s5964_s8 }
 0x298   : >> { %v2327_v28 = vadd.f32 %v2248_v44, %v2091_v38  ;;  %v2487_v20 = vpop.f32.mrf.mxu0  ;;  %5717 = vst.msk [vmem:[%s7178_s20 + $0x19] sm:$0xff] %vm316_vm0, %v2629_v33  ;;  %5527 = vmatmul.msk.bf16.gmra.mxu1 %vm316_vm0, %v6856_v27  ;;  %v1854_v38 = vadd.f32 %v1777_v32, %v6850_v58  ;;  %v9392_v33 = vld [vmem:[#allocation27_spill] sm:$0xff]  ;;  %v2164_v32 = vpack.c.bf16 %v5616_v61, %v5615_v45  ;;  %p5966_p2 = pnand (%p513_p0), %p5965_p1, %p6143_p5  ;;  %p5971_p8 = por (%p513_p0), %p5970_p7, %p5969_p4 }
 0x29a   : >> { %v2563_v6 = vadd.f32 %v2484_v63, %v2327_v28  ;;  %5588 = vmatmul.msk.bf16.gmra.mxu2 %vm316_vm0, %v6858_v37  ;;  %p5967_p3 = pneg (%p513_p0), %p5966_p2 }
 0x29b   : >> { %5649 = vmatmul.msk.bf16.gmra.mxu3 %vm316_vm0, %v2163_v18  ;;  %5710 = vmatmul.msk.bf16.gmra.mxu0 %vm316_vm0, %v6878_v34 }
 0x29c   : >> { %v2598_v44 = vadd.f32 %v7127_v29, %v2563_v6  ;;  %p5972_p9 = pnand (%p513_p0), %p5971_p8, %p5967_p3 }
 0x29d   : >> { %v2015_v21 = vpop.f32.mrf.mxu2  ;;  %v1779_v28 = vpop.f32.mrf.mxu1 }
 0x29e   : >> { %v2630_v22 = vmax.f32 %v2598_v44, 0.0  ;;  %v2092_v56 = vadd.f32 %v2015_v21, %v1854_v38  ;;  %v2251_v14 = vpop.f32.mrf.mxu3  ;;  %v1855_v18 = vadd.f32 %v1779_v28, %v9392_v33  ;;  %v9393_v28 = vld [vmem:[#allocation28_spill] sm:$0xff] }
 0x2a0   : >> { %v2328_v63 = vadd.f32 %v2251_v14, %v2092_v56  ;;  %v2489_v27 = vpop.f32.mrf.mxu0  ;;  %5718 = vst.msk [vmem:[%s7178_s20 + $0x21] sm:$0xff] %vm316_vm0, %v2630_v22 }
 0x2a2   : >> { %v2564_v37 = vadd.f32 %v2487_v20, %v2328_v63 }
 0x2a4   : >> { %v2599_v60 = vadd.f32 %v7127_v29, %v2564_v37 }
 0x2a5   : >> { %v2017_v26 = vpop.f32.mrf.mxu2  ;;  %v1782_v58 = vpop.f32.mrf.mxu1 }
 0x2a6   : >> { %v2631_v52 = vmax.f32 %v2599_v60, 0.0  ;;  %v2093_v6 = vadd.f32 %v2017_v26, %v1855_v18  ;;  %v2253_v4 = vpop.f32.mrf.mxu3  ;;  %v2165_v18 = vpack.c.bf16 %v7138_v30, %v7135_v62 }
 0x2a8   : >> { %v2329_v44 = vadd.f32 %v2253_v4, %v2093_v6  ;;  %v2492_v38 = vpop.f32.mrf.mxu0  ;;  %5719 = vst.msk [vmem:[%s7178_s20 + $0x31] sm:$0xff] %vm316_vm0, %v2631_v52  ;;  %5528 = vmatmul.msk.bf16.gmra.mxu1 %vm316_vm0, %v6878_v34  ;;  %v1856_v4 = vadd.f32 %v1782_v58, %v6872_v41 }
 0x2aa   : >> { %v2565_v21 = vadd.f32 %v2489_v27, %v2329_v44  ;;  %5589 = vmatmul.msk.bf16.gmra.mxu2 %vm316_vm0, %v6880_v10 }
 0x2ab   : >> { %5650 = vmatmul.msk.bf16.gmra.mxu3 %vm316_vm0, %v2164_v32  ;;  %5711 = vmatmul.msk.bf16.gmra.mxu0 %vm316_vm0, %v6900_v25 }
 0x2ac   : >> { %v2600_v26 = vadd.f32 %v7127_v29, %v2565_v21 }
 0x2ad   : >> { %v2020_v45 = vpop.f32.mrf.mxu2  ;;  %v1784_v22 = vpop.f32.mrf.mxu1 }
 0x2ae   : >> { %v2632_v61 = vmax.f32 %v2600_v26, 0.0  ;;  %v2094_v20 = vadd.f32 %v2020_v45, %v1856_v4  ;;  %v2256_v52 = vpop.f32.mrf.mxu3  ;;  %v1857_v63 = vadd.f32 %v1784_v22, %v9393_v28 }
 0x2b0   : >> { %v2330_v56 = vadd.f32 %v2256_v52, %v2094_v20  ;;  %v2494_v34 = vpop.f32.mrf.mxu0  ;;  %5720 = vst.msk [vmem:[%s7178_s20 + $0x39] sm:$0xff] %vm316_vm0, %v2632_v61  ;;  %v9394_v20 = vld [vmem:[#allocation29_spill] sm:$0xff] }
 0x2b2   : >> { %v2566_v10 = vadd.f32 %v2492_v38, %v2330_v56 }
 0x2b4   : >> { %v2601_v14 = vadd.f32 %v7127_v29, %v2566_v10 }
 0x2b5   : >> { %v2022_v27 = vpop.f32.mrf.mxu2  ;;  %v1787_v41 = vpop.f32.mrf.mxu1 }
 0x2b6   : >> { %v2633_v37 = vmax.f32 %v2601_v14, 0.0  ;;  %v2095_v60 = vadd.f32 %v2022_v27, %v1857_v63  ;;  %v2258_v33 = vpop.f32.mrf.mxu3  ;;  %v1858_v62 = vadd.f32 %v1787_v41, %v6894_v42  ;;  %v2166_v14 = vpack.c.bf16 %v7144_v57, %v7141_v2 }
 0x2b8   : >> { %v2331_v6 = vadd.f32 %v2258_v33, %v2095_v60  ;;  %v2497_v58 = vpop.f32.mrf.mxu0  ;;  %5721 = vst.msk [vmem:[%s7178_s20 + $0x49] sm:$0xff] %vm316_vm0, %v2633_v37  ;;  %5529 = vmatmul.msk.bf16.gmra.mxu1 %vm316_vm0, %v6900_v25 }
 0x2ba   : >> { %v2567_v32 = vadd.f32 %v2494_v34, %v2331_v6  ;;  %5590 = vmatmul.msk.bf16.gmra.mxu2 %vm316_vm0, %v6902_v31 }
 0x2bb   : >> { %5651 = vmatmul.msk.bf16.gmra.mxu3 %vm316_vm0, %v2165_v18  ;;  %5712 = vmatmul.msk.bf16.gmra.mxu0 %vm316_vm0, %v6922_v1 }
 0x2bc   : >> { %v2602_v44 = vadd.f32 %v7127_v29, %v2567_v32  ;;  %v9395_v32 = vld [vmem:[#allocation30_spill] sm:$0xff] }
 0x2bd   : >> { %v2025_v30 = vpop.f32.mrf.mxu2  ;;  %v1789_v4 = vpop.f32.mrf.mxu1 }
 0x2be   : >> { %v2634_v38 = vmax.f32 %v2602_v44, 0.0  ;;  %v2096_v21 = vadd.f32 %v2025_v30, %v1858_v62  ;;  %v2261_v26 = vpop.f32.mrf.mxu3  ;;  %v1859_v52 = vadd.f32 %v1789_v4, %v9394_v20 }
 0x2c0   : >> { %v2332_v45 = vadd.f32 %v2261_v26, %v2096_v21  ;;  %v2499_v25 = vpop.f32.mrf.mxu0  ;;  %5722 = vst.msk [vmem:[%s7178_s20 + $0x51] sm:$0xff] %vm316_vm0, %v2634_v38  ;;  %v2167_v26 = vpack.c.bf16 %v7150_v48, %v7147_v8  ;;  %v9396_v8 = vld [vmem:[#allocation31_spill] sm:$0xff] }
 0x2c2   : >> { %v2568_v31 = vadd.f32 %v2497_v58, %v2332_v45 }
 0x2c4   : >> { %v2603_v61 = vadd.f32 %v7127_v29, %v2568_v31 }
 0x2c5   : >> { %v2027_v22 = vpop.f32.mrf.mxu2  ;;  %v1792_v42 = vpop.f32.mrf.mxu1 }
 0x2c6   : >> { %v2635_v56 = vmax.f32 %v2603_v61, 0.0  ;;  %v2097_v34 = vadd.f32 %v2027_v22, %v1859_v52  ;;  %v2263_v10 = vpop.f32.mrf.mxu3  ;;  %v1860_v2 = vadd.f32 %v1792_v42, %v6915_v7  ;;  %v9397_v42 = vld [vmem:[#allocation32_spill] sm:$0xff] }
 0x2c8   : >> { %v2333_v28 = vadd.f32 %v2263_v10, %v2097_v34  ;;  %v2502_v63 = vpop.f32.mrf.mxu0  ;;  %5723 = vst.msk [vmem:[%s7178_s20 + $0x61] sm:$0xff] %vm316_vm0, %v2635_v56  ;;  %5530 = vmatmul.msk.bf16.gmra.mxu1 %vm316_vm0, %v6922_v1 }
 0x2ca   : >> { %v2569_v27 = vadd.f32 %v2499_v25, %v2333_v28  ;;  %5591 = vmatmul.msk.bf16.gmra.mxu2 %vm316_vm0, %v6924_v47 }
 0x2cb   : >> { %5652 = vmatmul.msk.bf16.gmra.mxu3 %vm316_vm0, %v2166_v14  ;;  %5713 = vmatmul.msk.bf16.gmra.mxu0 %vm316_vm0, %v6944_v13 }
 0x2cc   : >> { %v2604_v37 = vadd.f32 %v7127_v29, %v2569_v27 }
 0x2cd   : >> { %v2030_v57 = vpop.f32.mrf.mxu2  ;;  %v1794_v18 = vpop.f32.mrf.mxu1 }
 0x2ce   : >> { %v2636_v60 = vmax.f32 %v2604_v37, 0.0  ;;  %v2098_v33 = vadd.f32 %v2030_v57, %v1860_v2  ;;  %v2266_v41 = vpop.f32.mrf.mxu3  ;;  %v1861_v44 = vadd.f32 %v1794_v18, %v9395_v32  ;;  %v2404_v57 = vpack.c.bf16 %v7156_v35, %v7153_v36 }
 0x2d0   : >> { %v2334_v6 = vadd.f32 %v2266_v41, %v2098_v33  ;;  %v2504_v1 = vpop.f32.mrf.mxu0  ;;  %5724 = vst.msk [vmem:[%s7178_s20 + $0x69] sm:$0xff] %vm316_vm0, %v2636_v60 }
 0x2d2   : >> { %v2570_v47 = vadd.f32 %v2502_v63, %v2334_v6 }
 0x2d4   : >> { %v2605_v58 = vadd.f32 %v7127_v29, %v2570_v47 }
 0x2d5   : >> { %v2032_v62 = vpop.f32.mrf.mxu2  ;;  %v1797_v7 = vpop.f32.mrf.mxu1 }
 0x2d6   : >> { %v2637_v30 = vmax.f32 %v2605_v58, 0.0  ;;  %v2099_v38 = vadd.f32 %v2032_v62, %v1861_v44  ;;  %v2268_v21 = vpop.f32.mrf.mxu3  ;;  %v1862_v48 = vadd.f32 %v1797_v7, %v9396_v8 }
 0x2d8   : >> { %v2335_v4 = vadd.f32 %v2268_v21, %v2099_v38  ;;  %v2507_v45 = vpop.f32.mrf.mxu0  ;;  %5725 = vst.msk [vmem:[%s7178_s20 + $0x79] sm:$0xff] %vm316_vm0, %v2637_v30  ;;  %5531 = vmatmul.msk.bf16.gmra.mxu1 %vm316_vm0, %v6944_v13 }
 0x2da   : >> { %v2571_v25 = vadd.f32 %v2504_v1, %v2335_v4  ;;  %5592 = vmatmul.msk.bf16.gmra.mxu2 %vm316_vm0, %v6946_v5  ;;  %v2405_v4 = vpack.c.bf16 %v7176_v40, %v7173_v39 }
 0x2db   : >> { %5653 = vmatmul.msk.bf16.gmra.mxu3 %vm316_vm0, %v2167_v26  ;;  %5714 = vmatmul.msk.bf16.gmra.mxu0 %vm316_vm0, %v6968_v11  ;;  %v2169_v26 = vpack.c.bf16 %v7170_v51, %v7167_v17 }
 0x2dc   : >> { %v2606_v31 = vadd.f32 %v7127_v29, %v2571_v25 }
 0x2dd   : >> { %v2035_v61 = vpop.f32.mrf.mxu2  ;;  %v1799_v56 = vpop.f32.mrf.mxu1 }
 0x2de   : >> { %v2638_v20 = vmax.f32 %v2606_v31, 0.0  ;;  %v2100_v52 = vadd.f32 %v2035_v61, %v1862_v48  ;;  %v2271_v22 = vpop.f32.mrf.mxu3  ;;  %v1863_v14 = vadd.f32 %v1799_v56, %v9397_v42 }
 0x2e0   : >> { %v2336_v34 = vadd.f32 %v2271_v22, %v2100_v52  ;;  %v2509_v13 = vpop.f32.mrf.mxu0  ;;  %5726 = vst.msk [vmem:[%s7178_s20 + $0x81] sm:$0xff] %vm316_vm0, %v2638_v20 }
 0x2e2   : >> { %v2572_v5 = vadd.f32 %v2507_v45, %v2336_v34 }
 0x2e4   : >> { %v2607_v10 = vadd.f32 %v7127_v29, %v2572_v5 }
 0x2e5   : >> { %v2037_v28 = vpop.f32.mrf.mxu2  ;;  %v1802_v2 = vpop.f32.mrf.mxu1 }
 0x2e6   : >> { %v2639_v63 = vmax.f32 %v2607_v10, 0.0  ;;  %v2101_v27 = vadd.f32 %v2037_v28, %v1863_v14  ;;  %v2273_v37 = vpop.f32.mrf.mxu3  ;;  %v1864_v36 = vadd.f32 %v1802_v2, %v6959_v0  ;;  %v1933_v0 = vpack.c.bf16 %v7164_v19, %v7161_v55 }
 0x2e8   : >> { %v2337_v60 = vadd.f32 %v2273_v37, %v2101_v27  ;;  %v2512_v33 = vpop.f32.mrf.mxu0  ;;  %5727 = vst.msk [vmem:[%s7178_s20 + $0x91] sm:$0xff] %vm316_vm0, %v2639_v63  ;;  %5532 = vmatmul.msk.bf16.gmra.mxu1 %vm316_vm0, %v6968_v11 }
 0x2ea   : >> { %v2573_v41 = vadd.f32 %v2509_v13, %v2337_v60  ;;  %5593 = vmatmul.msk.bf16.gmra.mxu2 %vm316_vm0, %v6970_v16 }
 0x2eb   : >> { %5654 = vmatmul.msk.bf16.gmra.mxu3 %vm316_vm0, %v6972_v9  ;;  %5715 = vmatmul.msk.bf16.gmra.mxu0 %vm316_vm0, %v2404_v57 }
 0x2ec   : >> { %v2608_v18 = vadd.f32 %v7127_v29, %v2573_v41 }
 0x2ed   : >> { %v2040_v35 = vpop.f32.mrf.mxu2  ;;  %v1804_v58 = vpop.f32.mrf.mxu1 }
 0x2ee   : >> { %v2640_v6 = vmax.f32 %v2608_v18, 0.0  ;;  %v2102_v1 = vadd.f32 %v2040_v35, %v1864_v36  ;;  %v2276_v47 = vpop.f32.mrf.mxu3  ;;  %v1865_v9 = vadd.f32 %v1804_v58, %v6978_v50 }
 0x2f0   : >> { %v2338_v32 = vadd.f32 %v2276_v47, %v2102_v1  ;;  %v2514_v11 = vpop.f32.mrf.mxu0  ;;  %5728 = vst.msk [vmem:[%s7178_s20 + $0x99] sm:$0xff] %vm316_vm0, %v2640_v6 }
 0x2f2   : >> { %v2574_v16 = vadd.f32 %v2512_v33, %v2338_v32 }
 0x2f4   : >> { %v2609_v44 = vadd.f32 %v7127_v29, %v2574_v16 }
 0x2f5   : >> { %v2042_v62 = vpop.f32.mrf.mxu2  ;;  %v1807_v7 = vpop.f32.mrf.mxu1 }
 0x2f6   : >> { %v2641_v30 = vmax.f32 %v2609_v44, 0.0  ;;  %v2103_v38 = vadd.f32 %v2042_v62, %v1865_v9  ;;  %v2278_v21 = vpop.f32.mrf.mxu3  ;;  %v1866_v19 = vadd.f32 %v1807_v7, %v6985_v12 }
 0x2f8   : >> { %v2339_v45 = vadd.f32 %v2278_v21, %v2103_v38  ;;  %v2517_v25 = vpop.f32.mrf.mxu0  ;;  %5729 = vst.msk [vmem:[%s7178_s20 + $0xa9] sm:$0xff] %vm316_vm0, %v2641_v30  ;;  %5533 = vmatmul.msk.bf16.gmra.mxu1 %vm316_vm0, %v2404_v57 }
 0x2fa   : >> { %v2575_v50 = vadd.f32 %v2514_v11, %v2339_v45  ;;  %5594 = vmatmul.msk.bf16.gmra.mxu2 %vm316_vm0, %v1933_v0 }
 0x2fb   : >> { %5655 = vmatmul.msk.bf16.gmra.mxu3 %vm316_vm0, %v2169_v26  ;;  %5716 = vmatmul.msk.bf16.gmra.mxu0 %vm316_vm0, %v2405_v4 }
 0x2fc   : >> { %v2610_v55 = vadd.f32 %v7127_v29, %v2575_v50 }
 0x2fd   : >> { %v2045_v17 = vpop.f32.mrf.mxu2  ;;  %v1809_v31 = vpop.f32.mrf.mxu1 }
 0x2fe   : >> { %v2642_v51 = vmax.f32 %v2610_v55, 0.0  ;;  %v2104_v39 = vadd.f32 %v2045_v17, %v1866_v19  ;;  %v2281_v40 = vpop.f32.mrf.mxu3  ;;  %v1867_v52 = vadd.f32 %v1809_v31, %v6992_v3 }
 0x300   : >> { %5730 = vst.msk [vmem:[%s7178_s20 + $0xb1] sm:$0xff] %vm316_vm0, %v2642_v51  ;;  %v2340_v8 = vadd.f32 %v2281_v40, %v2104_v39  ;;  %v2519_v48 = vpop.f32.mrf.mxu0 }
 0x302   : >> { %v2576_v61 = vadd.f32 %v2517_v25, %v2340_v8 }
 0x304   : >> { %v2611_v20 = vadd.f32 %v7127_v29, %v2576_v61 }
 0x305   : >> { %v2047_v22 = vpop.f32.mrf.mxu2  ;;  %v1812_v13 = vpop.f32.mrf.mxu1 }
 0x306   : >> { %v2643_v56 = vmax.f32 %v2611_v20, 0.0  ;;  %v2105_v34 = vadd.f32 %v2047_v22, %v1867_v52  ;;  %v2283_v12 = vpop.f32.mrf.mxu3  ;;  %v1868_v28 = vadd.f32 %v1812_v13, %v6999_v46 }
 0x308   : >> { %5731 = vst.msk [vmem:[%s7178_s20 + $0xc1] sm:$0xff] %vm316_vm0, %v2643_v56  ;;  %v2341_v5 = vadd.f32 %v2283_v12, %v2105_v34  ;;  %v2522_v10 = vpop.f32.mrf.mxu0 }
 0x30a   : >> { %v2577_v42 = vadd.f32 %v2519_v48, %v2341_v5 }
 0x30c   : >> { %v2612_v14 = vadd.f32 %v7127_v29, %v2577_v42 }
 0x30d   : >> { %v2050_v63 = vpop.f32.mrf.mxu2  ;;  %v1814_v2 = vpop.f32.mrf.mxu1 }
 0x30e   : >> { %v2644_v27 = vmax.f32 %v2612_v14, 0.0  ;;  %v2106_v37 = vadd.f32 %v2050_v63, %v1868_v28  ;;  %v2286_v3 = vpop.f32.mrf.mxu3  ;;  %v1869_v18 = vadd.f32 %v1814_v2, %v7006_v43 }
 0x310   : >> { %5732 = vst.msk [vmem:[%s7178_s20 + $0xc9] sm:$0xff] %vm316_vm0, %v2644_v27  ;;  %v2342_v57 = vadd.f32 %v2286_v3, %v2106_v37  ;;  %v2524_v60 = vpop.f32.mrf.mxu0 }
 0x312   : >> { %v2578_v33 = vadd.f32 %v2522_v10, %v2342_v57 }
 0x314   : >> { %v2613_v41 = vadd.f32 %v7127_v29, %v2578_v33 }
 0x315   : >> { %v2052_v36 = vpop.f32.mrf.mxu2  ;;  %v1817_v1 = vpop.f32.mrf.mxu1 }
 0x316   : >> { %v2645_v35 = vmax.f32 %v2613_v41, 0.0  ;;  %v2107_v6 = vadd.f32 %v2052_v36, %v1869_v18  ;;  %v2288_v46 = vpop.f32.mrf.mxu3  ;;  %v1870_v16 = vadd.f32 %v1817_v1, %v7013_v53 }
 0x318   : >> { %5733 = vst.msk [vmem:[%s7178_s20 + $0xd9] sm:$0xff] %vm316_vm0, %v2645_v35  ;;  %v2343_v47 = vadd.f32 %v2288_v46, %v2107_v6  ;;  %v2527_v58 = vpop.f32.mrf.mxu0 }
 0x31a   : >> { %v2579_v32 = vadd.f32 %v2524_v60, %v2343_v47 }
 0x31c   : >> { %v2614_v11 = vadd.f32 %v7127_v29, %v2579_v32 }
 0x31d   : >> { %v2055_v44 = vpop.f32.mrf.mxu2  ;;  %v1819_v30 = vpop.f32.mrf.mxu1 }
 0x31e   : >> { %v2646_v9 = vmax.f32 %v2614_v11, 0.0  ;;  %v2108_v62 = vadd.f32 %v2055_v44, %v1870_v16  ;;  %v2291_v43 = vpop.f32.mrf.mxu3  ;;  %v1871_v26 = vadd.f32 %v1819_v30, %v7022_v15 }
 0x320   : >> { %5734 = vst.msk [vmem:[%s7178_s20 + $0xe1] sm:$0xff] %vm316_vm0, %v2646_v9  ;;  %v2344_v38 = vadd.f32 %v2291_v43, %v2108_v62  ;;  %v2529_v21 = vpop.f32.mrf.mxu0 }
 0x322   : >> { %v2580_v0 = vadd.f32 %v2527_v58, %v2344_v38 }
 0x324   : >> { %v2615_v7 = vadd.f32 %v7127_v29, %v2580_v0  ;;  %v9398_v0 = vld [vmem:[#allocation15_spill] sm:$0xff] }
 0x325   : >> { %v2057_v4 = vpop.f32.mrf.mxu2  ;;  %v1822_v50 = vpop.f32.mrf.mxu1 }
 0x326   : >> { %v2647_v45 = vmax.f32 %v2615_v7, 0.0  ;;  %v2109_v25 = vadd.f32 %v2057_v4, %v1871_v26  ;;  %v2293_v53 = vpop.f32.mrf.mxu3  ;;  %v1872_v39 = vadd.f32 %v1822_v50, %v7028_v23 }
 0x328   : >> { %5735 = vst.msk [vmem:[%s7178_s20 + $0xf1] sm:$0xff] %vm316_vm0, %v2647_v45  ;;  %v2345_v55 = vadd.f32 %v2293_v53, %v2109_v25  ;;  %v2532_v19 = vpop.f32.mrf.mxu0 }
 0x32a   : >> { %v2581_v17 = vadd.f32 %v2529_v21, %v2345_v55 }
 0x32c   : >> { %v2616_v51 = vadd.f32 %v7127_v29, %v2581_v17  ;;  %v9399_v17 = vld [vmem:[#allocation18_spill] sm:$0xff] }
 0x32d   : >> { %v2060_v40 = vpop.f32.mrf.mxu2  ;;  %v1824_v48 = vpop.f32.mrf.mxu1 }
 0x32e   : >> { %v2648_v31 = vmax.f32 %v2616_v51, 0.0  ;;  %v2110_v8 = vadd.f32 %v2060_v40, %v1872_v39  ;;  %v2296_v15 = vpop.f32.mrf.mxu3  ;;  %v1873_v56 = vadd.f32 %v1824_v48, %v7037_v49 }
 0x330   : >> { %5736 = vst.msk [vmem:[%s7178_s20 + $0xf9] sm:$0xff] %vm316_vm0, %v2648_v31  ;;  %v2346_v61 = vadd.f32 %v2296_v15, %v2110_v8  ;;  %v2534_v20 = vpop.f32.mrf.mxu0 }
 0x332   : >> { %v2582_v52 = vadd.f32 %v2532_v19, %v2346_v61 }
 0x334   : >> { %v2617_v22 = vadd.f32 %v7127_v29, %v2582_v52 }
 0x335   : >> { %v2062_v34 = vpop.f32.mrf.mxu2  ;;  %v1827_v5 = vpop.f32.mrf.mxu1 }
 0x336   : >> { %v2649_v12 = vmax.f32 %v2617_v22, 0.0  ;;  %v2111_v13 = vadd.f32 %v2062_v34, %v1873_v56  ;;  %v2298_v23 = vpop.f32.mrf.mxu3  ;;  %v1874_v63 = vadd.f32 %v1827_v5, %v7043_v24  ;;  %v9400_v22 = vld [vmem:[#allocation21_spill] sm:$0xff] }
 0x338   : >> { %5737 = vst.msk [vmem:[%s7178_s20 + $0x109] sm:$0xff] %vm316_vm0, %v2649_v12  ;;  %v2347_v10 = vadd.f32 %v2298_v23, %v2111_v13  ;;  %v2537_v42 = vpop.f32.mrf.mxu0 }
 0x33a   : >> { %v2583_v14 = vadd.f32 %v2534_v20, %v2347_v10 }
 0x33c   : >> { %v2618_v28 = vadd.f32 %v7127_v29, %v2583_v14 }
 0x33d   : >> { %v2065_v27 = vpop.f32.mrf.mxu2  ;;  %v1829_v2 = vpop.f32.mrf.mxu1 }
 0x33e   : >> { %v2650_v37 = vmax.f32 %v2618_v28, 0.0  ;;  %v2112_v3 = vadd.f32 %v2065_v27, %v1874_v63  ;;  %v2301_v49 = vpop.f32.mrf.mxu3  ;;  %v1875_v18 = vadd.f32 %v1829_v2, %v7052_v59  ;;  %v9401_v63 = vld [vmem:[#allocation16_spill] sm:$0xff] }
 0x340   : >> { %5738 = vst.msk [vmem:[%s7178_s20 + $0x111] sm:$0xff] %vm316_vm0, %v2650_v37  ;;  %v2348_v57 = vadd.f32 %v2301_v49, %v2112_v3  ;;  %v2539_v60 = vpop.f32.mrf.mxu0 }
 0x342   : >> { %v2584_v33 = vadd.f32 %v2537_v42, %v2348_v57 }
 0x344   : >> { %v2619_v41 = vadd.f32 %v7127_v29, %v2584_v33 }
 0x345   : >> { %v2067_v36 = vpop.f32.mrf.mxu2  ;;  %v1832_v46 = vpop.f32.mrf.mxu1 }
 0x346   : >> { %v2651_v35 = vmax.f32 %v2619_v41, 0.0  ;;  %v2113_v6 = vadd.f32 %v2067_v36, %v1875_v18  ;;  %v2303_v24 = vpop.f32.mrf.mxu3  ;;  %v1876_v11 = vadd.f32 %v1832_v46, %v7058_v54  ;;  %v9402_v18 = vld [vmem:[#allocation17_spill] sm:$0xff] }
 0x348   : >> { %5739 = vst.msk [vmem:[%s7178_s20 + $0x121] sm:$0xff] %vm316_vm0, %v2651_v35  ;;  %v2349_v1 = vadd.f32 %v2303_v24, %v2113_v6  ;;  %v2542_v47 = vpop.f32.mrf.mxu0 }
 0x34a   : >> { %v2585_v58 = vadd.f32 %v2539_v60, %v2349_v1 }
 0x34c   : >> { %v2620_v32 = vadd.f32 %v7127_v29, %v2585_v58 }
 0x34d   : >> { %v2070_v16 = vpop.f32.mrf.mxu2  ;;  %v1834_v62 = vpop.f32.mrf.mxu1 }
 0x34e   : >> { %v2652_v44 = vmax.f32 %v2620_v32, 0.0  ;;  %v2114_v9 = vadd.f32 %v2070_v16, %v1876_v11  ;;  %v2306_v59 = vpop.f32.mrf.mxu3  ;;  %v1877_v7 = vadd.f32 %v1834_v62, %v9398_v0  ;;  %v9403_v16 = vld [vmem:[#allocation22_spill] sm:$0xff] }
 0x350   : >> { %5740 = vst.msk [vmem:[%s7178_s20 + $0x129] sm:$0xff] %vm316_vm0, %v2652_v44  ;;  %v2350_v43 = vadd.f32 %v2306_v59, %v2114_v9  ;;  %v2544_v30 = vpop.f32.mrf.mxu0 }
 0x352   : >> { %v2586_v38 = vadd.f32 %v2542_v47, %v2350_v43 }
 0x354   : >> { %v2621_v21 = vadd.f32 %v7127_v29, %v2586_v38 }
 0x355   : >> { %v2072_v26 = vpop.f32.mrf.mxu2  ;;  %v1837_v25 = vpop.f32.mrf.mxu1 }
 0x356   : >> { %v2653_v4 = vmax.f32 %v2621_v21, 0.0  ;;  %v2115_v45 = vadd.f32 %v2072_v26, %v1877_v7  ;;  %v2308_v54 = vpop.f32.mrf.mxu3  ;;  %v1878_v51 = vadd.f32 %v1837_v25, %v9399_v17  ;;  %v9404_v26 = vld [vmem:[#allocation25_spill] sm:$0xff] }
 0x358   : >> { %5741 = vst.msk [vmem:[%s7178_s20 + $0x139] sm:$0xff] %vm316_vm0, %v2653_v4  ;;  %v2351_v53 = vadd.f32 %v2308_v54, %v2115_v45  ;;  %v2547_v50 = vpop.f32.mrf.mxu0 }
 0x35a   : >> { %v2587_v55 = vadd.f32 %v2544_v30, %v2351_v53 }
 0x35c   : >> { %v2622_v19 = vadd.f32 %v7127_v29, %v2587_v55 }
 0x35d   : >> { %v2075_v39 = vpop.f32.mrf.mxu2  ;;  %v1839_v15 = vpop.f32.mrf.mxu1 }
 0x35e   : >> { %v2654_v40 = vmax.f32 %v2622_v19, 0.0  ;;  %v2116_v31 = vadd.f32 %v2075_v39, %v1878_v51  ;;  %v2311_v8 = vpop.f32.mrf.mxu3  ;;  %v1879_v56 = vadd.f32 %v1839_v15, %v9400_v22 }
 0x360   : >> { %5742 = vst.msk [vmem:[%s7178_s20 + $0x141] sm:$0xff] %vm316_vm0, %v2654_v40  ;;  %v2352_v48 = vadd.f32 %v2311_v8, %v2116_v31  ;;  %v2549_v61 = vpop.f32.mrf.mxu0  ;;  %v7371_v40 = vld [vmem:[%s9337_s4] ss:$0 sm:$0xff] (%p513_p0) }
 0x362   : >> { %v2588_v20 = vadd.f32 %v2547_v50, %v2352_v48  ;;  %v7384_v48 = vld [vmem:[%s9337_s4 + $0x2] ss:$0 sm:$0xff] (%p513_p0) }
 0x364   : >> { %v2623_v52 = vadd.f32 %v7127_v29, %v2588_v20 }
 0x365   : >> { %v2077_v34 = vpop.f32.mrf.mxu2  ;;  %v1842_v5 = vpop.f32.mrf.mxu1 }
 0x366   : >> { %v2655_v12 = vmax.f32 %v2623_v52, 0.0  ;;  %v2117_v13 = vadd.f32 %v2077_v34, %v1879_v56  ;;  %v2313_v23 = vpop.f32.mrf.mxu3  ;;  %v1880_v27 = vadd.f32 %v1842_v5, %v9401_v63  ;;  %v7390_v52 = vld [vmem:[%s9337_s4 + $0x3] ss:$0 sm:$0xff] (%p513_p0)  ;;  %v7397_v34 = vld [vmem:[%s9337_s4 + $0x4] ss:$0 sm:$0xff] (%p513_p0) }
 0x367   : > { %v7403_v5 = vld [vmem:[%s9337_s4 + $0x5] ss:$0 sm:$0xff] (%p513_p0) }
 0x368   : >> { %5743 = vst.msk [vmem:[%s7178_s20 + $0x151] sm:$0xff] %vm316_vm0, %v2655_v12  ;;  %v2353_v10 = vadd.f32 %v2313_v23, %v2117_v13  ;;  %v2552_v14 = vpop.f32.mrf.mxu0 }
 0x36a   : >> { %v2589_v42 = vadd.f32 %v2549_v61, %v2353_v10 }
 0x36c   : >> { %v2624_v28 = vadd.f32 %v7127_v29, %v2589_v42 }
 0x36d   : >> { %v2080_v37 = vpop.f32.mrf.mxu2  ;;  %v1844_v57 = vpop.f32.mrf.mxu1 }
 0x36e   : >> { %v2656_v3 = vmax.f32 %v2624_v28, 0.0  ;;  %v2118_v49 = vadd.f32 %v2080_v37, %v1880_v27  ;;  %v2316_v2 = vpop.f32.mrf.mxu3  ;;  %v1881_v36 = vadd.f32 %v1844_v57, %v9402_v18  ;;  %v7439_v18 = vld [vmem:[%s9337_s4 + $0x8] ss:$0 sm:$0xff] (%p513_p0) }
 0x370   : >> { %5744 = vst.msk [vmem:[%s7178_s20 + $0x159] sm:$0xff] %vm316_vm0, %v2656_v3  ;;  %v2354_v60 = vadd.f32 %v2316_v2, %v2118_v49  ;;  %v2554_v35 = vpop.f32.mrf.mxu0  ;;  %v7426_v2 = vld [vmem:[%s9337_s4 + $0x7] ss:$0 sm:$0xff] (%p513_p0) }
 0x372   : >> { %v2590_v33 = vadd.f32 %v2552_v14, %v2354_v60  ;;  %v7411_v14 = vld [vmem:[%s9337_s4 + $0x6] ss:$0 sm:$0xff] (%p513_p0) }
 0x374   : >> { %v2625_v41 = vadd.f32 %v7127_v29, %v2590_v33 }
 0x375   : >> { %v2082_v6 = vpop.f32.mrf.mxu2  ;;  %v1847_v47 = vpop.f32.mrf.mxu1 }
 0x376   : >> { %v2657_v24 = vmax.f32 %v2625_v41, 0.0  ;;  %v2119_v46 = vadd.f32 %v2082_v6, %v1881_v36  ;;  %v2318_v1 = vpop.f32.mrf.mxu3  ;;  %v1882_v44 = vadd.f32 %v1847_v47, %v9403_v16 }
 0x378   : >> { %5745 = vst.msk [vmem:[%s7178_s20 + $0x169] sm:$0xff] %vm316_vm0, %v2657_v24  ;;  %v2355_v58 = vadd.f32 %v2318_v1, %v2119_v46  ;;  %v2557_v30 = vpop.f32.mrf.mxu0 }
 0x37a   : >> { %v2591_v32 = vadd.f32 %v2554_v35, %v2355_v58 }
 0x37c   : >> { %v2626_v11 = vadd.f32 %v7127_v29, %v2591_v32 }
 0x37d   : >> { %v2085_v9 = vpop.f32.mrf.mxu2  ;;  %v1849_v21 = vpop.f32.mrf.mxu1 }
 0x37e   : >> { %v2658_v59 = vmax.f32 %v2626_v11, 0.0  ;;  %v2120_v62 = vadd.f32 %v2085_v9, %v1882_v44  ;;  %v2321_v43 = vpop.f32.mrf.mxu3  ;;  %v1883_v4 = vadd.f32 %v1849_v21, %v9404_v26 }
 0x380   : >> { %5746 = vst.msk [vmem:[%s7178_s20 + $0x171] sm:$0xff] %vm316_vm0, %v2658_v59  ;;  %v2356_v38 = vadd.f32 %v2321_v43, %v2120_v62  ;;  %v2559_v55 = vpop.f32.mrf.mxu0 }
 0x382   : >> { %v2592_v0 = vadd.f32 %v2557_v30, %v2356_v38 }
 0x384   : >> { %v2627_v7 = vadd.f32 %v7127_v29, %v2592_v0 }
 0x385   : >> { %v2087_v45 = vpop.f32.mrf.mxu2 }
 0x386   : >> { %v2659_v54 = vmax.f32 %v2627_v7, 0.0  ;;  %v2121_v25 = vadd.f32 %v2087_v45, %v1883_v4  ;;  %v2323_v53 = vpop.f32.mrf.mxu3 }
 0x388   : >> { %5747 = vst.msk [vmem:[%s7178_s20 + $0x181] sm:$0xff] %vm316_vm0, %v2659_v54  ;;  %v2357_v50 = vadd.f32 %v2323_v53, %v2121_v25 }
 0x38a   : >> { %v2593_v19 = vadd.f32 %v2559_v55, %v2357_v50 }
 0x38c   : >> { %v2628_v17 = vadd.f32 %v7127_v29, %v2593_v19  ;;  %515 = sbr.rel (!%p513_p0) target bundleno = 188 (0xbc), region = 149  ;;  %v7376_v29 = vld [vmem:[%s9337_s4 + $0x1] ss:$0 sm:$0xff] (%p513_p0) }
 0x38e   : >> { %v2660_v51 = vmax.f32 %v2628_v17, 0.0 }
 0x390   : >> { %5748 = vst.msk [vmem:[%s7178_s20 + $0x189] sm:$0xff] %vm316_vm0, %v2660_v51  ;;  %s8529_s20 = sld [smem:[#allocation6]] (%p513_p0) }
 0x397   : > { %v2701_v39 = vld [vmem:[#allocation2 + $0x30] sm:$0xff]  ;;  %v3003_v20 = vld [vmem:[#allocation2 + $0x48] sm:$0xff]  ;;  %v7406_v42 = vld [vmem:[#allocation2 + $0x60] sm:$0xff] }
 0x398   : > { %v2801_v31 = vld [vmem:[#allocation2 + $0x31] sm:$0xff]  ;;  %v2737_v8 = vmul.f32 %v7371_v40, %v2701_v39  ;;  %v3104_v56 = vld [vmem:[#allocation2 + $0x49] sm:$0xff]  ;;  %v3040_v13 = vmul.f32 %v7390_v52, %v3003_v20  ;;  %v3038_v28 = vmul.f32 %v7390_v52, %v2701_v39  ;;  %v7415_v63 = vmul.f32 %v7371_v40, %v3003_v20  ;;  %v7421_v49 = vld [vmem:[#allocation2 + $0x61] sm:$0xff] }
 0x399   : > { %v7379_v15 = vld [vmem:[#allocation2 + $0x32] sm:$0xff]  ;;  %v2838_v61 = vmul.f32 %v7376_v29, %v2801_v31  ;;  %v3205_v23 = vld [vmem:[#allocation2 + $0x4a] sm:$0xff]  ;;  %v3141_v10 = vmul.f32 %v7397_v34, %v3104_v56  ;;  %v7418_v27 = vmul.f32 %v7376_v29, %v3104_v56  ;;  %v3139_v57 = vmul.f32 %v7397_v34, %v2801_v31  ;;  %v7434_v41 = vld [vmem:[#allocation2 + $0x62] sm:$0xff] }
 0x39a   : > { %v2939_v22 = vmul.f32 %v7384_v48, %v7379_v15  ;;  %v3242_v3 = vmul.f32 %v7403_v5, %v3205_v23  ;;  %v7430_v60 = vmul.f32 %v7384_v48, %v3205_v23  ;;  %v3344_v33 = vmul.f32 %v7411_v14, %v7406_v42  ;;  %v2699_v1 = vld [vmem:[#allocation2 + $0x18] sm:$0xff]  ;;  %v2697_v62 = vld [vmem:[#allocation2] sm:$0xff] }
 0x39b   : > { %v2870_v12 = vadd.f32 %v2838_v61, %v2737_v8  ;;  %v7443_v36 = vmul.f32 %v7403_v5, %v7379_v15  ;;  %v7446_v35 = vmul.f32 %v7411_v14, %v3003_v20  ;;  %v7450_v6 = vmul.f32 %v7371_v40, %v7406_v42  ;;  %v2799_v47 = vld [vmem:[#allocation2 + $0x19] sm:$0xff]  ;;  %v2797_v43 = vld [vmem:[#allocation2 + $0x1] sm:$0xff] }
 0x39c   : > { %v3445_v46 = vmul.f32 %v7426_v2, %v7421_v49  ;;  %v2900_v58 = vld [vmem:[#allocation2 + $0x1a] sm:$0xff]  ;;  %v7455_v32 = vmul.f32 %v7411_v14, %v2701_v39  ;;  %v7459_v11 = vmul.f32 %v7376_v29, %v7421_v49  ;;  %v2735_v16 = vmul.f32 %v7371_v40, %v2699_v1  ;;  %v2898_v30 = vld [vmem:[#allocation2 + $0x2] sm:$0xff]  ;;  %v7486_v39 = vld [vmem:[#allocation2 + $0x50] sm:$0xff] }
 0x39d   : > { %v2971_v37 = vadd.f32 %v2939_v22, %v2870_v12  ;;  %v2836_v44 = vmul.f32 %v7376_v29, %v2799_v47  ;;  %v2937_v9 = vmul.f32 %v7384_v48, %v2900_v58  ;;  %v7465_v59 = vmul.f32 %v7426_v2, %v3104_v56  ;;  %v7472_v26 = vld [vmem:[#allocation2 + $0x38] sm:$0xff]  ;;  %v7498_v12 = vld [vmem:[#allocation2 + $0x68] sm:$0xff] }
 0x39e   : > { %v2733_v21 = vmul.f32 %v7371_v40, %v2697_v62  ;;  %v2834_v0 = vmul.f32 %v7376_v29, %v2797_v43  ;;  %v7470_v7 = vmul.f32 %v7426_v2, %v2801_v31  ;;  %v7474_v4 = vld [vmem:[#allocation2 + $0x39] sm:$0xff]  ;;  %v3546_v54 = vmul.f32 %v7439_v18, %v7434_v41  ;;  %v7488_v31 = vld [vmem:[#allocation2 + $0x51] sm:$0xff]  ;;  %v2901_v62 = vld [vmem:[#allocation2 + $0x22] sm:$0xff] }
 0x39f   : > { %v3072_v24 = vadd.f32 %v3040_v13, %v2971_v37  ;;  %v7476_v45 = vld [vmem:[#allocation2 + $0x3a] sm:$0xff]  ;;  %v2868_v25 = vadd.f32 %v2836_v44, %v2735_v16  ;;  %v7481_v53 = vmul.f32 %v7439_v18, %v3205_v23  ;;  %v2935_v50 = vmul.f32 %v7384_v48, %v2898_v30  ;;  %v7496_v56 = vld [vmem:[#allocation2 + $0x52] sm:$0xff] }
 0x3a0   : > { %v2866_v19 = vadd.f32 %v2834_v0, %v2733_v21  ;;  %v3036_v17 = vmul.f32 %v7390_v52, %v2699_v1  ;;  %v3137_v51 = vmul.f32 %v7397_v34, %v2799_v47  ;;  %v2738_v61 = vmul.f32 %v7371_v40, %v7472_v26 }
 0x3a1   : > { %v3173_v38 = vadd.f32 %v3141_v10, %v3072_v24  ;;  %v2969_v8 = vadd.f32 %v2937_v9, %v2868_v25  ;;  %v2839_v20 = vmul.f32 %v7376_v29, %v7474_v4  ;;  %v2940_v22 = vmul.f32 %v7384_v48, %v7476_v45  ;;  %v2800_v24 = vld [vmem:[#allocation2 + $0x21] sm:$0xff]  ;;  %v7507_v9 = vld [vmem:[#allocation2 + $0x69] sm:$0xff] }
 0x3a2   : > { %v2967_v23 = vadd.f32 %v2935_v50, %v2866_v19  ;;  %v3238_v10 = vmul.f32 %v7403_v5, %v2900_v58  ;;  %v3542_v37 = vmul.f32 %v7439_v18, %v7379_v15  ;;  %v3041_v16 = vmul.f32 %v7390_v52, %v7486_v39  ;;  %v2698_v19 = vld [vmem:[#allocation2 + $0x8] sm:$0xff] }
 0x3a3   : > { %v3274_v55 = vadd.f32 %v3242_v3, %v3173_v38  ;;  %v2700_v3 = vld [vmem:[#allocation2 + $0x20] sm:$0xff]  ;;  %v3070_v1 = vadd.f32 %v3038_v28, %v2969_v8  ;;  %v2871_v47 = vadd.f32 %v2839_v20, %v2738_v61  ;;  %v3142_v44 = vmul.f32 %v7397_v34, %v7488_v31  ;;  %v7513_v38 = vld [vmem:[#allocation2 + $0x6a] sm:$0xff] }
 0x3a4   : > { %v3068_v43 = vadd.f32 %v3036_v17, %v2967_v23  ;;  %v3243_v58 = vmul.f32 %v7403_v5, %v7496_v56  ;;  %v3345_v15 = vmul.f32 %v7411_v14, %v7498_v12  ;;  %v2736_v21 = vmul.f32 %v7371_v40, %v2700_v3  ;;  %v2798_v20 = vld [vmem:[#allocation2 + $0x9] sm:$0xff] }
 0x3a5   : > { %v3376_v13 = vadd.f32 %v3344_v33, %v3274_v55  ;;  %v3171_v30 = vadd.f32 %v3139_v57, %v3070_v1  ;;  %v2972_v28 = vadd.f32 %v2940_v22, %v2871_v47  ;;  %v2837_v0 = vmul.f32 %v7376_v29, %v2800_v24  ;;  %v2899_v23 = vld [vmem:[#allocation2 + $0xa] sm:$0xff] }
 0x3a6   : > { %v3169_v50 = vadd.f32 %v3137_v51, %v3068_v43  ;;  %v2938_v55 = vmul.f32 %v7384_v48, %v2901_v62  ;;  %v3039_v57 = vmul.f32 %v7390_v52, %v7472_v26  ;;  %v3140_v51 = vmul.f32 %v7397_v34, %v7474_v4 }
 0x3a7   : > { %v3477_v33 = vadd.f32 %v3445_v46, %v3376_v13  ;;  %v3446_v46 = vmul.f32 %v7426_v2, %v7507_v9  ;;  %v3272_v17 = vadd.f32 %v7443_v36, %v3171_v30  ;;  %v3073_v8 = vadd.f32 %v3041_v16, %v2972_v28 }
 0x3a8   : > { %v2869_v61 = vadd.f32 %v2837_v0, %v2736_v21  ;;  %v3270_v13 = vadd.f32 %v3238_v10, %v3169_v50  ;;  %v3241_v16 = vmul.f32 %v7403_v5, %v7476_v45  ;;  %v3343_v10 = vmul.f32 %v7411_v14, %v7486_v39 }
 0x3a9   : > { %v3578_v25 = vadd.f32 %v3546_v54, %v3477_v33  ;;  %v3547_v54 = vmul.f32 %v7439_v18, %v7513_v38  ;;  %v3374_v1 = vadd.f32 %v7446_v35, %v3272_v17  ;;  %v3174_v36 = vadd.f32 %v3142_v44, %v3073_v8 }
 0x3aa   : > { %v2970_v47 = vadd.f32 %v2938_v55, %v2869_v61  ;;  %v3372_v33 = vadd.f32 %v7455_v32, %v3270_v13  ;;  %v2734_v43 = vmul.f32 %v7371_v40, %v2698_v19  ;;  %v2835_v30 = vmul.f32 %v7376_v29, %v2798_v20 }
 0x3ab   : > { %v3618_v22 = vsel %vm316_vm0, %v3578_v25, 0.0  ;;  %v3475_v28 = vadd.f32 %v7465_v59, %v3374_v1  ;;  %v3275_v21 = vadd.f32 %v3243_v58, %v3174_v36  ;;  %v2936_v35 = vmul.f32 %v7384_v48, %v2899_v23  ;;  %v7561_v23 = vld [vmem:[#allocation2 + $0x90] sm:$0xff] }
 0x3ac   : > { %3619 = vadd.xlane.f32.xlu2 %v3618_v22  ;;  %v3071_v0 = vadd.f32 %v3039_v57, %v2970_v47  ;;  %v3473_v44 = vadd.f32 %v7470_v7, %v3372_v33  ;;  %v3444_v25 = vmul.f32 %v7426_v2, %v7488_v31  ;;  %v2867_v50 = vadd.f32 %v2835_v30, %v2734_v43  ;;  %v7547_v7 = vld [vmem:[#allocation2 + $0x78] sm:$0xff] }
 0x3ad   : > { %v3037_v32 = vmul.f32 %v7390_v52, %v2700_v3  ;;  %v3576_v55 = vadd.f32 %v7481_v53, %v3475_v28  ;;  %v3377_v17 = vadd.f32 %v3345_v15, %v3275_v21  ;;  %v3545_v8 = vmul.f32 %v7439_v18, %v7496_v56  ;;  %v7552_v3 = vld [vmem:[#allocation2 + $0x79] sm:$0xff]  ;;  %v7571_v33 = vld [vmem:[#allocation2 + $0x91] sm:$0xff] }
 0x3ae   : > { %v3172_v19 = vadd.f32 %v3140_v51, %v3071_v0  ;;  %v3574_v59 = vadd.f32 %v3542_v37, %v3473_v44  ;;  %v2968_v58 = vadd.f32 %v2936_v35, %v2867_v50  ;;  %v3138_v61 = vmul.f32 %v7397_v34, %v2800_v24  ;;  %v7559_v51 = vld [vmem:[#allocation2 + $0x7a] sm:$0xff]  ;;  %v7573_v43 = vld [vmem:[#allocation2 + $0x92] sm:$0xff] }
 0x3af   : > { %v3239_v57 = vmul.f32 %v7403_v5, %v2901_v62  ;;  %v3612_v20 = vsel %vm316_vm0, %v3576_v55, 0.0  ;;  %v3478_v22 = vadd.f32 %v3446_v46, %v3377_v17  ;;  %v3341_v53 = vmul.f32 %v7411_v14, %v7472_v26 }
 0x3b0   : > { %v3273_v13 = vadd.f32 %v3241_v16, %v3172_v19  ;;  %3613 = vadd.xlane.f32.xlu1 %v3612_v20  ;;  %v3606_v15 = vsel %vm316_vm0, %v3574_v59, 0.0  ;;  %v3069_v37 = vadd.f32 %v3037_v32, %v2968_v58  ;;  %v2874_v24 = vadd.f32 %v7459_v11, %v7450_v6  ;;  %v7601_v20 = vld [vmem:[#allocation2 + $0x81] sm:$0xff] }
 0x3b1   : > { %v2943_v62 = vmul.f32 %v7384_v48, %v7434_v41  ;;  %3607 = vadd.xlane.f32.xlu0 %v3606_v15  ;;  %v3579_v46 = vadd.f32 %v3547_v54, %v3478_v22  ;;  %v3442_v26 = vmul.f32 %v7426_v2, %v7474_v4  ;;  %v3044_v36 = vmul.f32 %v7390_v52, %v7547_v7  ;;  %v7603_v22 = vld [vmem:[#allocation2 + $0x82] sm:$0xff] }
 0x3b2   : > { %v3375_v1 = vadd.f32 %v3343_v10, %v3273_v13  ;;  %v3170_v47 = vadd.f32 %v3138_v61, %v3069_v37  ;;  %v3543_v6 = vmul.f32 %v7439_v18, %v7476_v45  ;;  %v3145_v16 = vmul.f32 %v7397_v34, %v7552_v3 }
 0x3b3   : > { %v2975_v11 = vadd.f32 %v2943_v62, %v2874_v24  ;;  %v3621_v54 = vsel %vm316_vm0, %v3579_v46, 0.0  ;;  %v3246_v4 = vmul.f32 %v7403_v5, %v7559_v51  ;;  %v3348_v30 = vmul.f32 %v7411_v14, %v7561_v23 }
 0x3b4   : > { %v3476_v10 = vadd.f32 %v3444_v25, %v3375_v1  ;;  %3622 = vadd.xlane.f32.xlu2 %v3621_v54  ;;  %v3271_v28 = vadd.f32 %v3239_v57, %v3170_v47  ;;  %v2740_v21 = vmul.f32 %v7371_v40, %v7486_v39  ;;  %v2841_v0 = vmul.f32 %v7376_v29, %v7488_v31  ;;  %v7592_v39 = vld [vmem:[#allocation2 + $0x80] sm:$0xff] }
 0x3b5   : > { %v3076_v45 = vadd.f32 %v3044_v36, %v2975_v11  ;;  %v3449_v44 = vmul.f32 %v7426_v2, %v7571_v33  ;;  %v3550_v25 = vmul.f32 %v7439_v18, %v7573_v43  ;;  %v2942_v50 = vmul.f32 %v7384_v48, %v7496_v56  ;;  %v7616_v36 = vld [vmem:[#allocation2 + $0x98] sm:$0xff] }
 0x3b6   : > { %v3577_v35 = vadd.f32 %v3545_v8, %v3476_v10  ;;  %v3373_v32 = vadd.f32 %v3341_v53, %v3271_v28  ;;  %v2873_v17 = vadd.f32 %v2841_v0, %v2740_v21  ;;  %v3043_v19 = vmul.f32 %v7390_v52, %v7498_v12  ;;  %v7629_v54 = vld [vmem:[#allocation2 + $0x9a] sm:$0xff]  ;;  %v7631_v10 = vld [vmem:[#allocation2 + $0xb0] sm:$0xff] }
 0x3b7   : > { %v3177_v55 = vadd.f32 %v3145_v16, %v3076_v45  ;;  %v3144_v8 = vmul.f32 %v7397_v34, %v7507_v9  ;;  %v3245_v59 = vmul.f32 %v7403_v5, %v7513_v38  ;;  %v3347_v58 = vmul.f32 %v7411_v14, %v7592_v39 }
 0x3b8   : > { %v3615_v31 = vsel %vm316_vm0, %v3577_v35, 0.0  ;;  %v3474_v56 = vadd.f32 %v3442_v26, %v3373_v32  ;;  %v2974_v57 = vadd.f32 %v2942_v50, %v2873_v17  ;;  %v2872_v13 = vadd.f32 %v7418_v27, %v7415_v63 }
 0x3b9   : > { %3616 = vadd.xlane.f32.xlu1 %v3615_v31  ;;  %v3278_v61 = vadd.f32 %v3246_v4, %v3177_v55  ;;  %v3448_v53 = vmul.f32 %v7426_v2, %v7601_v20  ;;  %v3549_v15 = vmul.f32 %v7439_v18, %v7603_v22  ;;  %v3042_v37 = vmul.f32 %v7390_v52, %v7406_v42 }
 0x3ba   : > { %v3143_v24 = vmul.f32 %v7397_v34, %v7421_v49  ;;  %v3575_v62 = vadd.f32 %v3543_v6, %v3474_v56  ;;  %v3075_v1 = vadd.f32 %v3043_v19, %v2974_v57  ;;  %v2973_v26 = vadd.f32 %v7430_v60, %v2872_v13  ;;  %v7627_v60 = vld [vmem:[#allocation2 + $0x99] sm:$0xff] }
 0x3bb   : > { %v3380_v46 = vadd.f32 %v3348_v30, %v3278_v61  ;;  %v3244_v63 = vmul.f32 %v7403_v5, %v7434_v41  ;;  %v3346_v27 = vmul.f32 %v7411_v14, %v7547_v7  ;;  %v2744_v47 = vmul.f32 %v7371_v40, %v7592_v39  ;;  %v7649_v19 = vld [vmem:[#allocation2 + $0xb2] sm:$0xff] }
 0x3bc   : > { %v2845_v42 = vmul.f32 %v7376_v29, %v7601_v20  ;;  %v3609_v49 = vsel %vm316_vm0, %v3575_v62, 0.0  ;;  %v3176_v11 = vadd.f32 %v3144_v8, %v3075_v1  ;;  %v3074_v16 = vadd.f32 %v3042_v37, %v2973_v26 }
 0x3bd   : > { %v3481_v6 = vadd.f32 %v3449_v44, %v3380_v46  ;;  %3610 = vadd.xlane.f32.xlu0 %v3609_v49  ;;  %v3447_v41 = vmul.f32 %v7426_v2, %v7552_v3  ;;  %v2946_v30 = vmul.f32 %v7384_v48, %v7603_v22  ;;  %v3047_v28 = vmul.f32 %v7390_v52, %v7616_v36  ;;  %v7641_v44 = vld [vmem:[#allocation2 + $0xb1] sm:$0xff]  ;;  %v7674_v49 = vld [vmem:[#allocation2 + $0xa9] sm:$0xff] }
 0x3be   : > { %v2877_v4 = vadd.f32 %v2845_v42, %v2744_v47  ;;  %v3277_v21 = vadd.f32 %v3245_v59, %v3176_v11  ;;  %v3175_v0 = vadd.f32 %v3143_v24, %v3074_v16  ;;  %v3548_v35 = vmul.f32 %v7439_v18, %v7559_v51 }
 0x3bf   : > { %v3582_v45 = vadd.f32 %v3550_v25, %v3481_v6  ;;  %v3148_v32 = vmul.f32 %v7397_v34, %v7627_v60  ;;  %v3249_v55 = vmul.f32 %v7403_v5, %v7629_v54  ;;  %v3351_v17 = vmul.f32 %v7411_v14, %v7631_v10  ;;  %v7676_v6 = vld [vmem:[#allocation2 + $0xaa] sm:$0xff] }
 0x3c0   : > { %v2978_v50 = vadd.f32 %v2946_v30, %v2877_v4  ;;  %v3379_v31 = vadd.f32 %v3347_v58, %v3277_v21  ;;  %v3276_v8 = vadd.f32 %v3244_v63, %v3175_v0  ;;  %v2743_v59 = vmul.f32 %v7371_v40, %v7547_v7 }
 0x3c1   : > { %v3630_v25 = vsel %vm316_vm0, %v3582_v45, 0.0  ;;  %v3452_v61 = vmul.f32 %v7426_v2, %v7641_v44  ;;  %v2844_v57 = vmul.f32 %v7376_v29, %v7552_v3  ;;  %v2945_v13 = vmul.f32 %v7384_v48, %v7559_v51  ;;  %v7668_v3 = vld [vmem:[#allocation2 + $0xa8] sm:$0xff] }
 0x3c2   : > { %3631 = vadd.xlane.f32.xlu2 %v3630_v25  ;;  %v3079_v56 = vadd.f32 %v3047_v28, %v2978_v50  ;;  %v3480_v37 = vadd.f32 %v3448_v53, %v3379_v31  ;;  %v3378_v24 = vadd.f32 %v3346_v27, %v3276_v8  ;;  %v3553_v58 = vmul.f32 %v7439_v18, %v7649_v19  ;;  %v7696_v50 = vld [vmem:[#allocation2 + $0xc0] sm:$0xff] }
 0x3c3   : > { %v3046_v62 = vmul.f32 %v7390_v52, %v7561_v23  ;;  %v2876_v46 = vadd.f32 %v2844_v57, %v2743_v59  ;;  %v3147_v1 = vmul.f32 %v7397_v34, %v7571_v33  ;;  %v3248_v26 = vmul.f32 %v7403_v5, %v7573_v43  ;;  %v7700_v25 = vld [vmem:[#allocation2 + $0xc1] sm:$0xff] }
 0x3c4   : > { %v3180_v7 = vadd.f32 %v3148_v32, %v3079_v56  ;;  %v3581_v63 = vadd.f32 %v3549_v15, %v3480_v37  ;;  %v3479_v51 = vadd.f32 %v3447_v41, %v3378_v24  ;;  %v3350_v53 = vmul.f32 %v7411_v14, %v7668_v3  ;;  %v7702_v31 = vld [vmem:[#allocation2 + $0xc2] sm:$0xff]  ;;  %v7716_v24 = vld [vmem:[#allocation2 + $0xd9] sm:$0xff] }
 0x3c5   : > { %v2742_v27 = vmul.f32 %v7371_v40, %v7498_v12  ;;  %v2977_v42 = vadd.f32 %v2945_v13, %v2876_v46  ;;  %v2843_v11 = vmul.f32 %v7376_v29, %v7507_v9  ;;  %v2944_v16 = vmul.f32 %v7384_v48, %v7513_v38 }
 0x3c6   : > { %v3281_v47 = vadd.f32 %v3249_v55, %v3180_v7  ;;  %v3627_v15 = vsel %vm316_vm0, %v3581_v63, 0.0  ;;  %v3580_v41 = vadd.f32 %v3548_v35, %v3479_v51  ;;  %v3451_v4 = vmul.f32 %v7426_v2, %v7674_v49  ;;  %v7724_v63 = vld [vmem:[#allocation2 + $0xda] sm:$0xff] }
 0x3c7   : > { %v3552_v12 = vmul.f32 %v7439_v18, %v7676_v6  ;;  %3628 = vadd.xlane.f32.xlu1 %v3627_v15  ;;  %v3078_v28 = vadd.f32 %v3046_v62, %v2977_v42  ;;  %v2875_v45 = vadd.f32 %v2843_v11, %v2742_v27  ;;  %v3045_v21 = vmul.f32 %v7390_v52, %v7592_v39 }
 0x3c8   : > { %v3383_v30 = vadd.f32 %v3351_v17, %v3281_v47  ;;  %v3624_v9 = vsel %vm316_vm0, %v3580_v41, 0.0  ;;  %v3146_v38 = vmul.f32 %v7397_v34, %v7601_v20  ;;  %v3247_v0 = vmul.f32 %v7403_v5, %v7603_v22  ;;  %v7704_v20 = vld [vmem:[#allocation2 + $0xd8] sm:$0xff] }
 0x3c9   : > { %v3349_v35 = vmul.f32 %v7411_v14, %v7616_v36  ;;  %3625 = vadd.xlane.f32.xlu0 %v3624_v9  ;;  %v3179_v55 = vadd.f32 %v3147_v1, %v3078_v28  ;;  %v2976_v17 = vadd.f32 %v2944_v16, %v2875_v45  ;;  %v2747_v39 = vmul.f32 %v7371_v40, %v7668_v3 }
 0x3ca   : > { %v3484_v32 = vadd.f32 %v3452_v61, %v3383_v30  ;;  %v3450_v22 = vmul.f32 %v7426_v2, %v7627_v60  ;;  %v3551_v8 = vmul.f32 %v7439_v18, %v7629_v54  ;;  %v2848_v59 = vmul.f32 %v7376_v29, %v7674_v49 }
 0x3cb   : > { %v2949_v56 = vmul.f32 %v7384_v48, %v7676_v6  ;;  %v3280_v57 = vadd.f32 %v3248_v26, %v3179_v55  ;;  %v3077_v13 = vadd.f32 %v3045_v21, %v2976_v17  ;;  %v3050_v37 = vmul.f32 %v7390_v52, %v7696_v50  ;;  %v7749_v55 = vld [vmem:[#allocation2 + $0xc9] sm:$0xff] }
 0x3cc   : > { %v3585_v61 = vadd.f32 %v3553_v58, %v3484_v32  ;;  %v2880_v62 = vadd.f32 %v2848_v59, %v2747_v39  ;;  %v3151_v7 = vmul.f32 %v7397_v34, %v7700_v25  ;;  %v3252_v46 = vmul.f32 %v7403_v5, %v7702_v31  ;;  %v7751_v17 = vld [vmem:[#allocation2 + $0xca] sm:$0xff] }
 0x3cd   : > { %v3354_v1 = vmul.f32 %v7411_v14, %v7704_v20  ;;  %v3382_v26 = vadd.f32 %v3350_v53, %v3280_v57  ;;  %v3178_v51 = vadd.f32 %v3146_v38, %v3077_v13  ;;  %v2746_v27 = vmul.f32 %v7371_v40, %v7616_v36 }
 0x3ce   : > { %v3639_v58 = vsel %vm316_vm0, %v3585_v61, 0.0  ;;  %v2981_v47 = vadd.f32 %v2949_v56, %v2880_v62  ;;  %v3455_v42 = vmul.f32 %v7426_v2, %v7716_v24  ;;  %v2847_v11 = vmul.f32 %v7376_v29, %v7627_v60  ;;  %v7743_v60 = vld [vmem:[#allocation2 + $0xc8] sm:$0xff] }
 0x3cf   : > { %3640 = vadd.xlane.f32.xlu2 %v3639_v58  ;;  %v2948_v16 = vmul.f32 %v7384_v48, %v7629_v54  ;;  %v3483_v15 = vadd.f32 %v3451_v4, %v3382_v26  ;;  %v3279_v41 = vadd.f32 %v3247_v0, %v3178_v51  ;;  %v3556_v53 = vmul.f32 %v7439_v18, %v7724_v63  ;;  %v7772_v51 = vld [vmem:[#allocation2 + $0xe0] sm:$0xff] }
 0x3d0   : > { %v3049_v30 = vmul.f32 %v7390_v52, %v7631_v10  ;;  %v3082_v36 = vadd.f32 %v3050_v37, %v2981_v47  ;;  %v2879_v28 = vadd.f32 %v2847_v11, %v2746_v27  ;;  %v3150_v45 = vmul.f32 %v7397_v34, %v7641_v44  ;;  %v7774_v27 = vld [vmem:[#allocation2 + $0xe1] sm:$0xff]  ;;  %v7785_v47 = vld [vmem:[#allocation2 + $0xf8] sm:$0xff] }
 0x3d1   : > { %v3251_v21 = vmul.f32 %v7403_v5, %v7649_v19  ;;  %v3584_v9 = vadd.f32 %v3552_v12, %v3483_v15  ;;  %v3381_v54 = vadd.f32 %v3349_v35, %v3279_v41  ;;  %v3353_v4 = vmul.f32 %v7411_v14, %v7743_v60 }
 0x3d2   : > { %v2745_v38 = vmul.f32 %v7371_v40, %v7561_v23  ;;  %v3183_v0 = vadd.f32 %v3151_v7, %v3082_v36  ;;  %v2980_v32 = vadd.f32 %v2948_v16, %v2879_v28  ;;  %v2846_v39 = vmul.f32 %v7376_v29, %v7571_v33 }
 0x3d3   : > { %v2947_v59 = vmul.f32 %v7384_v48, %v7573_v43  ;;  %v3636_v12 = vsel %vm316_vm0, %v3584_v9, 0.0  ;;  %v3482_v35 = vadd.f32 %v3450_v22, %v3381_v54  ;;  %v3454_v56 = vmul.f32 %v7426_v2, %v7749_v55  ;;  %v7795_v9 = vld [vmem:[#allocation2 + $0xf9] sm:$0xff] }
 0x3d4   : > { %v3555_v23 = vmul.f32 %v7439_v18, %v7751_v17  ;;  %3637 = vadd.xlane.f32.xlu1 %v3636_v12  ;;  %v3284_v61 = vadd.f32 %v3252_v46, %v3183_v0  ;;  %v3081_v57 = vadd.f32 %v3049_v30, %v2980_v32  ;;  %v2878_v13 = vadd.f32 %v2846_v39, %v2745_v38  ;;  %v7799_v0 = vld [vmem:[#allocation2 + $0xfa] sm:$0xff] }
 0x3d5   : > { %v3048_v37 = vmul.f32 %v7390_v52, %v7668_v3  ;;  %v3583_v33 = vadd.f32 %v3551_v8, %v3482_v35  ;;  %v3149_v43 = vmul.f32 %v7397_v34, %v7674_v49  ;;  %v3250_v22 = vmul.f32 %v7403_v5, %v7676_v6  ;;  %v7776_v3 = vld [vmem:[#allocation2 + $0xe2] sm:$0xff] }
 0x3d6   : > { %v3352_v62 = vmul.f32 %v7411_v14, %v7696_v50  ;;  %v3386_v7 = vadd.f32 %v3354_v1, %v3284_v61  ;;  %v3182_v58 = vadd.f32 %v3150_v45, %v3081_v57  ;;  %v2979_v26 = vadd.f32 %v2947_v59, %v2878_v13 }
 0x3d7   : > { %v2750_v46 = vmul.f32 %v7371_v40, %v7743_v60  ;;  %v3633_v49 = vsel %vm316_vm0, %v3583_v33, 0.0  ;;  %v3453_v6 = vmul.f32 %v7426_v2, %v7700_v25  ;;  %v2851_v8 = vmul.f32 %v7376_v29, %v7749_v55 }
 0x3d8   : > { %v2952_v1 = vmul.f32 %v7384_v48, %v7751_v17  ;;  %3634 = vadd.xlane.f32.xlu0 %v3633_v49  ;;  %v3487_v11 = vadd.f32 %v3455_v42, %v3386_v7  ;;  %v3283_v16 = vadd.f32 %v3251_v21, %v3182_v58  ;;  %v3080_v15 = vadd.f32 %v3048_v37, %v2979_v26  ;;  %v7827_v49 = vld [vmem:[#allocation2 + $0xf2] sm:$0xff] }
 0x3d9   : > { %v3554_v41 = vmul.f32 %v7439_v18, %v7702_v31  ;;  %v2883_v30 = vadd.f32 %v2851_v8, %v2750_v46  ;;  %v3053_v36 = vmul.f32 %v7390_v52, %v7772_v51  ;;  %v3154_v28 = vmul.f32 %v7397_v34, %v7774_v27 }
 0x3da   : > { %v3255_v45 = vmul.f32 %v7403_v5, %v7776_v3  ;;  %v3588_v54 = vadd.f32 %v3556_v53, %v3487_v11  ;;  %v3385_v38 = vadd.f32 %v3353_v4, %v3283_v16  ;;  %v3181_v42 = vadd.f32 %v3149_v43, %v3080_v15  ;;  %v7818_v43 = vld [vmem:[#allocation2 + $0xf0] sm:$0xff] }
 0x3db   : > { %v3357_v21 = vmul.f32 %v7411_v14, %v7785_v47  ;;  %v2984_v32 = vadd.f32 %v2952_v1, %v2883_v30  ;;  %v2749_v39 = vmul.f32 %v7371_v40, %v7696_v50  ;;  %v2850_v59 = vmul.f32 %v7376_v29, %v7700_v25 }
 0x3dc   : > { %v2951_v12 = vmul.f32 %v7384_v48, %v7702_v31  ;;  %v3648_v35 = vsel %vm316_vm0, %v3588_v54, 0.0  ;;  %v3486_v53 = vadd.f32 %v3454_v56, %v3385_v38  ;;  %v3282_v4 = vadd.f32 %v3250_v22, %v3181_v42  ;;  %v7845_v38 = vld [vmem:[#allocation2 + $0x108] sm:$0xff] }
 0x3dd   : > { %v3458_v61 = vmul.f32 %v7426_v2, %v7795_v9  ;;  %3649 = vadd.xlane.f32.xlu2 %v3648_v35  ;;  %v3085_v57 = vadd.f32 %v3053_v36, %v2984_v32  ;;  %v3559_v13 = vmul.f32 %v7439_v18, %v7799_v0  ;;  %v2882_v37 = vadd.f32 %v2850_v59, %v2749_v39  ;;  %v7860_v35 = vld [vmem:[#allocation2 + $0x120] sm:$0xff] }
 0x3de   : > { %v3052_v50 = vmul.f32 %v7390_v52, %v7704_v20  ;;  %v3587_v25 = vadd.f32 %v3555_v23, %v3486_v53  ;;  %v3384_v33 = vadd.f32 %v3352_v62, %v3282_v4  ;;  %v3153_v31 = vmul.f32 %v7397_v34, %v7716_v24  ;;  %v7825_v62 = vld [vmem:[#allocation2 + $0xf1] sm:$0xff] }
 0x3df   : > { %v3254_v56 = vmul.f32 %v7403_v5, %v7724_v63  ;;  %v3186_v22 = vadd.f32 %v3154_v28, %v3085_v57  ;;  %v2983_v7 = vadd.f32 %v2951_v12, %v2882_v37  ;;  %v3356_v58 = vmul.f32 %v7411_v14, %v7818_v43 }
 0x3e0   : > { %v2748_v26 = vmul.f32 %v7371_v40, %v7631_v10  ;;  %v3645_v46 = vsel %vm316_vm0, %v3587_v25, 0.0  ;;  %v3485_v23 = vadd.f32 %v3453_v6, %v3384_v33  ;;  %v2849_v8 = vmul.f32 %v7376_v29, %v7641_v44 }
 0x3e1   : > { %v2950_v1 = vmul.f32 %v7384_v48, %v7649_v19  ;;  %3646 = vadd.xlane.f32.xlu1 %v3645_v46  ;;  %v3287_v11 = vadd.f32 %v3255_v45, %v3186_v22  ;;  %v3084_v16 = vadd.f32 %v3052_v50, %v2983_v7  ;;  %v3457_v15 = vmul.f32 %v7426_v2, %v7825_v62 }
 0x3e2   : > { %v3558_v10 = vmul.f32 %v7439_v18, %v7827_v49  ;;  %v3586_v6 = vadd.f32 %v3554_v41, %v3485_v23  ;;  %v2881_v30 = vadd.f32 %v2849_v8, %v2748_v26  ;;  %v3051_v36 = vmul.f32 %v7390_v52, %v7743_v60 }
 0x3e3   : > { %v3152_v44 = vmul.f32 %v7397_v34, %v7749_v55  ;;  %v3389_v28 = vadd.f32 %v3357_v21, %v3287_v11  ;;  %v3185_v54 = vadd.f32 %v3153_v31, %v3084_v16  ;;  %v3253_v19 = vmul.f32 %v7403_v5, %v7751_v17  ;;  %v7852_v55 = vld [vmem:[#allocation2 + $0x109] sm:$0xff]  ;;  %v7870_v31 = vld [vmem:[#allocation2 + $0x121] sm:$0xff] }
 0x3e4   : > { %v3355_v45 = vmul.f32 %v7411_v14, %v7772_v51  ;;  %v3642_v42 = vsel %vm316_vm0, %v3586_v6, 0.0  ;;  %v2982_v41 = vadd.f32 %v2950_v1, %v2881_v30  ;;  %v2753_v32 = vmul.f32 %v7371_v40, %v7818_v43  ;;  %v7854_v21 = vld [vmem:[#allocation2 + $0x10a] sm:$0xff] }
 0x3e5   : > { %v2854_v60 = vmul.f32 %v7376_v29, %v7825_v62  ;;  %3643 = vadd.xlane.f32.xlu0 %v3642_v42  ;;  %v3490_v17 = vadd.f32 %v3458_v61, %v3389_v28  ;;  %v3286_v39 = vadd.f32 %v3254_v56, %v3185_v54  ;;  %v3456_v59 = vmul.f32 %v7426_v2, %v7774_v27  ;;  %v7872_v56 = vld [vmem:[#allocation2 + $0x122] sm:$0xff]  ;;  %v7898_v42 = vld [vmem:[#allocation2 + $0x111] sm:$0xff] }
 0x3e6   : > { %v2955_v12 = vmul.f32 %v7384_v48, %v7827_v49  ;;  %v3083_v53 = vadd.f32 %v3051_v36, %v2982_v41  ;;  %v3557_v4 = vmul.f32 %v7439_v18, %v7776_v3  ;;  %v3056_v37 = vmul.f32 %v7390_v52, %v7845_v38  ;;  %v7891_v36 = vld [vmem:[#allocation2 + $0x110] sm:$0xff] }
 0x3e7   : > { %v2886_v57 = vadd.f32 %v2854_v60, %v2753_v32  ;;  %v3591_v50 = vadd.f32 %v3559_v13, %v3490_v17  ;;  %v3388_v25 = vadd.f32 %v3356_v58, %v3286_v39  ;;  %v3157_v61 = vmul.f32 %v7397_v34, %v7852_v55  ;;  %v7906_v39 = vld [vmem:[#allocation2 + $0x112] sm:$0xff] }
 0x3e8   : > { %v3258_v33 = vmul.f32 %v7403_v5, %v7854_v21  ;;  %v3184_v22 = vadd.f32 %v3152_v44, %v3083_v53  ;;  %v3360_v26 = vmul.f32 %v7411_v14, %v7860_v35  ;;  %v2752_v46 = vmul.f32 %v7371_v40, %v7772_v51 }
 0x3e9   : > { %v2987_v7 = vadd.f32 %v2955_v12, %v2886_v57  ;;  %v3657_v13 = vsel %vm316_vm0, %v3591_v50, 0.0  ;;  %v3489_v58 = vadd.f32 %v3457_v15, %v3388_v25  ;;  %v2853_v23 = vmul.f32 %v7376_v29, %v7774_v27 }
 0x3ea   : > { %v2954_v8 = vmul.f32 %v7384_v48, %v7776_v3  ;;  %3658 = vadd.xlane.f32.xlu2 %v3657_v13  ;;  %v3285_v1 = vadd.f32 %v3253_v19, %v3184_v22  ;;  %v3461_v16 = vmul.f32 %v7426_v2, %v7870_v31  ;;  %v3562_v6 = vmul.f32 %v7439_v18, %v7872_v56  ;;  %v7933_v13 = vld [vmem:[#allocation2 + $0x140] sm:$0xff] }
 0x3eb   : > { %v3088_v11 = vadd.f32 %v3056_v37, %v2987_v7  ;;  %v3590_v30 = vadd.f32 %v3558_v10, %v3489_v58  ;;  %v2885_v51 = vadd.f32 %v2853_v23, %v2752_v46  ;;  %v3055_v15 = vmul.f32 %v7390_v52, %v7785_v47  ;;  %v7922_v7 = vld [vmem:[#allocation2 + $0x128] sm:$0xff] }
 0x3ec   : > { %v3156_v27 = vmul.f32 %v7397_v34, %v7795_v9  ;;  %v3387_v3 = vadd.f32 %v3355_v45, %v3285_v1  ;;  %v3257_v28 = vmul.f32 %v7403_v5, %v7799_v0  ;;  %v3359_v54 = vmul.f32 %v7411_v14, %v7891_v36  ;;  %v7924_v46 = vld [vmem:[#allocation2 + $0x129] sm:$0xff] }
 0x3ed   : > { %v3189_v44 = vadd.f32 %v3157_v61, %v3088_v11  ;;  %v3654_v19 = vsel %vm316_vm0, %v3590_v30, 0.0  ;;  %v2986_v10 = vadd.f32 %v2954_v8, %v2885_v51  ;;  %v2751_v41 = vmul.f32 %v7371_v40, %v7704_v20 }
 0x3ee   : > { %v2852_v32 = vmul.f32 %v7376_v29, %v7716_v24  ;;  %3655 = vadd.xlane.f32.xlu1 %v3654_v19  ;;  %v3488_v45 = vadd.f32 %v3456_v59, %v3387_v3  ;;  %v3460_v17 = vmul.f32 %v7426_v2, %v7898_v42  ;;  %v2953_v12 = vmul.f32 %v7384_v48, %v7724_v63  ;;  %v7949_v19 = vld [vmem:[#allocation2 + $0x142] sm:$0xff] }
 0x3ef   : > { %v3290_v60 = vadd.f32 %v3258_v33, %v3189_v44  ;;  %v3087_v53 = vadd.f32 %v3055_v15, %v2986_v10  ;;  %v3561_v57 = vmul.f32 %v7439_v18, %v7906_v39  ;;  %v3054_v20 = vmul.f32 %v7390_v52, %v7818_v43  ;;  %v7943_v15 = vld [vmem:[#allocation2 + $0x141] sm:$0xff] }
 0x3f0   : > { %v2884_v37 = vadd.f32 %v2852_v32, %v2751_v41  ;;  %v3589_v24 = vadd.f32 %v3557_v4, %v3488_v45  ;;  %v3155_v59 = vmul.f32 %v7397_v34, %v7825_v62  ;;  %v3256_v25 = vmul.f32 %v7403_v5, %v7827_v49 }
 0x3f1   : > { %v3392_v50 = vadd.f32 %v3360_v26, %v3290_v60  ;;  %v3188_v61 = vadd.f32 %v3156_v27, %v3087_v53  ;;  %v3358_v63 = vmul.f32 %v7411_v14, %v7845_v38  ;;  %v2756_v22 = vmul.f32 %v7371_v40, %v7891_v36  ;;  %v7931_v26 = vld [vmem:[#allocation2 + $0x12a] sm:$0xff] }
 0x3f2   : > { %v2985_v33 = vadd.f32 %v2953_v12, %v2884_v37  ;;  %v3651_v43 = vsel %vm316_vm0, %v3589_v24, 0.0  ;;  %v2857_v62 = vmul.f32 %v7376_v29, %v7898_v42  ;;  %v2958_v49 = vmul.f32 %v7384_v48, %v7906_v39 }
 0x3f3   : > { %v3493_v4 = vadd.f32 %v3461_v16, %v3392_v50  ;;  %3652 = vadd.xlane.f32.xlu0 %v3651_v43  ;;  %v3289_v58 = vadd.f32 %v3257_v28, %v3188_v61  ;;  %v3459_v8 = vmul.f32 %v7426_v2, %v7852_v55  ;;  %v3560_v1 = vmul.f32 %v7439_v18, %v7854_v21  ;;  %v7987_v61 = vld [vmem:[%s9337_s4 + $0x1] ss:$0 sm:$0xff] }
 0x3f4   : > { %v3086_v23 = vadd.f32 %v3054_v20, %v2985_v33  ;;  %v2889_v16 = vadd.f32 %v2857_v62, %v2756_v22  ;;  %v3059_v30 = vmul.f32 %v7390_v52, %v7922_v7  ;;  %v3160_v51 = vmul.f32 %v7397_v34, %v7924_v46  ;;  %v7994_v33 = vld [vmem:[%s9337_s4 + $0x2] ss:$0 sm:$0xff] }
 0x3f5   : > { %v3594_v11 = vadd.f32 %v3562_v6, %v3493_v4  ;;  %v3391_v27 = vadd.f32 %v3359_v54, %v3289_v58  ;;  %v3261_v44 = vmul.f32 %v7403_v5, %v7931_v26  ;;  %v3363_v28 = vmul.f32 %v7411_v14, %v7933_v13 }
 0x3f6   : > { %v3187_v3 = vadd.f32 %v3155_v59, %v3086_v23  ;;  %v2990_v10 = vadd.f32 %v2958_v49, %v2889_v16  ;;  %v2755_v41 = vmul.f32 %v7371_v40, %v7845_v38  ;;  %v2856_v32 = vmul.f32 %v7376_v29, %v7852_v55  ;;  %v7975_v59 = vld [vmem:[%s9337_s4] ss:$0 sm:$0xff]  ;;  %v8030_v16 = vld [vmem:[#allocation2 + $0x150] sm:$0xff] }
 0x3f7   : > { %v3666_v6 = vsel %vm316_vm0, %v3594_v11, 0.0  ;;  %v3492_v54 = vadd.f32 %v3460_v17, %v3391_v27  ;;  %v3464_v60 = vmul.f32 %v7426_v2, %v7943_v15  ;;  %v2957_v12 = vmul.f32 %v7384_v48, %v7854_v21  ;;  %v7968_v17 = vld [vmem:[#allocation2 + $0x138] sm:$0xff] }
 0x3f8   : > { %3667 = vadd.xlane.f32.xlu2 %v3666_v6  ;;  %v3288_v45 = vadd.f32 %v3256_v25, %v3187_v3  ;;  %v3091_v53 = vadd.f32 %v3059_v30, %v2990_v10  ;;  %v3565_v37 = vmul.f32 %v7439_v18, %v7949_v19  ;;  %v2888_v20 = vadd.f32 %v2856_v32, %v2755_v41  ;;  %v7980_v25 = vld [vmem:[#allocation2 + $0x139] sm:$0xff]  ;;  %v8044_v6 = vld [vmem:[%s9337_s4 + $0x7] ss:$0 sm:$0xff]  ;;  %v8050_v32 = vld [vmem:[#allocation2 + $0x168] sm:$0xff] }
 0x3f9   : > { %v3058_v40 = vmul.f32 %v7390_v52, %v7860_v35  ;;  %v3593_v38 = vadd.f32 %v3561_v57, %v3492_v54  ;;  %v3159_v29 = vmul.f32 %v7397_v34, %v7870_v31  ;;  %v3260_v55 = vmul.f32 %v7403_v5, %v7872_v56  ;;  %v7982_v5 = vld [vmem:[#allocation2 + $0x13a] sm:$0xff]  ;;  %v8039_v3 = vld [vmem:[#allocation2 + $0x152] sm:$0xff] }
 0x3fa   : > { %v3390_v24 = vadd.f32 %v3358_v63, %v3288_v45  ;;  %v3192_v50 = vadd.f32 %v3160_v51, %v3091_v53  ;;  %v2989_v48 = vadd.f32 %v2957_v12, %v2888_v20  ;;  %v3362_v21 = vmul.f32 %v7411_v14, %v7968_v17  ;;  %v8055_v45 = vld [vmem:[%s9337_s4 + $0x8] ss:$0 sm:$0xff] }
 0x3fb   : > { %v2754_v52 = vmul.f32 %v7975_v59, %v7785_v47  ;;  %v3663_v34 = vsel %vm316_vm0, %v3593_v38, 0.0  ;;  %v2855_v14 = vmul.f32 %v7987_v61, %v7795_v9  ;;  %v2956_v47 = vmul.f32 %v7994_v33, %v7799_v0  ;;  %v8005_v9 = vld [vmem:[%s9337_s4 + $0x3] ss:$0 sm:$0xff]  ;;  %v8012_v0 = vld [vmem:[%s9337_s4 + $0x4] ss:$0 sm:$0xff] }
 0x3fc   : > { %v3491_v57 = vadd.f32 %v3459_v8, %v3390_v24  ;;  %3664 = vadd.xlane.f32.xlu1 %v3663_v34  ;;  %v3293_v63 = vadd.f32 %v3261_v44, %v3192_v50  ;;  %v3090_v22 = vadd.f32 %v3058_v40, %v2989_v48  ;;  %v3463_v43 = vmul.f32 %v7426_v2, %v7980_v25  ;;  %v8019_v8 = vld [vmem:[%s9337_s4 + $0x5] ss:$0 sm:$0xff] }
 0x3fd   : > { %v3564_v4 = vmul.f32 %v7439_v18, %v7982_v5  ;;  %v2887_v49 = vadd.f32 %v2855_v14, %v2754_v52  ;;  %v3057_v58 = vmul.f32 %v8005_v9, %v7891_v36  ;;  %v3158_v2 = vmul.f32 %v8012_v0, %v7898_v42  ;;  %v8026_v36 = vld [vmem:[%s9337_s4 + $0x6] ss:$0 sm:$0xff] }
 0x3fe   : > { %v3592_v62 = vadd.f32 %v3560_v1, %v3491_v57  ;;  %v3395_v23 = vadd.f32 %v3363_v28, %v3293_v63  ;;  %v3191_v18 = vadd.f32 %v3159_v29, %v3090_v22  ;;  %v3259_v1 = vmul.f32 %v8019_v8, %v7906_v39  ;;  %v8037_v39 = vld [vmem:[#allocation2 + $0x151] sm:$0xff]  ;;  %v8065_v29 = vld [vmem:[#allocation2 + $0x169] sm:$0xff] }
 0x3ff   : > { %v3361_v11 = vmul.f32 %v8026_v36, %v7922_v7  ;;  %v2988_v30 = vadd.f32 %v2956_v47, %v2887_v49  ;;  %v2759_v51 = vmul.f32 %v7975_v59, %v7968_v17  ;;  %v2860_v27 = vmul.f32 %v7987_v61, %v7980_v25 }
 0x400   : > { %v3660_v42 = vsel %vm316_vm0, %v3592_v62, 0.0  ;;  %v3496_v44 = vadd.f32 %v3464_v60, %v3395_v23  ;;  %v3292_v28 = vadd.f32 %v3260_v55, %v3191_v18  ;;  %v3462_v10 = vmul.f32 %v8044_v6, %v7924_v46  ;;  %v8067_v55 = vld [vmem:[#allocation2 + $0x16a] sm:$0xff] }
 0x401   : > { %3661 = vadd.xlane.f32.xlu0 %v3660_v42  ;;  %v2961_v41 = vmul.f32 %v7994_v33, %v7982_v5  ;;  %v3089_v54 = vadd.f32 %v3057_v58, %v2988_v30  ;;  %v3563_v60 = vmul.f32 %v8055_v45, %v7931_v26  ;;  %v2892_v12 = vadd.f32 %v2860_v27, %v2759_v51  ;;  %v8086_v58 = vld [vmem:[#allocation2 + $0x158] sm:$0xff] }
 0x402   : > { %v3062_v53 = vmul.f32 %v8005_v9, %v8030_v16  ;;  %v3597_v20 = vadd.f32 %v3565_v37, %v3496_v44  ;;  %v3394_v40 = vadd.f32 %v3362_v21, %v3292_v28  ;;  %v3163_v38 = vmul.f32 %v8012_v0, %v8037_v39  ;;  %v8093_v42 = vld [vmem:[#allocation2 + $0x159] sm:$0xff] }
 0x403   : > { %v3264_v24 = vmul.f32 %v8019_v8, %v8039_v3  ;;  %v3190_v50 = vadd.f32 %v3158_v2, %v3089_v54  ;;  %v2993_v48 = vadd.f32 %v2961_v41, %v2892_v12  ;;  %v3366_v52 = vmul.f32 %v8026_v36, %v8050_v32  ;;  %v8101_v28 = vld [vmem:[#allocation2 + $0x15a] sm:$0xff] }
 0x404   : > { %v2758_v34 = vmul.f32 %v7975_v59, %v7922_v7  ;;  %v3675_v37 = vsel %vm316_vm0, %v3597_v20, 0.0  ;;  %v3495_v21 = vadd.f32 %v3463_v43, %v3394_v40  ;;  %v2859_v57 = vmul.f32 %v7987_v61, %v7924_v46 }
 0x405   : > { %v2960_v14 = vmul.f32 %v7994_v33, %v7931_v26  ;;  %3676 = vadd.xlane.f32.xlu2 %v3675_v37  ;;  %v3291_v47 = vadd.f32 %v3259_v1, %v3190_v50  ;;  %v3094_v63 = vadd.f32 %v3062_v53, %v2993_v48  ;;  %v3467_v22 = vmul.f32 %v8044_v6, %v8065_v29  ;;  %v8117_v48 = vld [vmem:[#allocation2 + $0x170] sm:$0xff]  ;;  %v8128_v37 = vld [vmem:[#allocation2 + $0x188] sm:$0xff] }
 0x406   : > { %v3568_v62 = vmul.f32 %v8055_v45, %v8067_v55  ;;  %v3596_v49 = vadd.f32 %v3564_v4, %v3495_v21  ;;  %v2891_v7 = vadd.f32 %v2859_v57, %v2758_v34  ;;  %v3061_v43 = vmul.f32 %v8005_v9, %v7933_v13  ;;  %v8119_v34 = vld [vmem:[#allocation2 + $0x171] sm:$0xff] }
 0x407   : > { %v3162_v46 = vmul.f32 %v8012_v0, %v7943_v15  ;;  %v3393_v26 = vadd.f32 %v3361_v11, %v3291_v47  ;;  %v3195_v2 = vadd.f32 %v3163_v38, %v3094_v63  ;;  %v3263_v23 = vmul.f32 %v8019_v8, %v7949_v19 }
 0x408   : > { %v3365_v18 = vmul.f32 %v8026_v36, %v8086_v58  ;;  %v3672_v1 = vsel %vm316_vm0, %v3596_v49, 0.0  ;;  %v2992_v4 = vadd.f32 %v2960_v14, %v2891_v7  ;;  %v2757_v30 = vmul.f32 %v7975_v59, %v7860_v35 }
 0x409   : > { %v2858_v51 = vmul.f32 %v7987_v61, %v7870_v31  ;;  %3673 = vadd.xlane.f32.xlu1 %v3672_v1  ;;  %v3494_v11 = vadd.f32 %v3462_v10, %v3393_v26  ;;  %v3296_v27 = vadd.f32 %v3264_v24, %v3195_v2  ;;  %v3466_v44 = vmul.f32 %v8044_v6, %v8093_v42  ;;  %v8144_v1 = vld [vmem:[#allocation2 + $0x18a] sm:$0xff] }
 0x40a   : > { %v2959_v41 = vmul.f32 %v7994_v33, %v7872_v56  ;;  %v3093_v54 = vadd.f32 %v3061_v43, %v2992_v4  ;;  %v3567_v12 = vmul.f32 %v8055_v45, %v8101_v28  ;;  %v3060_v35 = vmul.f32 %v8005_v9, %v7968_v17  ;;  %v8138_v43 = vld [vmem:[#allocation2 + $0x189] sm:$0xff] }
 0x40b   : > { %v2890_v53 = vadd.f32 %v2858_v51, %v2757_v30  ;;  %v3595_v31 = vadd.f32 %v3563_v60, %v3494_v11  ;;  %v3398_v20 = vadd.f32 %v3366_v52, %v3296_v27  ;;  %v3161_v10 = vmul.f32 %v8012_v0, %v7980_v25  ;;  %v8126_v52 = vld [vmem:[#allocation2 + $0x172] sm:$0xff] }
 0x40c   : > { %v3262_v40 = vmul.f32 %v8019_v8, %v7982_v5  ;;  %v3194_v38 = vadd.f32 %v3162_v46, %v3093_v54  ;;  %v3364_v56 = vmul.f32 %v8026_v36, %v8030_v16  ;;  %v2762_v50 = vmul.f32 %v7975_v59, %v8086_v58  ;;  %v8155_v54 = vld [vmem:[#allocation2 + $0x180] sm:$0xff] }
 0x40d   : > { %v2991_v24 = vadd.f32 %v2959_v41, %v2890_v53  ;;  %v3669_v17 = vsel %vm316_vm0, %v3595_v31, 0.0  ;;  %v3499_v60 = vadd.f32 %v3467_v22, %v3398_v20  ;;  %v2863_v25 = vmul.f32 %v7987_v61, %v8093_v42 }
 0x40e   : > { %v2964_v5 = vmul.f32 %v7994_v33, %v8101_v28  ;;  %3670 = vadd.xlane.f32.xlu0 %v3669_v17  ;;  %v3295_v21 = vadd.f32 %v3263_v23, %v3194_v38  ;;  %v3465_v14 = vmul.f32 %v8044_v6, %v8037_v39  ;;  %v3566_v47 = vmul.f32 %v8055_v45, %v8039_v3 }
 0x40f   : > { %v3092_v57 = vadd.f32 %v3060_v35, %v2991_v24  ;;  %v3600_v63 = vadd.f32 %v3568_v62, %v3499_v60  ;;  %v2895_v22 = vadd.f32 %v2863_v25, %v2762_v50  ;;  %v3065_v49 = vmul.f32 %v8005_v9, %v8117_v48 }
 0x410   : > { %v3166_v7 = vmul.f32 %v8012_v0, %v8119_v34  ;;  %v3397_v46 = vadd.f32 %v3365_v18, %v3295_v21  ;;  %v3267_v2 = vmul.f32 %v8019_v8, %v8126_v52  ;;  %v3369_v23 = vmul.f32 %v8026_v36, %v8128_v37  ;;  %v8186_v21 = vld [vmem:[%s9337_s4 + $0xa] ss:$0 sm:$0xff] }
 0x411   : > { %v3193_v26 = vadd.f32 %v3161_v10, %v3092_v57  ;;  %v3684_v62 = vsel %vm316_vm0, %v3600_v63, 0.0  ;;  %v2996_v4 = vadd.f32 %v2964_v5, %v2895_v22  ;;  %v2761_v30 = vmul.f32 %v7975_v59, %v8030_v16  ;;  %v8181_v5 = vld [vmem:[%s9337_s4 + $0x9] ss:$0 sm:$0xff]  ;;  %v3980_v63 = vld [vmem:[#allocation2 + $0x361] sm:$0xff]  ;;  %v8195_v22 = vld [vmem:[%s9337_s4 + $0xb] ss:$0 sm:$0xff] }
 0x412   : > { %v2862_v51 = vmul.f32 %v7987_v61, %v8037_v39  ;;  %3685 = vadd.xlane.f32.xlu2 %v3684_v62  ;;  %v3498_v18 = vadd.f32 %v3466_v44, %v3397_v46  ;;  %v3470_v27 = vmul.f32 %v8044_v6, %v8138_v43  ;;  %v2963_v41 = vmul.f32 %v7994_v33, %v8039_v3  ;;  %v8167_v3 = vld [vmem:[#allocation2 + $0x182] sm:$0xff]  ;;  %v8204_v62 = vld [vmem:[%s9337_s4 + $0xc] ss:$0 sm:$0xff] }
 0x413   : > { %v3294_v11 = vadd.f32 %v3262_v40, %v3193_v26  ;;  %v3097_v53 = vadd.f32 %v3065_v49, %v2996_v4  ;;  %v3571_v35 = vmul.f32 %v8055_v45, %v8144_v1  ;;  %v3064_v16 = vmul.f32 %v8005_v9, %v8050_v32  ;;  %v8165_v40 = vld [vmem:[#allocation2 + $0x181] sm:$0xff] }
 0x414   : > { %v2894_v31 = vadd.f32 %v2862_v51, %v2761_v30  ;;  %v3599_v39 = vadd.f32 %v3567_v12, %v3498_v18  ;;  %v3165_v44 = vmul.f32 %v8012_v0, %v8065_v29  ;;  %v3266_v10 = vmul.f32 %v8019_v8, %v8067_v55  ;;  %v8210_v18 = vld [vmem:[#allocation2 + $0x378] sm:$0xff] }
 0x415   : > { %v3396_v20 = vadd.f32 %v3364_v56, %v3294_v11  ;;  %v3198_v38 = vadd.f32 %v3166_v7, %v3097_v53  ;;  %v3368_v50 = vmul.f32 %v8026_v36, %v8155_v54  ;;  %v2760_v17 = vmul.f32 %v7975_v59, %v7933_v13  ;;  %v8225_v53 = vld [vmem:[#allocation2 + $0x379] sm:$0xff] }
 0x416   : > { %v2995_v24 = vadd.f32 %v2963_v41, %v2894_v31  ;;  %v3681_v12 = vsel %vm316_vm0, %v3599_v39, 0.0  ;;  %v2861_v60 = vmul.f32 %v7987_v61, %v7943_v15  ;;  %v2962_v25 = vmul.f32 %v7994_v33, %v7949_v19  ;;  %v3879_v19 = vld [vmem:[#allocation2 + $0x360] sm:$0xff] }
 0x417   : > { %v3497_v56 = vadd.f32 %v3465_v14, %v3396_v20  ;;  %3682 = vadd.xlane.f32.xlu1 %v3681_v12  ;;  %v3299_v13 = vadd.f32 %v3267_v2, %v3198_v38  ;;  %v3469_v14 = vmul.f32 %v8044_v6, %v8165_v40  ;;  %v3570_v15 = vmul.f32 %v8055_v45, %v8167_v3  ;;  %v4081_v2 = vld [vmem:[#allocation2 + $0x362] sm:$0xff]  ;;  %v8227_v31 = vld [vmem:[#allocation2 + $0x37a] sm:$0xff] }
 0x418   : > { %v3096_v57 = vadd.f32 %v3064_v16, %v2995_v24  ;;  %v2893_v7 = vadd.f32 %v2861_v60, %v2760_v17  ;;  %v3063_v46 = vmul.f32 %v8005_v9, %v8086_v58  ;;  %v3164_v26 = vmul.f32 %v8012_v0, %v8093_v42  ;;  %v8215_v58 = vld [vmem:[%s9337_s4 + $0xd] ss:$0 sm:$0xff]  ;;  %v8220_v42 = vld [vmem:[%s9337_s4 + $0xe] ss:$0 sm:$0xff]  ;;  %v8232_v16 = vld [vmem:[%s9337_s4 + $0xf] ss:$0 sm:$0xff] }
 0x419   : > { %v3598_v49 = vadd.f32 %v3566_v47, %v3497_v56  ;;  %v3401_v4 = vadd.f32 %v3369_v23, %v3299_v13  ;;  %v3265_v51 = vmul.f32 %v8019_v8, %v8101_v28  ;;  %v3367_v47 = vmul.f32 %v8026_v36, %v8117_v48  ;;  %v8237_v24 = vld [vmem:[#allocation2 + $0x390] sm:$0xff] }
 0x41a   : > { %v3197_v30 = vadd.f32 %v3165_v44, %v3096_v57  ;;  %v2994_v11 = vadd.f32 %v2962_v25, %v2893_v7  ;;  %v3916_v28 = vmul.f32 %v8181_v5, %v3879_v19  ;;  %v4017_v41 = vmul.f32 %v8186_v21, %v3980_v63  ;;  %v8257_v63 = vld [vmem:[#allocation2 + $0x391] sm:$0xff] }
 0x41b   : > { %v3678_v23 = vsel %vm316_vm0, %v3598_v49, 0.0  ;;  %v3502_v39 = vadd.f32 %v3470_v27, %v3401_v4  ;;  %v3468_v44 = vmul.f32 %v8044_v6, %v8119_v34  ;;  %v4118_v38 = vmul.f32 %v8195_v22, %v4081_v2  ;;  %v8246_v27 = vld [vmem:[%s9337_s4 + $0x10] ss:$0 sm:$0xff]  ;;  %v8259_v49 = vld [vmem:[#allocation2 + $0x392] sm:$0xff] }
 0x41c   : > { %3679 = vadd.xlane.f32.xlu0 %v3678_v23  ;;  %v3298_v20 = vadd.f32 %v3266_v10, %v3197_v30  ;;  %v3095_v17 = vadd.f32 %v3063_v46, %v2994_v11  ;;  %v3569_v12 = vmul.f32 %v8055_v45, %v8126_v52  ;;  %v4049_v56 = vadd.f32 %v4017_v41, %v3916_v28  ;;  %v8251_v10 = vld [vmem:[%s9337_s4 + $0x11] ss:$0 sm:$0xff]  ;;  %v3334_v11 = vld [vmem:[#allocation2 + $0x1a0] sm:$0xff] }
 0x41d   : > { %v4220_v60 = vmul.f32 %v8204_v62, %v8210_v18  ;;  %v3603_v25 = vadd.f32 %v3571_v35, %v3502_v39  ;;  %v4321_v57 = vmul.f32 %v8215_v58, %v8225_v53  ;;  %v4422_v19 = vmul.f32 %v8220_v42, %v8227_v31 }
 0x41e   : > { %v3400_v13 = vadd.f32 %v3368_v50, %v3298_v20  ;;  %v3196_v7 = vadd.f32 %v3164_v26, %v3095_v17  ;;  %v4150_v46 = vadd.f32 %v4118_v38, %v4049_v56  ;;  %v4524_v2 = vmul.f32 %v8232_v16, %v8237_v24  ;;  %v3435_v38 = vld [vmem:[#allocation2 + $0x1a1] sm:$0xff] }
 0x41f   : > { %v2764_v4 = vmul.f32 %v7975_v59, %v8117_v48  ;;  %v3693_v35 = vsel %vm316_vm0, %v3603_v25, 0.0  ;;  %v2865_v30 = vmul.f32 %v7987_v61, %v8119_v34  ;;  %v2966_v23 = vmul.f32 %v7994_v33, %v8126_v52 }
 0x420   : > { %v3501_v50 = vadd.f32 %v3469_v14, %v3400_v13  ;;  %3694 = vadd.xlane.f32.xlu2 %v3693_v35  ;;  %v3297_v28 = vadd.f32 %v3265_v51, %v3196_v7  ;;  %v4252_v26 = vadd.f32 %v4220_v60, %v4150_v46  ;;  %v4625_v41 = vmul.f32 %v8246_v27, %v8257_v63  ;;  %v3536_v60 = vld [vmem:[#allocation2 + $0x1a2] sm:$0xff] }
 0x421   : > { %v4726_v39 = vmul.f32 %v8251_v10, %v8259_v49  ;;  %v2897_v20 = vadd.f32 %v2865_v30, %v2764_v4  ;;  %v3067_v14 = vmul.f32 %v8005_v9, %v8128_v37  ;;  %v3168_v34 = vmul.f32 %v8012_v0, %v8138_v43  ;;  %v8289_v46 = vld [vmem:[#allocation2 + $0x380] sm:$0xff] }
 0x422   : > { %v3602_v48 = vadd.f32 %v3570_v15, %v3501_v50  ;;  %v3399_v52 = vadd.f32 %v3367_v47, %v3297_v28  ;;  %v4353_v17 = vadd.f32 %v4321_v57, %v4252_v26  ;;  %v3269_v51 = vmul.f32 %v8019_v8, %v8144_v1  ;;  %v3333_v57 = vld [vmem:[#allocation2 + $0x198] sm:$0xff] }
 0x423   : > { %v3371_v56 = vmul.f32 %v8026_v36, %v3334_v11  ;;  %v2998_v13 = vadd.f32 %v2966_v23, %v2897_v20  ;;  %v2763_v15 = vmul.f32 %v7975_v59, %v8050_v32  ;;  %v2864_v37 = vmul.f32 %v7987_v61, %v8065_v29  ;;  %v8294_v32 = vld [vmem:[#allocation2 + $0x381] sm:$0xff]  ;;  %v8307_v26 = vld [vmem:[#allocation2 + $0x399] sm:$0xff] }
 0x424   : > { %v3690_v25 = vsel %vm316_vm0, %v3602_v48, 0.0  ;;  %v3500_v43 = vadd.f32 %v3468_v44, %v3399_v52  ;;  %v4454_v7 = vadd.f32 %v4422_v19, %v4353_v17  ;;  %v3472_v47 = vmul.f32 %v8044_v6, %v3435_v38  ;;  %v8296_v61 = vld [vmem:[#allocation2 + $0x382] sm:$0xff]  ;;  %v3535_v30 = vld [vmem:[#allocation2 + $0x19a] sm:$0xff]  ;;  %v8324_v17 = vld [vmem:[#allocation2 + $0x3b1] sm:$0xff] }
 0x425   : > { %3691 = vadd.xlane.f32.xlu1 %v3690_v25  ;;  %v2965_v1 = vmul.f32 %v7994_v33, %v8067_v55  ;;  %v3099_v4 = vadd.f32 %v3067_v14, %v2998_v13  ;;  %v3573_v35 = vmul.f32 %v8055_v45, %v3536_v60  ;;  %v2896_v50 = vadd.f32 %v2864_v37, %v2763_v15  ;;  %v3434_v55 = vld [vmem:[#allocation2 + $0x199] sm:$0xff] }
 0x426   : > { %v3066_v59 = vmul.f32 %v8005_v9, %v8155_v54  ;;  %v3601_v29 = vadd.f32 %v3569_v12, %v3500_v43  ;;  %v4556_v44 = vadd.f32 %v4524_v2, %v4454_v7  ;;  %v3167_v19 = vmul.f32 %v8012_v0, %v8165_v40  ;;  %v8305_v54 = vld [vmem:[#allocation2 + $0x398] sm:$0xff] }
 0x427   : > { %v3268_v33 = vmul.f32 %v8019_v8, %v8167_v3  ;;  %v3200_v23 = vadd.f32 %v3168_v34, %v3099_v4  ;;  %v2997_v11 = vadd.f32 %v2965_v1, %v2896_v50  ;;  %v3370_v28 = vmul.f32 %v8026_v36, %v3333_v57  ;;  %v8314_v40 = vld [vmem:[#allocation2 + $0x39a] sm:$0xff]  ;;  %v8316_v3 = vld [vmem:[#allocation2 + $0x3b0] sm:$0xff]  ;;  %v8341_v57 = vld [vmem:[#allocation2 + $0x3a8] sm:$0xff] }
 0x428   : > { %v3919_v9 = vmul.f32 %v8181_v5, %v8289_v46  ;;  %v3687_v12 = vsel %vm316_vm0, %v3601_v29, 0.0  ;;  %v4657_v2 = vadd.f32 %v4625_v41, %v4556_v44  ;;  %v4020_v0 = vmul.f32 %v8186_v21, %v8294_v32  ;;  %v8330_v13 = vld [vmem:[#allocation2 + $0x3b2] sm:$0xff]  ;;  %v3880_v4 = vld [vmem:[#allocation2 + $0x368] sm:$0xff] }
 0x429   : > { %v4121_v8 = vmul.f32 %v8195_v22, %v8296_v61  ;;  %3688 = vadd.xlane.f32.xlu0 %v3687_v12  ;;  %v3301_v36 = vadd.f32 %v3269_v51, %v3200_v23  ;;  %v3098_v48 = vadd.f32 %v3066_v59, %v2997_v11  ;;  %v3471_v20 = vmul.f32 %v8044_v6, %v3434_v55  ;;  %v3981_v29 = vld [vmem:[#allocation2 + $0x369] sm:$0xff] }
 0x42a   : > { %v3572_v14 = vmul.f32 %v8055_v45, %v3535_v30  ;;  %v4758_v34 = vadd.f32 %v4726_v39, %v4657_v2  ;;  %v4052_v38 = vadd.f32 %v4020_v0, %v3919_v9  ;;  %v4223_v41 = vmul.f32 %v8204_v62, %v8305_v54  ;;  %v8355_v2 = vld [vmem:[#allocation2 + $0x3a9] sm:$0xff] }
 0x42b   : > { %v4324_v52 = vmul.f32 %v8215_v58, %v8307_v26  ;;  %v3403_v60 = vadd.f32 %v3371_v56, %v3301_v36  ;;  %v3199_v25 = vadd.f32 %v3167_v19, %v3098_v48  ;;  %v4425_v51 = vmul.f32 %v8220_v42, %v8314_v40 }
 0x42c   : > { %v4527_v6 = vmul.f32 %v8232_v16, %v8316_v3  ;;  %v4790_v45 = vsel %vm316_vm0, %v4758_v34, 0.0  ;;  %v4153_v39 = vadd.f32 %v4121_v8, %v4052_v38  ;;  %v3918_v15 = vmul.f32 %v8181_v5, %v8210_v18 }
 0x42d   : > { %v4019_v37 = vmul.f32 %v8186_v21, %v8225_v53  ;;  %4791 = vadd.xlane.f32.xlu2 %v4790_v45  ;;  %v3504_v56 = vadd.f32 %v3472_v47, %v3403_v60  ;;  %v3300_v43 = vadd.f32 %v3268_v33, %v3199_v25  ;;  %v4628_v7 = vmul.f32 %v8246_v27, %v8324_v17  ;;  %v4082_v47 = vld [vmem:[#allocation2 + $0x36a] sm:$0xff] }
 0x42e   : > { %v4120_v1 = vmul.f32 %v8195_v22, %v8227_v31  ;;  %v4255_v50 = vadd.f32 %v4223_v41, %v4153_v39  ;;  %v4729_v59 = vmul.f32 %v8251_v10, %v8330_v13  ;;  %v4222_v53 = vmul.f32 %v8204_v62, %v8237_v24 }
 0x42f   : > { %v4051_v18 = vadd.f32 %v4019_v37, %v3918_v15  ;;  %v3605_v44 = vadd.f32 %v3573_v35, %v3504_v56  ;;  %v3402_v19 = vadd.f32 %v3370_v28, %v3300_v43  ;;  %v4323_v33 = vmul.f32 %v8215_v58, %v8257_v63  ;;  %v8357_v35 = vld [vmem:[#allocation2 + $0x3aa] sm:$0xff] }
 0x430   : > { %v4424_v31 = vmul.f32 %v8220_v42, %v8259_v49  ;;  %v4356_v55 = vadd.f32 %v4324_v52, %v4255_v50  ;;  %v4526_v23 = vmul.f32 %v8232_v16, %v8341_v57  ;;  %v3917_v11 = vmul.f32 %v8181_v5, %v3880_v4  ;;  %v8382_v56 = vld [vmem:[#allocation2 + $0x3c8] sm:$0xff] }
 0x431   : > { %v4152_v30 = vadd.f32 %v4120_v1, %v4051_v18  ;;  %v3699_v9 = vsel %vm316_vm0, %v3605_v44, 0.0  ;;  %v3503_v12 = vadd.f32 %v3471_v20, %v3402_v19  ;;  %v4018_v28 = vmul.f32 %v8186_v21, %v3981_v29 }
 0x432   : > { %v4119_v0 = vmul.f32 %v8195_v22, %v4082_v47  ;;  %3700 = vadd.xlane.f32.xlu1 %v3699_v9  ;;  %v4457_v8 = vadd.f32 %v4425_v51, %v4356_v55  ;;  %v4627_v48 = vmul.f32 %v8246_v27, %v8355_v2  ;;  %v4728_v34 = vmul.f32 %v8251_v10, %v8357_v35 }
 0x433   : > { %v4254_v36 = vadd.f32 %v4222_v53, %v4152_v30  ;;  %v3604_v38 = vadd.f32 %v3572_v14, %v3503_v12  ;;  %v4050_v41 = vadd.f32 %v4018_v28, %v3917_v11  ;;  %v4221_v20 = vmul.f32 %v8204_v62, %v8289_v46 }
 0x434   : > { %v4322_v52 = vmul.f32 %v8215_v58, %v8294_v32  ;;  %v4559_v60 = vadd.f32 %v4527_v6, %v4457_v8  ;;  %v4423_v51 = vmul.f32 %v8220_v42, %v8296_v61  ;;  %v4525_v45 = vmul.f32 %v8232_v16, %v8305_v54 }
 0x435   : > { %v4355_v25 = vadd.f32 %v4323_v33, %v4254_v36  ;;  %v3696_v39 = vsel %vm316_vm0, %v3604_v38, 0.0  ;;  %v4151_v15 = vadd.f32 %v4119_v0, %v4050_v41  ;;  %v3921_v14 = vmul.f32 %v8181_v5, %v8305_v54  ;;  %v8397_v33 = vld [vmem:[#allocation2 + $0x3c9] sm:$0xff]  ;;  %v4491_v0 = vld [vmem:[#allocation2 + $0x3c0] sm:$0xff] }
 0x436   : > { %v4022_v46 = vmul.f32 %v8186_v21, %v8307_v26  ;;  %3697 = vadd.xlane.f32.xlu0 %v3696_v39  ;;  %v4660_v37 = vadd.f32 %v4628_v7, %v4559_v60  ;;  %v4626_v6 = vmul.f32 %v8246_v27, %v8307_v26  ;;  %v4123_v61 = vmul.f32 %v8195_v22, %v8314_v40 }
 0x437   : > { %v4456_v32 = vadd.f32 %v4424_v31, %v4355_v25  ;;  %v4253_v43 = vadd.f32 %v4221_v20, %v4151_v15  ;;  %v4727_v1 = vmul.f32 %v8251_v10, %v8314_v40  ;;  %v4225_v54 = vmul.f32 %v8204_v62, %v8316_v3  ;;  %v4592_v20 = vld [vmem:[#allocation2 + $0x3c1] sm:$0xff]  ;;  %v8424_v15 = vld [vmem:[#allocation2 + $0x3d8] sm:$0xff] }
 0x438   : > { %v4054_v4 = vadd.f32 %v4022_v46, %v3921_v14  ;;  %v4761_v50 = vadd.f32 %v4729_v59, %v4660_v37  ;;  %v4326_v7 = vmul.f32 %v8215_v58, %v8324_v17  ;;  %v4427_v26 = vmul.f32 %v8220_v42, %v8330_v13  ;;  %v8399_v59 = vld [vmem:[#allocation2 + $0x3ca] sm:$0xff] }
 0x439   : > { %v4558_v18 = vadd.f32 %v4526_v23, %v4456_v32  ;;  %v4354_v53 = vadd.f32 %v4322_v52, %v4253_v43  ;;  %v4529_v47 = vmul.f32 %v8232_v16, %v8382_v56  ;;  %v3920_v40 = vmul.f32 %v8181_v5, %v8237_v24  ;;  %v8430_v43 = vld [vmem:[#allocation2 + $0x3d9] sm:$0xff] }
 0x43a   : > { %v4155_v29 = vadd.f32 %v4123_v61, %v4054_v4  ;;  %v4799_v44 = vsel %vm316_vm0, %v4761_v50, 0.0  ;;  %v4021_v31 = vmul.f32 %v8186_v21, %v8257_v63  ;;  %v4122_v55 = vmul.f32 %v8195_v22, %v8259_v49  ;;  %v8432_v4 = vld [vmem:[#allocation2 + $0x3da] sm:$0xff] }
 0x43b   : > { %v4659_v19 = vadd.f32 %v4627_v48, %v4558_v18  ;;  %4800 = vadd.xlane.f32.xlu2 %v4799_v44  ;;  %v4455_v30 = vadd.f32 %v4423_v51, %v4354_v53  ;;  %v4630_v11 = vmul.f32 %v8246_v27, %v8397_v33  ;;  %v4731_v24 = vmul.f32 %v8251_v10, %v8399_v59 }
 0x43c   : > { %v4257_v23 = vadd.f32 %v4225_v54, %v4155_v29  ;;  %v4053_v12 = vadd.f32 %v4021_v31, %v3920_v40  ;;  %v4224_v28 = vmul.f32 %v8204_v62, %v8341_v57  ;;  %v4325_v63 = vmul.f32 %v8215_v58, %v8355_v2  ;;  %v8440_v29 = vld [vmem:[#allocation2 + $0x3f0] sm:$0xff] }
 0x43d   : > { %v4760_v9 = vadd.f32 %v4728_v34, %v4659_v19  ;;  %v4557_v8 = vadd.f32 %v4525_v45, %v4455_v30  ;;  %v4426_v36 = vmul.f32 %v8220_v42, %v8357_v35  ;;  %v4528_v48 = vmul.f32 %v8232_v16, %v4491_v0  ;;  %v4693_v34 = vld [vmem:[#allocation2 + $0x3c2] sm:$0xff] }
 0x43e   : > { %v4358_v49 = vadd.f32 %v4326_v7, %v4257_v23  ;;  %v4154_v41 = vadd.f32 %v4122_v55, %v4053_v12  ;;  %v3922_v52 = vmul.f32 %v8181_v5, %v8341_v57  ;;  %v4023_v60 = vmul.f32 %v8186_v21, %v8355_v2 }
 0x43f   : > { %v4796_v38 = vsel %vm316_vm0, %v4760_v9, 0.0  ;;  %v4658_v25 = vadd.f32 %v4626_v6, %v4557_v8  ;;  %v4629_v45 = vmul.f32 %v8246_v27, %v4592_v20  ;;  %v4124_v39 = vmul.f32 %v8195_v22, %v8357_v35  ;;  %v8455_v8 = vld [vmem:[#allocation2 + $0x3f1] sm:$0xff] }
 0x440   : > { %4797 = vadd.xlane.f32.xlu1 %v4796_v38  ;;  %v4459_v51 = vadd.f32 %v4427_v26, %v4358_v49  ;;  %v4256_v14 = vadd.f32 %v4224_v28, %v4154_v41  ;;  %v4730_v46 = vmul.f32 %v8251_v10, %v4693_v34  ;;  %v4055_v37 = vadd.f32 %v4023_v60, %v3922_v52  ;;  %v8463_v41 = vld [vmem:[#allocation2 + $0x3f2] sm:$0xff] }
 0x441   : > { %v4226_v32 = vmul.f32 %v8204_v62, %v4491_v0  ;;  %v4759_v57 = vadd.f32 %v4727_v1, %v4658_v25  ;;  %v4327_v2 = vmul.f32 %v8215_v58, %v4592_v20  ;;  %v4428_v6 = vmul.f32 %v8220_v42, %v4693_v34 }
 0x442   : > { %v4561_v61 = vadd.f32 %v4529_v47, %v4459_v51  ;;  %v4357_v54 = vadd.f32 %v4325_v63, %v4256_v14  ;;  %v4156_v35 = vadd.f32 %v4124_v39, %v4055_v37  ;;  %v4530_v50 = vmul.f32 %v8232_v16, %v8424_v15  ;;  %v4494_v39 = vld [vmem:[#allocation2 + $0x3e0] sm:$0xff] }
 0x443   : > { %v3924_v18 = vmul.f32 %v8181_v5, %v4491_v0  ;;  %v4793_v7 = vsel %vm316_vm0, %v4759_v57, 0.0  ;;  %v4025_v1 = vmul.f32 %v8186_v21, %v4592_v20  ;;  %v4126_v53 = vmul.f32 %v8195_v22, %v4693_v34 }
 0x444   : > { %v4662_v26 = vadd.f32 %v4630_v11, %v4561_v61  ;;  %4794 = vadd.xlane.f32.xlu0 %v4793_v7  ;;  %v4458_v47 = vadd.f32 %v4426_v36, %v4357_v54  ;;  %v4258_v40 = vadd.f32 %v4226_v32, %v4156_v35  ;;  %v4631_v44 = vmul.f32 %v8246_v27, %v8430_v43  ;;  %v4595_v32 = vld [vmem:[#allocation2 + $0x3e1] sm:$0xff]  ;;  %v8483_v35 = vld [vmem:[#allocation2 + $0x3f8] sm:$0xff] }
 0x445   : > { %v4732_v19 = vmul.f32 %v8251_v10, %v8432_v4  ;;  %v4057_v55 = vadd.f32 %v4025_v1, %v3924_v18  ;;  %v4228_v30 = vmul.f32 %v8204_v62, %v8424_v15  ;;  %v4329_v23 = vmul.f32 %v8215_v58, %v8430_v43 }
 0x446   : > { %v4763_v31 = vadd.f32 %v4731_v24, %v4662_v26  ;;  %v4560_v11 = vadd.f32 %v4528_v48, %v4458_v47  ;;  %v4359_v9 = vadd.f32 %v4327_v2, %v4258_v40  ;;  %v4430_v12 = vmul.f32 %v8220_v42, %v8432_v4  ;;  %v8489_v40 = vld [vmem:[#allocation2 + $0x3f9] sm:$0xff] }
 0x447   : > { %v4532_v28 = vmul.f32 %v8232_v16, %v8440_v29  ;;  %v4158_v0 = vadd.f32 %v4126_v53, %v4057_v55  ;;  %v3923_v24 = vmul.f32 %v8181_v5, %v8316_v3  ;;  %v4024_v49 = vmul.f32 %v8186_v21, %v8324_v17  ;;  %v8494_v55 = vld [vmem:[#allocation2 + $0x3fa] sm:$0xff] }
 0x448   : > { %v4805_v63 = vsel %vm316_vm0, %v4763_v31, 0.0  ;;  %v4661_v36 = vadd.f32 %v4629_v45, %v4560_v11  ;;  %v4460_v48 = vadd.f32 %v4428_v6, %v4359_v9  ;;  %v4633_v38 = vmul.f32 %v8246_v27, %v8455_v8 }
 0x449   : > { %4806 = vadd.xlane.f32.xlu1 %v4805_v63  ;;  %v4125_v20 = vmul.f32 %v8195_v22, %v8330_v13  ;;  %v4260_v34 = vadd.f32 %v4228_v30, %v4158_v0  ;;  %v4734_v52 = vmul.f32 %v8251_v10, %v8463_v41  ;;  %v4056_v60 = vadd.f32 %v4024_v49, %v3923_v24  ;;  %v8502_v0 = vld [vmem:[#allocation2 + $0x410] sm:$0xff] }
 0x44a   : > { %v4227_v3 = vmul.f32 %v8204_v62, %v8382_v56  ;;  %v4762_v17 = vadd.f32 %v4730_v46, %v4661_v36  ;;  %v4562_v25 = vadd.f32 %v4530_v50, %v4460_v48  ;;  %v4328_v51 = vmul.f32 %v8215_v58, %v8397_v33  ;;  %v4696_v46 = vld [vmem:[#allocation2 + $0x3e2] sm:$0xff] }
 0x44b   : > { %v4429_v45 = vmul.f32 %v8220_v42, %v8399_v59  ;;  %v4361_v14 = vadd.f32 %v4329_v23, %v4260_v34  ;;  %v4157_v37 = vadd.f32 %v4125_v20, %v4056_v60  ;;  %v4531_v13 = vmul.f32 %v8232_v16, %v4494_v39 }
 0x44c   : > { %v3925_v57 = vmul.f32 %v8181_v5, %v8382_v56  ;;  %v4802_v61 = vsel %vm316_vm0, %v4762_v17, 0.0  ;;  %v4663_v2 = vadd.f32 %v4631_v44, %v4562_v25  ;;  %v4026_v6 = vmul.f32 %v8186_v21, %v8397_v33  ;;  %v8514_v17 = vld [vmem:[#allocation2 + $0x412] sm:$0xff] }
 0x44d   : > { %v4127_v54 = vmul.f32 %v8195_v22, %v8399_v59  ;;  %4803 = vadd.xlane.f32.xlu0 %v4802_v61  ;;  %v4462_v50 = vadd.f32 %v4430_v12, %v4361_v14  ;;  %v4259_v18 = vadd.f32 %v4227_v3, %v4157_v37  ;;  %v4632_v7 = vmul.f32 %v8246_v27, %v4595_v32  ;;  %v8512_v3 = vld [vmem:[#allocation2 + $0x411] sm:$0xff] }
 0x44e   : > { %v4733_v26 = vmul.f32 %v8251_v10, %v4696_v46  ;;  %v4764_v56 = vadd.f32 %v4732_v19, %v4663_v2  ;;  %v4058_v1 = vadd.f32 %v4026_v6, %v3925_v57  ;;  %v4229_v53 = vmul.f32 %v8204_v62, %v4494_v39 }
 0x44f   : > { %v4330_v47 = vmul.f32 %v8215_v58, %v4595_v32  ;;  %v4564_v33 = vadd.f32 %v4532_v28, %v4462_v50  ;;  %v4360_v44 = vadd.f32 %v4328_v51, %v4259_v18  ;;  %v4431_v59 = vmul.f32 %v8220_v42, %v4696_v46 }
 0x450   : > { %v4533_v31 = vmul.f32 %v8232_v16, %v8483_v35  ;;  %v4808_v30 = vsel %vm316_vm0, %v4764_v56, 0.0  ;;  %v4159_v23 = vadd.f32 %v4127_v54, %v4058_v1  ;;  %v3927_v19 = vmul.f32 %v8181_v5, %v4494_v39 }
 0x451   : > { %v4028_v11 = vmul.f32 %v8186_v21, %v4595_v32  ;;  %4809 = vadd.xlane.f32.xlu2 %v4808_v30  ;;  %v4665_v9 = vadd.f32 %v4633_v38, %v4564_v33  ;;  %v4461_v12 = vadd.f32 %v4429_v45, %v4360_v44  ;;  %v4634_v28 = vmul.f32 %v8246_v27, %v8489_v40 }
 0x452   : > { %v4129_v63 = vmul.f32 %v8195_v22, %v4696_v46  ;;  %v4261_v24 = vadd.f32 %v4229_v53, %v4159_v23  ;;  %v4735_v49 = vmul.f32 %v8251_v10, %v8494_v55  ;;  %v4231_v48 = vmul.f32 %v8204_v62, %v8483_v35  ;;  %v4598_v53 = vld [vmem:[#allocation2 + $0x409] sm:$0xff] }
 0x453   : > { %v4060_v36 = vadd.f32 %v4028_v11, %v3927_v19  ;;  %v4766_v20 = vadd.f32 %v4734_v52, %v4665_v9  ;;  %v4563_v34 = vadd.f32 %v4531_v13, %v4461_v12  ;;  %v4332_v38 = vmul.f32 %v8215_v58, %v8489_v40  ;;  %v4499_v12 = vld [vmem:[#allocation2 + $0x420] sm:$0xff] }
 0x454   : > { %v4433_v60 = vmul.f32 %v8220_v42, %v8494_v55  ;;  %v4362_v25 = vadd.f32 %v4330_v47, %v4261_v24  ;;  %v4535_v45 = vmul.f32 %v8232_v16, %v8502_v0  ;;  %v3926_v39 = vmul.f32 %v8181_v5, %v8424_v15 }
 0x455   : > { %v4161_v51 = vadd.f32 %v4129_v63, %v4060_v36  ;;  %v4814_v52 = vsel %vm316_vm0, %v4766_v20, 0.0  ;;  %v4664_v14 = vadd.f32 %v4632_v7, %v4563_v34  ;;  %v4027_v37 = vmul.f32 %v8186_v21, %v8430_v43  ;;  %v4600_v20 = vld [vmem:[#allocation2 + $0x421] sm:$0xff]  ;;  %v3608_v34 = vpop.xlane.xlu0 %3607 }
 0x456   : > { %v4128_v13 = vmul.f32 %v8195_v22, %v8432_v4  ;;  %4815 = vadd.xlane.f32.xlu1 %v4814_v52  ;;  %v4463_v32 = vadd.f32 %v4431_v59, %v4362_v25  ;;  %v4636_v61 = vmul.f32 %v8246_v27, %v8512_v3  ;;  %v4737_v2 = vmul.f32 %v8251_v10, %v8514_v17  ;;  %v4497_v4 = vld [vmem:[#allocation2 + $0x408] sm:$0xff] }
 0x457   : > { %v4263_v57 = vadd.f32 %v4231_v48, %v4161_v51  ;;  %v4765_v15 = vadd.f32 %v4733_v26, %v4664_v14  ;;  %v4059_v46 = vadd.f32 %v4027_v37, %v3926_v39  ;;  %v4230_v6 = vmul.f32 %v8204_v62, %v8440_v29  ;;  %v4699_v26 = vld [vmem:[#allocation2 + $0x40a] sm:$0xff]  ;;  %v4701_v25 = vld [vmem:[#allocation2 + $0x422] sm:$0xff]  ;;  %v3620_v51 = vpop.xlane.xlu2 %3619 }
 0x458   : > { %v4331_v43 = vmul.f32 %v8215_v58, %v8455_v8  ;;  %v4565_v54 = vadd.f32 %v4533_v31, %v4463_v32  ;;  %v4432_v18 = vmul.f32 %v8220_v42, %v8463_v41  ;;  %v4534_v7 = vmul.f32 %v8232_v16, %v4497_v4 }
 0x459   : > { %v4364_v50 = vadd.f32 %v4332_v38, %v4263_v57  ;;  %v4811_v56 = vsel %vm316_vm0, %v4765_v15, 0.0  ;;  %v4160_v1 = vadd.f32 %v4128_v13, %v4059_v46  ;;  %v3928_v47 = vmul.f32 %v8181_v5, %v8440_v29  ;;  %v3614_v13 = vpop.xlane.xlu1 %3613  ;;  %v8562_v46 = vld [vmem:[#allocation2 + $0x438] sm:$0xff] }
 0x45a   : > { %v4029_v33 = vmul.f32 %v8186_v21, %v8455_v8  ;;  %4812 = vadd.xlane.f32.xlu0 %v4811_v56  ;;  %v4666_v44 = vadd.f32 %v4634_v28, %v4565_v54  ;;  %v4635_v31 = vmul.f32 %v8246_v27, %v4598_v53  ;;  %v4130_v30 = vmul.f32 %v8195_v22, %v8463_v41 }
 0x45b   : > { %v4465_v59 = vadd.f32 %v4433_v60, %v4364_v50  ;;  %v4262_v23 = vadd.f32 %v4230_v6, %v4160_v1  ;;  %v4736_v19 = vmul.f32 %v8251_v10, %v4699_v26  ;;  %v4232_v9 = vmul.f32 %v8204_v62, %v4497_v4  ;;  %v8565_v50 = vld [vmem:[#allocation2 + $0x439] sm:$0xff] }
 0x45c   : > { %v4061_v11 = vadd.f32 %v4029_v33, %v3928_v47  ;;  %v4767_v29 = vadd.f32 %v4735_v49, %v4666_v44  ;;  %v4333_v8 = vmul.f32 %v8215_v58, %v4598_v53  ;;  %v4434_v28 = vmul.f32 %v8220_v42, %v4699_v26  ;;  %v8573_v44 = vld [vmem:[#allocation2 + $0x450] sm:$0xff] }
 0x45d   : > { %v4567_v63 = vadd.f32 %v4535_v45, %v4465_v59  ;;  %v4363_v24 = vadd.f32 %v4331_v43, %v4262_v23  ;;  %v4536_v48 = vmul.f32 %v8232_v16, %v4499_v12  ;;  %v3799_v41 = vlaneseq }
 0x45e   : > { %v4162_v36 = vadd.f32 %v4130_v30, %v4061_v11  ;;  %v4817_v38 = vsel %vm316_vm0, %v4767_v29, 0.0  ;;  %v8553_v39 = vstv %s8529_s20  ;;  %v3932_v49 = vmul.f32 %v8181_v5, %v4499_v12 }
 0x45f   : > { %v4668_v60 = vadd.f32 %v4636_v61, %v4567_v63  ;;  %4818 = vadd.xlane.f32.xlu2 %v4817_v38  ;;  %v4464_v45 = vadd.f32 %v4432_v18, %v4363_v24  ;;  %v8556_v14 = vand.u32 127, %v3799_v41  ;;  %v3707_v37 = vadd.f32 %v8553_v39, %v3620_v51  ;;  %v8598_v41 = vld [vmem:[#allocation2 + $0x452] sm:$0xff] }
 0x460   : > { %v4264_v52 = vadd.f32 %v4232_v9, %v4162_v36  ;;  %v3705_v57 = vadd.f32 %v8553_v39, %v3614_v13  ;;  %v3703_v15 = vadd.f32 %v8553_v39, %v3608_v34  ;;  %v4033_v61 = vmul.f32 %v8186_v21, %v4600_v20  ;;  %v8593_v36 = vld [vmem:[#allocation2 + $0x428] sm:$0xff]  ;;  %v8618_v13 = vld [vmem:[#allocation2 + $0x440] sm:$0xff] }
 0x461   : > { %v4769_v32 = vadd.f32 %v4737_v2, %v4668_v60  ;;  %v4566_v6 = vadd.f32 %v4534_v7, %v4464_v45  ;;  %v3739_v4 = vmax.f32 %v3707_v37, 0.0  ;;  %v4134_v54 = vmul.f32 %v8195_v22, %v4701_v25  ;;  %v8571_v7 = vld [vmem:[#allocation2 + $0x43a] sm:$0xff]  ;;  %v8604_v60 = vld [vmem:[#allocation2 + $0x429] sm:$0xff] }
 0x462   : > { %v4365_v43 = vadd.f32 %v4333_v8, %v4264_v52  ;;  %v3737_v56 = vmax.f32 %v3705_v57, 0.0  ;;  %v3735_v1 = vmax.f32 %v3703_v15, 0.0  ;;  %v4065_v2 = vadd.f32 %v4033_v61, %v3932_v49  ;;  %v8612_v45 = vld [vmem:[#allocation2 + $0x42a] sm:$0xff]  ;;  %v8626_v61 = vld [vmem:[#allocation2 + $0x441] sm:$0xff] }
 0x463   : > { %v4823_v18 = vsel %vm316_vm0, %v4769_v32, 0.0  ;;  %v4667_v53 = vadd.f32 %v4635_v31, %v4566_v6  ;;  %v4637_v47 = vmul.f32 %v8246_v27, %v4600_v20  ;;  %v4236_v33 = vmul.f32 %v8204_v62, %v8562_v46  ;;  %v8596_v20 = vld [vmem:[#allocation2 + $0x451] sm:$0xff]  ;;  %v8628_v6 = vld [vmem:[#allocation2 + $0x442] sm:$0xff] }
 0x464   : > { %4824 = vadd.xlane.f32.xlu1 %v4823_v18  ;;  %v4466_v26 = vadd.f32 %v4434_v28, %v4365_v43  ;;  %v4738_v59 = vmul.f32 %v8251_v10, %v4701_v25  ;;  %v8577_v30 = vperm.slane %v3739_v4, %v8556_v14  ;;  %v4166_v23 = vadd.f32 %v4134_v54, %v4065_v2  ;;  %v8637_v18 = vld [vmem:[#allocation2 + $0x459] sm:$0xff] }
 0x465   : > { %v4337_v11 = vmul.f32 %v8215_v58, %v8565_v50  ;;  %v4768_v31 = vadd.f32 %v4736_v19, %v4667_v53  ;;  %v8582_v12 = vperm.slane %v3737_v56, %v8556_v14  ;;  %v8585_v29 = vperm.slane %v3735_v1, %v8556_v14 }
 0x466   : > { %v4568_v9 = vadd.f32 %v4536_v48, %v4466_v26  ;;  %v4268_v63 = vadd.f32 %v4236_v33, %v4166_v23  ;;  %v4438_v8 = vmul.f32 %v8220_v42, %v8571_v7  ;;  %v4540_v28 = vmul.f32 %v8232_v16, %v8573_v44  ;;  %v3623_v26 = vpop.xlane.xlu2 %3622 }
 0x467   : > { %v3929_v24 = vmul.f32 %v8181_v5, %v8483_v35  ;;  %v4820_v19 = vsel %vm316_vm0, %v4768_v31, 0.0  ;;  %v4030_v34 = vmul.f32 %v8186_v21, %v8489_v40  ;;  %v4131_v38 = vmul.f32 %v8195_v22, %v8494_v55  ;;  %v3611_v31 = vpop.xlane.xlu0 %3610 }
 0x468   : > { %v4669_v48 = vadd.f32 %v4637_v47, %v4568_v9  ;;  %4821 = vadd.xlane.f32.xlu0 %v4820_v19  ;;  %v4369_v25 = vadd.f32 %v4337_v11, %v4268_v63  ;;  %v4641_v35 = vmul.f32 %v8246_v27, %v8596_v20  ;;  %v4742_v51 = vmul.f32 %v8251_v10, %v8598_v41  ;;  %v3617_v47 = vpop.xlane.xlu1 %3616 }
 0x469   : > { %v4233_v49 = vmul.f32 %v8204_v62, %v8502_v0  ;;  %v4062_v40 = vadd.f32 %v4030_v34, %v3929_v24  ;;  %v4334_v55 = vmul.f32 %v8215_v58, %v8512_v3  ;;  %v4435_v37 = vmul.f32 %v8220_v42, %v8514_v17  ;;  %v8630_v3 = vld [vmem:[#allocation2 + $0x458] sm:$0xff] }
 0x46a   : > { %v4770_v52 = vadd.f32 %v4738_v59, %v4669_v48  ;;  %v4470_v32 = vadd.f32 %v4438_v8, %v4369_v25  ;;  %v4537_v57 = vmul.f32 %v8232_v16, %v8593_v36  ;;  %v3933_v15 = vmul.f32 %v8181_v5, %v8593_v36 }
 0x46b   : > { %v4034_v0 = vmul.f32 %v8186_v21, %v8604_v60  ;;  %v4163_v43 = vadd.f32 %v4131_v38, %v4062_v40  ;;  %v4638_v4 = vmul.f32 %v8246_v27, %v8604_v60  ;;  %v4135_v54 = vmul.f32 %v8195_v22, %v8612_v45 }
 0x46c   : > { %v4826_v17 = vsel %vm316_vm0, %v4770_v52, 0.0  ;;  %v4572_v56 = vadd.f32 %v4540_v28, %v4470_v32  ;;  %v4739_v1 = vmul.f32 %v8251_v10, %v8612_v45  ;;  %v4237_v53 = vmul.f32 %v8204_v62, %v8618_v13 }
 0x46d   : > { %4827 = vadd.xlane.f32.xlu2 %v4826_v17  ;;  %v4066_v2 = vadd.f32 %v4034_v0, %v3933_v15  ;;  %v4265_v33 = vadd.f32 %v4233_v49, %v4163_v43  ;;  %v4338_v59 = vmul.f32 %v8215_v58, %v8626_v61  ;;  %v4439_v23 = vmul.f32 %v8220_v42, %v8628_v6  ;;  %v8664_v43 = vld [vmem:[#allocation2 + $0x45a] sm:$0xff] }
 0x46e   : > { %v4541_v11 = vmul.f32 %v8232_v16, %v8630_v3  ;;  %v4673_v9 = vadd.f32 %v4641_v35, %v4572_v56  ;;  %v4642_v8 = vmul.f32 %v8246_v27, %v8637_v18  ;;  %v8652_v28 = vadd.s32 4294967288, %v8556_v14 }
 0x46f   : > { %v4167_v63 = vadd.f32 %v4135_v54, %v4066_v2  ;;  %v4366_v24 = vadd.f32 %v4334_v55, %v4265_v33  ;;  %v3708_v19 = vadd.f32 %v8553_v39, %v3623_v26  ;;  %v3706_v48 = vadd.f32 %v8553_v39, %v3617_v47  ;;  %v8671_v47 = vld [vmem:[#allocation2 + $0x470] sm:$0xff] }
 0x470   : > { %v4774_v34 = vadd.f32 %v4742_v51, %v4673_v9  ;;  %v3704_v25 = vadd.f32 %v8553_v39, %v3611_v31  ;;  %v3935_v35 = vmul.f32 %v8181_v5, %v8618_v13  ;;  %v4036_v32 = vmul.f32 %v8186_v21, %v8626_v61 }
 0x471   : > { %v4269_v38 = vadd.f32 %v4237_v53, %v4167_v63  ;;  %v4467_v49 = vadd.f32 %v4435_v37, %v4366_v24  ;;  %v3740_v52 = vmax.f32 %v3708_v19, 0.0  ;;  %v3738_v40 = vmax.f32 %v3706_v48, 0.0 }
 0x472   : > { %v4838_v55 = vsel %vm316_vm0, %v4774_v34, 0.0  ;;  %v3736_v0 = vmax.f32 %v3704_v25, 0.0  ;;  %v4137_v17 = vmul.f32 %v8195_v22, %v8628_v6  ;;  %v4068_v56 = vadd.f32 %v4036_v32, %v3935_v35 }
 0x473   : > { %v4370_v15 = vadd.f32 %v4338_v59, %v4269_v38  ;;  %4839 = vadd.xlane.f32.xlu1 %v4838_v55  ;;  %v4569_v51 = vadd.f32 %v4537_v57, %v4467_v49  ;;  %v3810_v54 = vperm.slane %v3740_v52, %v8652_v28  ;;  %v3807_v37 = vperm.slane %v3738_v40, %v8652_v28  ;;  %v8692_v38 = vld [vmem:[#allocation2 + $0x471] sm:$0xff] }
 0x474   : > { %v3803_v53 = vperm.slane %v3736_v0, %v8652_v28  ;;  %v4239_v26 = vmul.f32 %v8204_v62, %v8630_v3  ;;  %v4169_v59 = vadd.f32 %v4137_v17, %v4068_v56  ;;  %v4340_v31 = vmul.f32 %v8215_v58, %v8637_v18  ;;  %v8701_v49 = vld [vmem:[#allocation2 + $0x472] sm:$0xff]  ;;  %v4707_v17 = vld [vmem:[#allocation2 + $0x46a] sm:$0xff] }
 0x475   : > { %v4471_v2 = vadd.f32 %v4439_v23, %v4370_v15  ;;  %v4670_v33 = vadd.f32 %v4638_v4, %v4569_v51  ;;  %v3808_v57 = vsel %vm3804_vm3, %v3807_v37, %v8582_v12  ;;  %v4743_v23 = vmul.f32 %v8251_v10, %v8664_v43  ;;  %v8718_v51 = vld [vmem:[%s9337_s4 + $0x9] ss:$0 sm:$0xff] }
 0x476   : > { %v8681_v63 = vsel %vm3804_vm3, %v3810_v54, %v8577_v30  ;;  %v3805_v24 = vsel %vm3804_vm3, %v3803_v53, %v8585_v29  ;;  %v4271_v4 = vadd.f32 %v4239_v26, %v4169_v59  ;;  %v4441_v12 = vmul.f32 %v8220_v42, %v8664_v43  ;;  %v8740_v53 = vld [vmem:[#allocation2 + $0x481] sm:$0xff]  ;;  %v3629_v26 = vpop.xlane.xlu1 %3628 }
 0x477   : > { %v4573_v9 = vadd.f32 %v4541_v11, %v4471_v2  ;;  %v4771_v19 = vadd.f32 %v4739_v1, %v4670_v33  ;;  %v4543_v48 = vmul.f32 %v8232_v16, %v8671_v47  ;;  %v8690_v11 = vsel %vm3851_vm4, %v3808_v57, %v3805_v24  ;;  %v8745_v57 = vld [vmem:[%s9337_s4 + $0xc] ss:$0 sm:$0xff]  ;;  %v3626_v24 = vpop.xlane.xlu0 %3625 }
 0x478   : > { %v3934_v30 = vmul.f32 %v8181_v5, %v8562_v46  ;;  %v4035_v29 = vmul.f32 %v8186_v21, %v8565_v50  ;;  %v4372_v25 = vadd.f32 %v4340_v31, %v4271_v4  ;;  %v4644_v35 = vmul.f32 %v8246_v27, %v8692_v38  ;;  %v4505_v46 = vld [vmem:[#allocation2 + $0x468] sm:$0xff] }
 0x479   : > { %v4674_v34 = vadd.f32 %v4642_v8, %v4573_v9  ;;  %v4829_v1 = vsel %vm316_vm0, %v4771_v19, 0.0  ;;  %v4136_v8 = vmul.f32 %v8195_v22, %v8571_v7  ;;  %v4745_v40 = vmul.f32 %v8251_v10, %v8701_v49  ;;  %v4606_v22 = vld [vmem:[#allocation2 + $0x469] sm:$0xff] }
 0x47a   : > { %4830 = vadd.xlane.f32.xlu0 %v4829_v1  ;;  %v4067_v5 = vadd.f32 %v4035_v29, %v3934_v30  ;;  %v4238_v21 = vmul.f32 %v8204_v62, %v8573_v44  ;;  %v4473_v50 = vadd.f32 %v4441_v12, %v4372_v25  ;;  %v4339_v32 = vmul.f32 %v8215_v58, %v8596_v20  ;;  %v8725_v58 = vld [vmem:[%s9337_s4 + $0xa] ss:$0 sm:$0xff]  ;;  %v8751_v31 = vld [vmem:[%s9337_s4 + $0xd] ss:$0 sm:$0xff]  ;;  %v8759_v4 = vld [vmem:[%s9337_s4 + $0xe] ss:$0 sm:$0xff] }
 0x47b   : > { %v4775_v52 = vadd.f32 %v4743_v23, %v4674_v34  ;;  %v4440_v55 = vmul.f32 %v8220_v42, %v8598_v41  ;;  %v4542_v15 = vmul.f32 %v8232_v16, %v4505_v46  ;;  %v3936_v62 = vmul.f32 %v8718_v51, %v8573_v44  ;;  %v8729_v16 = vld [vmem:[#allocation2 + $0x480] sm:$0xff]  ;;  %v8736_v44 = vld [vmem:[%s9337_s4 + $0xb] ss:$0 sm:$0xff]  ;;  %v3632_v23 = vpop.xlane.xlu2 %3631 }
 0x47c   : > { %v4168_v0 = vadd.f32 %v4136_v8, %v4067_v5  ;;  %v4037_v42 = vmul.f32 %v8725_v58, %v8596_v20  ;;  %v4575_v54 = vadd.f32 %v4543_v48, %v4473_v50  ;;  %v4643_v37 = vmul.f32 %v8246_v27, %v4606_v22  ;;  %v8765_v48 = vld [vmem:[%s9337_s4 + $0xf] ss:$0 sm:$0xff] }
 0x47d   : > { %v4841_v7 = vsel %vm316_vm0, %v4775_v52, 0.0  ;;  %v4744_v56 = vmul.f32 %v8251_v10, %v4707_v17  ;;  %v4138_v2 = vmul.f32 %v8736_v44, %v8598_v41  ;;  %v4240_v59 = vmul.f32 %v8745_v57, %v4505_v46  ;;  %v8754_v41 = vld [vmem:[#allocation2 + $0x482] sm:$0xff] }
 0x47e   : > { %4842 = vadd.xlane.f32.xlu2 %v4841_v7  ;;  %v4270_v20 = vadd.f32 %v4238_v21, %v4168_v0  ;;  %v4069_v33 = vadd.f32 %v4037_v42, %v3936_v62  ;;  %v4341_v9 = vmul.f32 %v8751_v31, %v4606_v22  ;;  %v4676_v19 = vadd.f32 %v4644_v35, %v4575_v54 }
 0x47f   : > { %v4442_v12 = vmul.f32 %v8759_v4, %v4707_v17  ;;  %v4544_v34 = vmul.f32 %v8765_v48, %v8729_v16  ;;  %v3711_v30 = vadd.f32 %v8553_v39, %v3632_v23  ;;  %v4645_v25 = vmul.f32 %v8246_v27, %v8740_v53 }
 0x480   : > { %v4371_v29 = vadd.f32 %v4339_v32, %v4270_v20  ;;  %v4170_v1 = vadd.f32 %v4138_v2, %v4069_v33  ;;  %v3710_v35 = vadd.f32 %v8553_v39, %v3629_v26  ;;  %v4777_v8 = vadd.f32 %v4745_v40, %v4676_v19  ;;  %v8780_v2 = vld [vmem:[#allocation2 + $0x498] sm:$0xff] }
 0x481   : > { %v4746_v52 = vmul.f32 %v8251_v10, %v8754_v41  ;;  %v3743_v5 = vmax.f32 %v3711_v30, 0.0  ;;  %v3709_v21 = vadd.f32 %v8553_v39, %v3626_v24  ;;  %v3938_v42 = vmul.f32 %v8718_v51, %v4505_v46 }
 0x482   : > { %v4472_v50 = vadd.f32 %v4440_v55, %v4371_v29  ;;  %v4272_v7 = vadd.f32 %v4240_v59, %v4170_v1  ;;  %v3742_v0 = vmax.f32 %v3710_v35, 0.0  ;;  %v4847_v62 = vsel %vm316_vm0, %v4777_v8, 0.0  ;;  %v8808_v29 = vld [vmem:[#allocation2 + $0x49a] sm:$0xff]  ;;  %v8813_v1 = vld [vmem:[%s9337_s4 + $0x11] ss:$0 sm:$0xff] }
 0x483   : > { %v3741_v32 = vmax.f32 %v3709_v21, 0.0  ;;  %4848 = vadd.xlane.f32.xlu1 %v4847_v62  ;;  %v4039_v10 = vmul.f32 %v8725_v58, %v4606_v22  ;;  %v8783_v55 = vperm.slane %v3743_v5, %v8556_v14  ;;  %v3854_v20 = vsel %vm3853_vm5, %v8681_v63, %v8690_v11  ;;  %v8799_v63 = vld [vmem:[#allocation2 + $0x499] sm:$0xff] }
 0x484   : > { %v4574_v27 = vadd.f32 %v4542_v15, %v4472_v50  ;;  %v4373_v54 = vadd.f32 %v4341_v9, %v4272_v7  ;;  %v3813_v40 = vperm.slane %v3742_v0, %v8652_v28  ;;  %v4140_v46 = vmul.f32 %v8736_v44, %v4707_v17 }
 0x485   : > { %v3812_v26 = vperm.slane %v3741_v32, %v8556_v14  ;;  %v4071_v59 = vadd.f32 %v4039_v10, %v3938_v42  ;;  %v4242_v9 = vmul.f32 %v8745_v57, %v8729_v16  ;;  %v4343_v23 = vmul.f32 %v8751_v31, %v8740_v53  ;;  %v4508_v32 = vld [vmem:[#allocation2 + $0x488] sm:$0xff] }
 0x486   : > { %v4675_v33 = vadd.f32 %v4643_v37, %v4574_v27  ;;  %v4474_v15 = vadd.f32 %v4442_v12, %v4373_v54  ;;  %v4444_v24 = vmul.f32 %v8759_v4, %v8754_v41  ;;  %v4546_v19 = vmul.f32 %v8765_v48, %v8780_v2  ;;  %v8804_v12 = vld [vmem:[%s9337_s4 + $0x10] ss:$0 sm:$0xff] }
 0x487   : > { %v3814_v22 = vsel %vm3804_vm3, %v3813_v40, %v3812_v26  ;;  %v4172_v37 = vadd.f32 %v4140_v46, %v4071_v59  ;;  %v4647_v30 = vmul.f32 %v8804_v12, %v8799_v63  ;;  %v4038_v35 = vmul.f32 %v8725_v58, %v8637_v18  ;;  %v4609_v27 = vld [vmem:[#allocation2 + $0x489] sm:$0xff] }
 0x488   : > { %v4776_v11 = vadd.f32 %v4744_v56, %v4675_v33  ;;  %v4576_v17 = vadd.f32 %v4544_v34, %v4474_v15  ;;  %v4748_v56 = vmul.f32 %v8813_v1, %v8808_v29  ;;  %v3937_v34 = vmul.f32 %v8718_v51, %v8630_v3  ;;  %v4710_v54 = vld [vmem:[#allocation2 + $0x48a] sm:$0xff]  ;;  %v8841_v33 = vld [vmem:[#allocation2 + $0x4a0] sm:$0xff]  ;;  %v3638_v15 = vpop.xlane.xlu1 %3637 }
 0x489   : > { %v4139_v8 = vmul.f32 %v8736_v44, %v8664_v43  ;;  %v8825_v50 = vsel %vm3855_vm6, %v3814_v22, %v3854_v20  ;;  %v4274_v7 = vadd.f32 %v4242_v9, %v4172_v37  ;;  %v4241_v62 = vmul.f32 %v8745_v57, %v8671_v47 }
 0x48a   : > { %v4844_v5 = vsel %vm316_vm0, %v4776_v11, 0.0  ;;  %v4677_v21 = vadd.f32 %v4645_v25, %v4576_v17  ;;  %v4070_v0 = vadd.f32 %v4038_v35, %v3937_v34  ;;  %v4342_v3 = vmul.f32 %v8751_v31, %v8692_v38 }
 0x48b   : > { %4845 = vadd.xlane.f32.xlu0 %v4844_v5  ;;  %v4443_v18 = vmul.f32 %v8759_v4, %v8701_v49  ;;  %v4375_v42 = vadd.f32 %v4343_v23, %v4274_v7  ;;  %v4545_v25 = vmul.f32 %v8765_v48, %v4508_v32  ;;  %v3939_v40 = vmul.f32 %v8718_v51, %v8671_v47  ;;  %v3635_v23 = vpop.xlane.xlu0 %3634 }
 0x48c   : > { %v4778_v43 = vadd.f32 %v4746_v52, %v4677_v21  ;;  %v4171_v10 = vadd.f32 %v4139_v8, %v4070_v0  ;;  %v4646_v26 = vmul.f32 %v8804_v12, %v4609_v27  ;;  %v4040_v20 = vmul.f32 %v8725_v58, %v8692_v38  ;;  %v3641_v52 = vpop.xlane.xlu2 %3640 }
 0x48d   : > { %v4141_v46 = vmul.f32 %v8736_v44, %v8701_v49  ;;  %v4476_v9 = vadd.f32 %v4444_v24, %v4375_v42  ;;  %v4747_v22 = vmul.f32 %v8813_v1, %v4710_v54  ;;  %v4243_v47 = vmul.f32 %v8745_v57, %v4508_v32 }
 0x48e   : > { %v4850_v59 = vsel %vm316_vm0, %v4778_v43, 0.0  ;;  %v4273_v11 = vadd.f32 %v4241_v62, %v4171_v10  ;;  %v4072_v17 = vadd.f32 %v4040_v20, %v3939_v40  ;;  %v4344_v38 = vmul.f32 %v8751_v31, %v4609_v27 }
 0x48f   : > { %4851 = vadd.xlane.f32.xlu2 %v4850_v59  ;;  %v4445_v37 = vmul.f32 %v8759_v4, %v4710_v54  ;;  %v4578_v49 = vadd.f32 %v4546_v19, %v4476_v9  ;;  %v4547_v34 = vmul.f32 %v8765_v48, %v8841_v33  ;;  %v3714_v35 = vadd.f32 %v8553_v39, %v3641_v52  ;;  %v8854_v19 = vld [vmem:[#allocation2 + $0x4a1] sm:$0xff] }
 0x490   : > { %v3713_v24 = vadd.f32 %v8553_v39, %v3638_v15  ;;  %v4374_v8 = vadd.f32 %v4342_v3, %v4273_v11  ;;  %v4173_v5 = vadd.f32 %v4141_v46, %v4072_v17  ;;  %v3712_v21 = vadd.f32 %v8553_v39, %v3635_v23  ;;  %v8860_v9 = vld [vmem:[#allocation2 + $0x4a2] sm:$0xff]  ;;  %v8870_v11 = vld [vmem:[#allocation2 + $0x4b8] sm:$0xff] }
 0x491   : > { %v4679_v7 = vadd.f32 %v4647_v30, %v4578_v49  ;;  %v3746_v0 = vmax.f32 %v3714_v35, 0.0  ;;  %v3941_v43 = vmul.f32 %v8718_v51, %v4508_v32  ;;  %v4042_v20 = vmul.f32 %v8725_v58, %v4609_v27 }
 0x492   : > { %v3745_v62 = vmax.f32 %v3713_v24, 0.0  ;;  %v4475_v42 = vadd.f32 %v4443_v18, %v4374_v8  ;;  %v4275_v40 = vadd.f32 %v4243_v47, %v4173_v5  ;;  %v3744_v10 = vmax.f32 %v3712_v21, 0.0  ;;  %v8887_v21 = vld [vmem:[#allocation2 + $0x4b9] sm:$0xff] }
 0x493   : > { %v4780_v52 = vadd.f32 %v4748_v56, %v4679_v7  ;;  %v3819_v15 = vperm.slane %v3746_v0, %v8652_v28  ;;  %v4143_v46 = vmul.f32 %v8736_v44, %v4710_v54  ;;  %v4074_v18 = vadd.f32 %v4042_v20, %v3941_v43  ;;  %v8891_v0 = vld [vmem:[#allocation2 + $0x4ba] sm:$0xff] }
 0x494   : > { %v3818_v3 = vperm.slane %v3745_v62, %v8556_v14  ;;  %v4577_v59 = vadd.f32 %v4545_v25, %v4475_v42  ;;  %v4376_v30 = vadd.f32 %v4344_v38, %v4275_v40  ;;  %v3816_v32 = vperm.slane %v3744_v10, %v8652_v28 }
 0x495   : > { %v4856_v47 = vsel %vm316_vm0, %v4780_v52, 0.0  ;;  %v4648_v23 = vmul.f32 %v8804_v12, %v8854_v19  ;;  %v4245_v56 = vmul.f32 %v8745_v57, %v8841_v33  ;;  %v4346_v27 = vmul.f32 %v8751_v31, %v8854_v19  ;;  %v4511_v52 = vld [vmem:[#allocation2 + $0x4b0] sm:$0xff] }
 0x496   : > { %4857 = vadd.xlane.f32.xlu1 %v4856_v47  ;;  %v4678_v25 = vadd.f32 %v4646_v26, %v4577_v59  ;;  %v4477_v54 = vadd.f32 %v4445_v37, %v4376_v30  ;;  %v3817_v17 = vsel %vm3804_vm3, %v3816_v32, %v8783_v55  ;;  %v4175_v38 = vadd.f32 %v4143_v46, %v4074_v18  ;;  %v4612_v46 = vld [vmem:[#allocation2 + $0x4b1] sm:$0xff]  ;;  %v3650_v32 = vpop.xlane.xlu2 %3649  ;;  %v3647_v18 = vpop.xlane.xlu1 %3646 }
 0x497   : > { %v4749_v49 = vmul.f32 %v8813_v1, %v8860_v9  ;;  %v8877_v35 = vsel %vm3804_vm3, %v3819_v15, %v3818_v3  ;;  %v8881_v24 = vsel %vm3857_vm7, %v3817_v17, %v8825_v50  ;;  %v4447_v8 = vmul.f32 %v8759_v4, %v8860_v9  ;;  %v4713_v59 = vld [vmem:[#allocation2 + $0x4b2] sm:$0xff] }
 0x498   : > { %v4779_v5 = vadd.f32 %v4747_v22, %v4678_v25  ;;  %v4579_v26 = vadd.f32 %v4547_v34, %v4477_v54  ;;  %v4277_v37 = vadd.f32 %v4245_v56, %v4175_v38  ;;  %v4549_v55 = vmul.f32 %v8765_v48, %v8870_v11  ;;  %v8916_v25 = vld [vmem:[#allocation2 + $0x4c8] sm:$0xff]  ;;  %v3644_v54 = vpop.xlane.xlu0 %3643 }
 0x499   : > { %v4650_v7 = vmul.f32 %v8804_v12, %v8887_v21  ;;  %v3940_v50 = vmul.f32 %v8718_v51, %v8729_v16  ;;  %v4041_v62 = vmul.f32 %v8725_v58, %v8740_v53  ;;  %v4142_v22 = vmul.f32 %v8736_v44, %v8754_v41 }
 0x49a   : > { %v4853_v34 = vsel %vm316_vm0, %v4779_v5, 0.0  ;;  %v4680_v43 = vadd.f32 %v4648_v23, %v4579_v26  ;;  %v4378_v42 = vadd.f32 %v4346_v27, %v4277_v37  ;;  %v4751_v40 = vmul.f32 %v8813_v1, %v8891_v0  ;;  %v8923_v5 = vld [vmem:[#allocation2 + $0x4ca] sm:$0xff] }
 0x49b   : > { %4854 = vadd.xlane.f32.xlu0 %v4853_v34  ;;  %v4073_v10 = vadd.f32 %v4041_v62, %v3940_v50  ;;  %v4244_v20 = vmul.f32 %v8745_v57, %v8780_v2  ;;  %v4345_v16 = vmul.f32 %v8751_v31, %v8799_v63  ;;  %v4446_v53 = vmul.f32 %v8759_v4, %v8808_v29 }
 0x49c   : > { %v4781_v41 = vadd.f32 %v4749_v49, %v4680_v43  ;;  %v4479_v15 = vadd.f32 %v4447_v8, %v4378_v42  ;;  %v4548_v3 = vmul.f32 %v8765_v48, %v4511_v52  ;;  %v3942_v30 = vmul.f32 %v8718_v51, %v8780_v2  ;;  %v8921_v8 = vld [vmem:[#allocation2 + $0x4c9] sm:$0xff] }
 0x49d   : > { %v4174_v47 = vadd.f32 %v4142_v22, %v4073_v10  ;;  %v4649_v23 = vmul.f32 %v8804_v12, %v4612_v46  ;;  %v4043_v56 = vmul.f32 %v8725_v58, %v8799_v63  ;;  %v4144_v27 = vmul.f32 %v8736_v44, %v8808_v29 }
 0x49e   : > { %v4859_v17 = vsel %vm316_vm0, %v4781_v41, 0.0  ;;  %v4581_v38 = vadd.f32 %v4549_v55, %v4479_v15  ;;  %v4750_v49 = vmul.f32 %v8813_v1, %v4713_v59  ;;  %v4246_v2 = vmul.f32 %v8745_v57, %v4511_v52 }
 0x49f   : > { %4860 = vadd.xlane.f32.xlu2 %v4859_v17  ;;  %v4276_v26 = vadd.f32 %v4244_v20, %v4174_v47  ;;  %v4075_v63 = vadd.f32 %v4043_v56, %v3942_v30  ;;  %v4347_v37 = vmul.f32 %v8751_v31, %v4612_v46  ;;  %v4448_v29 = vmul.f32 %v8759_v4, %v4713_v59 }
 0x4a0   : > { %v4682_v50 = vadd.f32 %v4650_v7, %v4581_v38  ;;  %v4550_v62 = vmul.f32 %v8765_v48, %v8916_v25  ;;  %v3717_v55 = vadd.f32 %v8553_v39, %v3650_v32  ;;  %v3716_v22 = vadd.f32 %v8553_v39, %v3647_v18 }
 0x4a1   : > { %v4377_v34 = vadd.f32 %v4345_v16, %v4276_v26  ;;  %v4176_v43 = vadd.f32 %v4144_v27, %v4075_v63  ;;  %v4651_v42 = vmul.f32 %v8804_v12, %v8921_v8  ;;  %v4752_v10 = vmul.f32 %v8813_v1, %v8923_v5  ;;  %v8941_v26 = vld [vmem:[#allocation2 + $0x4e0] sm:$0xff]  ;;  %v3659_v63 = vpop.xlane.xlu2 %3658 }
 0x4a2   : > { %v4783_v20 = vadd.f32 %v4751_v40, %v4682_v50  ;;  %v3749_v41 = vmax.f32 %v3717_v55, 0.0  ;;  %v3748_v15 = vmax.f32 %v3716_v22, 0.0  ;;  %v3715_v7 = vadd.f32 %v8553_v39, %v3644_v54  ;;  %v8956_v22 = vld [vmem:[#allocation2 + $0x4e2] sm:$0xff] }
 0x4a3   : > { %v4478_v30 = vadd.f32 %v4446_v53, %v4377_v34  ;;  %v4278_v47 = vadd.f32 %v4246_v2, %v4176_v43  ;;  %v3944_v32 = vmul.f32 %v8718_v51, %v4511_v52  ;;  %v4045_v40 = vmul.f32 %v8725_v58, %v4612_v46  ;;  %v3656_v46 = vpop.xlane.xlu1 %3655  ;;  %v3653_v34 = vpop.xlane.xlu0 %3652 }
 0x4a4   : > { %v4865_v18 = vsel %vm316_vm0, %v4783_v20, 0.0  ;;  %v3822_v16 = vperm.slane %v3748_v15, %v8652_v28  ;;  %v3747_v56 = vmax.f32 %v3715_v7, 0.0  ;;  %v4146_v38 = vmul.f32 %v8736_v44, %v4713_v59 }
 0x4a5   : > { %4866 = vadd.xlane.f32.xlu1 %v4865_v18  ;;  %v4580_v27 = vadd.f32 %v4548_v3, %v4478_v30  ;;  %v4379_v17 = vadd.f32 %v4347_v37, %v4278_v47  ;;  %v8944_v53 = vperm.slane %v3749_v41, %v8556_v14  ;;  %v3860_v54 = vsel %vm3859_vm8, %v8877_v35, %v8881_v24  ;;  %v8952_v3 = vld [vmem:[#allocation2 + $0x4e1] sm:$0xff] }
 0x4a6   : > { %v3821_v52 = vperm.slane %v3747_v56, %v8556_v14  ;;  %v4248_v2 = vmul.f32 %v8745_v57, %v8916_v25  ;;  %v4077_v50 = vadd.f32 %v4045_v40, %v3944_v32  ;;  %v4349_v55 = vmul.f32 %v8751_v31, %v8921_v8 }
 0x4a7   : > { %v4681_v37 = vadd.f32 %v4649_v23, %v4580_v27  ;;  %v4480_v59 = vadd.f32 %v4448_v29, %v4379_v17  ;;  %v4450_v35 = vmul.f32 %v8759_v4, %v8923_v5  ;;  %v4552_v24 = vmul.f32 %v8765_v48, %v8941_v26 }
 0x4a8   : > { %v3823_v43 = vsel %vm3804_vm3, %v3822_v16, %v3821_v52  ;;  %v3943_v20 = vmul.f32 %v8718_v51, %v8841_v33  ;;  %v4178_v41 = vadd.f32 %v4146_v38, %v4077_v50  ;;  %v4653_v15 = vmul.f32 %v8804_v12, %v8952_v3  ;;  %v8979_v16 = vld [vmem:[#allocation2 + $0x4d0] sm:$0xff] }
 0x4a9   : > { %v4782_v23 = vadd.f32 %v4750_v49, %v4681_v37  ;;  %v4582_v29 = vadd.f32 %v4550_v62, %v4480_v59  ;;  %v8968_v7 = vsel %vm3861_vm9, %v3823_v43, %v3860_v54  ;;  %v4754_v30 = vmul.f32 %v8813_v1, %v8956_v22  ;;  %9405 = vst [vmem:[#allocation33_spill] sm:$0xff] %v8979_v16  ;;  %v8989_v38 = vld [vmem:[#allocation2 + $0x4d2] sm:$0xff] }
 0x4aa   : > { %v4044_v47 = vmul.f32 %v8725_v58, %v8854_v19  ;;  %v4145_v32 = vmul.f32 %v8736_v44, %v8860_v9  ;;  %v4280_v62 = vadd.f32 %v4248_v2, %v4178_v41  ;;  %v4247_v18 = vmul.f32 %v8745_v57, %v8870_v11  ;;  %9407 = vst [vmem:[#allocation35_spill] sm:$0xff] %v8989_v38  ;;  %v8995_v2 = vld [vmem:[#allocation2 + $0x4e8] sm:$0xff] }
 0x4ab   : > { %v4862_v33 = vsel %vm316_vm0, %v4782_v23, 0.0  ;;  %v4683_v49 = vadd.f32 %v4651_v42, %v4582_v29  ;;  %v4348_v27 = vmul.f32 %v8751_v31, %v8887_v21  ;;  %v4449_v19 = vmul.f32 %v8759_v4, %v8891_v0  ;;  %v8987_v42 = vld [vmem:[#allocation2 + $0x4d1] sm:$0xff]  ;;  %9408 = vst [vmem:[#allocation36_spill] sm:$0xff] %v8995_v2 }
 0x4ac   : > { %4863 = vadd.xlane.f32.xlu0 %v4862_v33  ;;  %v4076_v56 = vadd.f32 %v4044_v47, %v3943_v20  ;;  %v4551_v9 = vmul.f32 %v8765_v48, %v8979_v16  ;;  %v4381_v40 = vadd.f32 %v4349_v55, %v4280_v62  ;;  %9406 = vst [vmem:[#allocation34_spill] sm:$0xff] %v8987_v42  ;;  %v9014_v47 = vpop.xlane.xlu2 %3667 }
 0x4ad   : > { %v4784_v17 = vadd.f32 %v4752_v10, %v4683_v49  ;;  %v3945_v52 = vmul.f32 %v8718_v51, %v8870_v11  ;;  %v4046_v54 = vmul.f32 %v8725_v58, %v8887_v21  ;;  %v4652_v59 = vmul.f32 %v8804_v12, %v8987_v42  ;;  %v9006_v21 = vld [vmem:[#allocation2 + $0x4e9] sm:$0xff] }
 0x4ae   : > { %v4177_v37 = vadd.f32 %v4145_v32, %v4076_v56  ;;  %v4753_v10 = vmul.f32 %v8813_v1, %v8989_v38  ;;  %v4147_v50 = vmul.f32 %v8736_v44, %v8891_v0  ;;  %v4482_v43 = vadd.f32 %v4450_v35, %v4381_v40  ;;  %9409 = vst [vmem:[#allocation37_spill] sm:$0xff] %v9006_v21  ;;  %v9016_v35 = vpop.xlane.xlu1 %3664  ;;  %v3995_v56 = vld [vmem:[#allocation2 + $0x411] sm:$0xff] }
 0x4af   : > { %v4868_v55 = vsel %vm316_vm0, %v4784_v17, 0.0  ;;  %v4078_v20 = vadd.f32 %v4046_v54, %v3945_v52  ;;  %v4249_v11 = vmul.f32 %v8745_v57, %v8979_v16  ;;  %v4350_v29 = vmul.f32 %v8751_v31, %v8987_v42  ;;  %v9020_v17 = vpop.xlane.xlu0 %3661  ;;  %v9029_v16 = vld [vmem:[#allocation2 + $0x4ea] sm:$0xff] }
 0x4b0   : > { %4869 = vadd.xlane.f32.xlu2 %v4868_v55  ;;  %v4279_v23 = vadd.f32 %v4247_v18, %v4177_v37  ;;  %v4451_v41 = vmul.f32 %v8759_v4, %v8989_v38  ;;  %v4553_v0 = vmul.f32 %v8765_v48, %v8995_v2  ;;  %v4584_v32 = vadd.f32 %v4552_v24, %v4482_v43  ;;  %v3894_v18 = vld [vmem:[#allocation2 + $0x410] sm:$0xff] }
 0x4b1   : > { %v4179_v33 = vadd.f32 %v4147_v50, %v4078_v20  ;;  %v3720_v49 = vadd.f32 %v8553_v39, %v3659_v63  ;;  %v3719_v62 = vadd.f32 %v8553_v39, %v3656_v46  ;;  %v4654_v52 = vmul.f32 %v8804_v12, %v9006_v21  ;;  %v4096_v50 = vld [vmem:[#allocation2 + $0x412] sm:$0xff] }
 0x4b2   : > { %v4380_v40 = vadd.f32 %v4348_v27, %v4279_v23  ;;  %v3718_v54 = vadd.f32 %v8553_v39, %v3653_v34  ;;  %v4685_v37 = vadd.f32 %v4653_v15, %v4584_v32  ;;  %v3931_v46 = vmul.f32 %v8718_v51, %v3894_v18  ;;  %v4095_v18 = vld [vmem:[#allocation2 + $0x40a] sm:$0xff] }
 0x4b3   : > { %v4281_v55 = vadd.f32 %v4249_v11, %v4179_v33  ;;  %v3752_v2 = vmax.f32 %v3720_v49, 0.0  ;;  %v3751_v24 = vmax.f32 %v3719_v62, 0.0  ;;  %v4032_v20 = vmul.f32 %v8725_v58, %v3995_v56  ;;  %v3893_v49 = vld [vmem:[#allocation2 + $0x408] sm:$0xff] }
 0x4b4   : > { %v4481_v43 = vadd.f32 %v4449_v19, %v4380_v40  ;;  %v3750_v63 = vmax.f32 %v3718_v54, 0.0  ;;  %v4786_v38 = vadd.f32 %v4754_v30, %v4685_v37  ;;  %v4133_v11 = vmul.f32 %v8736_v44, %v4096_v50  ;;  %v3994_v62 = vld [vmem:[#allocation2 + $0x409] sm:$0xff]  ;;  %v9053_v40 = vpop.xlane.xlu2 %3676  ;;  %v4501_v50 = vld [vmem:[#allocation2 + $0x438] sm:$0xff] }
 0x4b5   : > { %v4382_v42 = vadd.f32 %v4350_v29, %v4281_v55  ;;  %v3828_v27 = vperm.slane %v3752_v2, %v8652_v28  ;;  %v3827_v23 = vperm.slane %v3751_v24, %v8556_v14  ;;  %v4064_v15 = vadd.f32 %v4032_v20, %v3931_v46  ;;  %v4399_v24 = vld [vmem:[#allocation2 + $0x422] sm:$0xff] }
 0x4b6   : > { %v4583_v21 = vadd.f32 %v4551_v9, %v4481_v43  ;;  %v3825_v34 = vperm.slane %v3750_v63, %v8652_v28  ;;  %v4874_v19 = vsel %vm316_vm0, %v4786_v38, 0.0  ;;  %v4235_v30 = vmul.f32 %v8745_v57, %v8593_v36  ;;  %v9055_v54 = vpop.xlane.xlu1 %3673 }
 0x4b7   : > { %v4483_v32 = vadd.f32 %v4451_v41, %v4382_v42  ;;  %4875 = vadd.xlane.f32.xlu1 %v4874_v19  ;;  %v4165_v29 = vadd.f32 %v4133_v11, %v4064_v15  ;;  %v4336_v33 = vmul.f32 %v8751_v31, %v8604_v60  ;;  %v4755_v42 = vmul.f32 %v8813_v1, %v9029_v16  ;;  %v4197_v41 = vld [vmem:[#allocation2 + $0x420] sm:$0xff]  ;;  %v9060_v43 = vpop.xlane.xlu0 %3670 }
 0x4b8   : > { %v4684_v2 = vadd.f32 %v4652_v59, %v4583_v21  ;;  %v3826_v9 = vsel %vm3804_vm3, %v3825_v34, %v8944_v53  ;;  %v9043_v38 = vsel %vm3804_vm3, %v3828_v27, %v3827_v23  ;;  %v4437_v60 = vmul.f32 %v8759_v4, %v8612_v45 }
 0x4b9   : > { %v4585_v56 = vadd.f32 %v4553_v0, %v4483_v32  ;;  %v3864_v36 = vsel %vm3863_vm10, %v3826_v9, %v8968_v7  ;;  %v4267_v53 = vadd.f32 %v4235_v30, %v4165_v29  ;;  %v4539_v21 = vmul.f32 %v8765_v48, %v8618_v13  ;;  %v4298_v0 = vld [vmem:[#allocation2 + $0x421] sm:$0xff]  ;;  %v4602_v30 = vld [vmem:[#allocation2 + $0x439] sm:$0xff] }
 0x4ba   : > { %v4785_v59 = vadd.f32 %v4753_v10, %v4684_v2  ;;  %3875 = vst.msk [vmem:[%s6493_s14] sm:$0xff] %vm3874_vm11, %v3864_v36  ;;  %v3930_v55 = vmul.f32 %v8718_v51, %v3893_v49  ;;  %v4031_v7 = vmul.f32 %v8725_v58, %v3994_v62  ;;  %v4132_v10 = vmul.f32 %v8736_v44, %v4095_v18  ;;  %v4703_v29 = vld [vmem:[#allocation2 + $0x43a] sm:$0xff] }
 0x4bb   : > { %v4686_v37 = vadd.f32 %v4654_v52, %v4585_v56  ;;  %v4368_v13 = vadd.f32 %v4336_v33, %v4267_v53  ;;  %v4640_v63 = vmul.f32 %v8804_v12, %v8626_v61  ;;  %v4741_v46 = vmul.f32 %v8813_v1, %v8628_v6  ;;  %v4517_v53 = vld [vmem:[#allocation2 + $0x4f8] sm:$0xff] }
 0x4bc   : > { %v4871_v45 = vsel %vm316_vm0, %v4785_v59, 0.0  ;;  %v4063_v20 = vadd.f32 %v4031_v7, %v3930_v55  ;;  %v4234_v27 = vmul.f32 %v8745_v57, %v4197_v41  ;;  %v4335_v23 = vmul.f32 %v8751_v31, %v4298_v0 }
 0x4bd   : > { %4872 = vadd.xlane.f32.xlu0 %v4871_v45  ;;  %v4787_v52 = vadd.f32 %v4755_v42, %v4686_v37  ;;  %v4469_v34 = vadd.f32 %v4437_v60, %v4368_v13  ;;  %v4436_v15 = vmul.f32 %v8759_v4, %v4399_v24  ;;  %v4538_v11 = vmul.f32 %v8765_v48, %v4501_v50  ;;  %v3686_v60 = vpop.xlane.xlu2 %3685  ;;  %v4618_v37 = vld [vmem:[#allocation2 + $0x4f9] sm:$0xff] }
 0x4be   : > { %v3723_v19 = vadd.f32 %v8553_v39, %v9014_v47  ;;  %v4164_v32 = vadd.f32 %v4132_v10, %v4063_v20  ;;  %v3722_v6 = vadd.f32 %v8553_v39, %v9016_v35  ;;  %v3721_v2 = vadd.f32 %v8553_v39, %v9020_v17  ;;  %v4719_v24 = vld [vmem:[#allocation2 + $0x4fa] sm:$0xff] }
 0x4bf   : > { %v4877_v61 = vsel %vm316_vm0, %v4787_v52, 0.0  ;;  %v4571_v9 = vadd.f32 %v4539_v21, %v4469_v34  ;;  %v3946_v49 = vmul.f32 %v8718_v51, %v8916_v25  ;;  %v4047_v47 = vmul.f32 %v8725_v58, %v8921_v8  ;;  %v3683_v21 = vpop.xlane.xlu1 %3682  ;;  %v3680_v55 = vpop.xlane.xlu0 %3679  ;;  %v4518_v34 = vld [vmem:[#allocation2 + $0x500] sm:$0xff] }
 0x4c0   : > { %4878 = vadd.xlane.f32.xlu2 %v4877_v61  ;;  %v3755_v33 = vmax.f32 %v3723_v19, 0.0  ;;  %v4266_v62 = vadd.f32 %v4234_v27, %v4164_v32  ;;  %v3754_v18 = vmax.f32 %v3722_v6, 0.0  ;;  %v3753_v56 = vmax.f32 %v3721_v2, 0.0  ;;  %v9410_v27 = vld [vmem:[#allocation33_spill] sm:$0xff]  ;;  %v9411_v19 = vld [vmem:[#allocation34_spill] sm:$0xff]  ;;  %v9412_v32 = vld [vmem:[#allocation35_spill] sm:$0xff] }
 0x4c1   : > { %v4148_v42 = vmul.f32 %v8736_v44, %v8923_v5  ;;  %v4672_v35 = vadd.f32 %v4640_v63, %v4571_v9  ;;  %v4639_v36 = vmul.f32 %v8804_v12, %v4602_v30  ;;  %v4079_v17 = vadd.f32 %v4047_v47, %v3946_v49  ;;  %v9413_v2 = vld [vmem:[#allocation36_spill] sm:$0xff] }
 0x4c2   : > { %v4250_v59 = vmul.f32 %v8745_v57, %v8941_v26  ;;  %v4367_v25 = vadd.f32 %v4335_v23, %v4266_v62  ;;  %v4740_v41 = vmul.f32 %v8813_v1, %v4703_v29  ;;  %v3831_v8 = vperm.slane %v3754_v18, %v8652_v28  ;;  %v9414_v29 = vld [vmem:[#allocation37_spill] sm:$0xff] }
 0x4c3   : > { %v3830_v0 = vperm.slane %v3753_v56, %v8556_v14  ;;  %v4773_v5 = vadd.f32 %v4741_v46, %v4672_v35  ;;  %v9091_v7 = vperm.slane %v3755_v33, %v8556_v14  ;;  %v4180_v10 = vadd.f32 %v4148_v42, %v4079_v17  ;;  %v4619_v35 = vld [vmem:[#allocation2 + $0x501] sm:$0xff] }
 0x4c4   : > { %v4351_v26 = vmul.f32 %v8751_v31, %v8952_v3  ;;  %v4468_v50 = vadd.f32 %v4436_v15, %v4367_v25  ;;  %v4452_v13 = vmul.f32 %v8759_v4, %v8956_v22  ;;  %v4554_v63 = vmul.f32 %v8765_v48, %v4517_v53 }
 0x4c5   : > { %v3832_v45 = vsel %vm3804_vm3, %v3831_v8, %v3830_v0  ;;  %v4835_v52 = vsel %vm316_vm0, %v4773_v5, 0.0  ;;  %v4282_v20 = vadd.f32 %v4250_v59, %v4180_v10  ;;  %v4655_v46 = vmul.f32 %v8804_v12, %v4618_v37  ;;  %v3695_v62 = vpop.xlane.xlu2 %3694 }
 0x4c6   : > { %v3947_v23 = vmul.f32 %v8718_v51, %v9410_v27  ;;  %4836 = vadd.xlane.f32.xlu1 %v4835_v52  ;;  %v4570_v3 = vadd.f32 %v4538_v11, %v4468_v50  ;;  %v4756_v15 = vmul.f32 %v8813_v1, %v4719_v24  ;;  %v4048_v61 = vmul.f32 %v8725_v58, %v9411_v19 }
 0x4c7   : > { %v4149_v22 = vmul.f32 %v8736_v44, %v9412_v32  ;;  %v3865_v30 = vsel %vm3851_vm4, %v3832_v45, %v9043_v38  ;;  %v4383_v6 = vadd.f32 %v4351_v26, %v4282_v20  ;;  %v4251_v9 = vmul.f32 %v8745_v57, %v9413_v2  ;;  %v3692_v18 = vpop.xlane.xlu1 %3691 }
 0x4c8   : > { %v4352_v51 = vmul.f32 %v8751_v31, %v9414_v29  ;;  %v4671_v33 = vadd.f32 %v4639_v36, %v4570_v3  ;;  %v4080_v11 = vadd.f32 %v4048_v61, %v3947_v23  ;;  %v4453_v49 = vmul.f32 %v8759_v4, %v9029_v16  ;;  %v3689_v16 = vpop.xlane.xlu0 %3688 }
 0x4c9   : > { %v4555_v58 = vmul.f32 %v8765_v48, %v4518_v34  ;;  %v4484_v47 = vadd.f32 %v4452_v13, %v4383_v6  ;;  %v3726_v44 = vadd.f32 %v8553_v39, %v9053_v40  ;;  %v3725_v38 = vadd.f32 %v8553_v39, %v9055_v54  ;;  %v4720_v40 = vld [vmem:[#allocation2 + $0x502] sm:$0xff] }
 0x4ca   : > { %v3724_v57 = vadd.f32 %v8553_v39, %v9060_v43  ;;  %v4772_v31 = vadd.f32 %v4740_v41, %v4671_v33  ;;  %v4181_v56 = vadd.f32 %v4149_v22, %v4080_v11  ;;  %v3729_v42 = vadd.f32 %v8553_v39, %v3686_v60 }
 0x4cb   : > { %v3728_v4 = vadd.f32 %v8553_v39, %v3683_v21  ;;  %v4586_v48 = vadd.f32 %v4554_v63, %v4484_v47  ;;  %v3758_v36 = vmax.f32 %v3726_v44, 0.0  ;;  %v3757_v17 = vmax.f32 %v3725_v38, 0.0 }
 0x4cc   : > { %v3756_v54 = vmax.f32 %v3724_v57, 0.0  ;;  %v4832_v59 = vsel %vm316_vm0, %v4772_v31, 0.0  ;;  %v4283_v43 = vadd.f32 %v4251_v9, %v4181_v56  ;;  %v3761_v53 = vmax.f32 %v3729_v42, 0.0 }
 0x4cd   : > { %v3760_v25 = vmax.f32 %v3728_v4, 0.0  ;;  %4833 = vadd.xlane.f32.xlu0 %v4832_v59  ;;  %v4687_v41 = vadd.f32 %v4655_v46, %v4586_v48  ;;  %v3837_v60 = vperm.slane %v3758_v36, %v8652_v28  ;;  %v3836_v21 = vperm.slane %v3757_v17, %v8556_v14  ;;  %v4792_v27 = vpop.xlane.xlu2 %4791 }
 0x4ce   : > { %v3834_v8 = vperm.slane %v3756_v54, %v8652_v28  ;;  %v4384_v0 = vadd.f32 %v4352_v51, %v4283_v43  ;;  %v4656_v37 = vmul.f32 %v8804_v12, %v4619_v35  ;;  %v4757_v5 = vmul.f32 %v8813_v1, %v4720_v40 }
 0x4cf   : > { %v3727_v10 = vadd.f32 %v8553_v39, %v3680_v55  ;;  %v4788_v26 = vadd.f32 %v4756_v15, %v4687_v41  ;;  %v3842_v24 = vperm.slane %v3761_v53, %v8556_v14  ;;  %v3840_v50 = vperm.slane %v3760_v25, %v8652_v28  ;;  %v3701_v23 = vpop.xlane.xlu1 %3700 }
 0x4d0   : > { %v3732_v45 = vadd.f32 %v8553_v39, %v3695_v62  ;;  %v4485_v13 = vadd.f32 %v4453_v49, %v4384_v0  ;;  %v3835_v63 = vsel %vm3804_vm3, %v3834_v8, %v9091_v7  ;;  %v3731_v12 = vadd.f32 %v8553_v39, %v3692_v18  ;;  %v3698_v7 = vpop.xlane.xlu0 %3697 }
 0x4d1   : > { %v3759_v52 = vmax.f32 %v3727_v10, 0.0  ;;  %v4880_v1 = vsel %vm316_vm0, %v4788_v26, 0.0  ;;  %v3838_v55 = vsel %vm3804_vm3, %v3837_v60, %v3836_v21  ;;  %v3730_v46 = vadd.f32 %v8553_v39, %v3689_v16 }
 0x4d2   : > { %v3764_v20 = vmax.f32 %v3732_v45, 0.0  ;;  %4881 = vadd.xlane.f32.xlu2 %v4880_v1  ;;  %v4587_v34 = vadd.f32 %v4555_v58, %v4485_v13  ;;  %v3763_v15 = vmax.f32 %v3731_v12, 0.0  ;;  %v9145_v19 = vstv %s9125_s22 }
 0x4d3   : > { %v3839_v3 = vperm.slane %v3759_v52, %v8556_v14  ;;  %v3866_v61 = vsel %vm3853_vm5, %v3835_v63, %v3865_v30  ;;  %v3762_v22 = vmax.f32 %v3730_v46, 0.0  ;;  %v3734_v6 = vadd.f32 %v8553_v39, %v3701_v23 }
 0x4d4   : > { %v3846_v32 = vperm.slane %v3764_v20, %v8652_v28  ;;  %v4688_v2 = vadd.f32 %v4656_v37, %v4587_v34  ;;  %v3845_v29 = vperm.slane %v3763_v15, %v8556_v14  ;;  %v3733_v51 = vadd.f32 %v8553_v39, %v3698_v7 }
 0x4d5   : > { %v3841_v9 = vsel %vm3804_vm3, %v3840_v50, %v3839_v3  ;;  %v3843_v33 = vperm.slane %v3762_v22, %v8652_v28  ;;  %v4887_v30 = vadd.f32 %v9145_v19, %v4792_v27  ;;  %v3766_v11 = vmax.f32 %v3734_v6, 0.0  ;;  %v4801_v42 = vpop.xlane.xlu2 %4800 }
 0x4d6   : > { %v4789_v49 = vadd.f32 %v4757_v5, %v4688_v2  ;;  %v3867_v58 = vsel %vm3855_vm6, %v3838_v55, %v3866_v61  ;;  %v3765_v47 = vmax.f32 %v3733_v51, 0.0  ;;  %v3847_v38 = vsel %vm3804_vm3, %v3846_v32, %v3845_v29 }
 0x4d7   : > { %v3868_v44 = vsel %vm3857_vm7, %v3841_v9, %v3867_v58  ;;  %v3844_v57 = vsel %vm3804_vm3, %v3843_v33, %v3842_v24  ;;  %v3849_v62 = vperm.slane %v3766_v11, %v8652_v28  ;;  %v4919_v56 = vmax.f32 %v4887_v30, 0.0  ;;  %v4798_v4 = vpop.xlane.xlu1 %4797 }
 0x4d8   : > { %v4883_v39 = vsel %vm316_vm0, %v4789_v49, 0.0  ;;  %v3869_v18 = vsel %vm3859_vm8, %v3844_v57, %v3868_v44  ;;  %v3848_v31 = vperm.slane %v3765_v47, %v8556_v14  ;;  %v4890_v35 = vadd.f32 %v9145_v19, %v4801_v42  ;;  %v4795_v36 = vpop.xlane.xlu0 %4794 }
 0x4d9   : > { %4884 = vadd.xlane.f32.xlu0 %v4883_v39  ;;  %v3870_v48 = vsel %vm3861_vm9, %v3847_v38, %v3869_v18  ;;  %v4889_v40 = vadd.f32 %v9145_v19, %v4798_v4  ;;  %v4888_v54 = vadd.f32 %v9145_v19, %v4795_v36  ;;  %v4983_v53 = vperm.slane %v4919_v56, %v8556_v14 }
 0x4da   : > { %v3850_v16 = vsel %vm3804_vm3, %v3849_v62, %v3848_v31  ;;  %v4922_v59 = vmax.f32 %v4890_v35, 0.0 }
 0x4db   : > { %v3871_v17 = vsel %vm3863_vm10, %v3850_v16, %v3870_v48  ;;  %v4921_v43 = vmax.f32 %v4889_v40, 0.0  ;;  %v4920_v25 = vmax.f32 %v4888_v54, 0.0 }
 0x4dc   : > { %3876 = vst.msk [vmem:[%s6493_s14 + $0x8] sm:$0xff] %vm3874_vm11, %v3871_v17 }
 0x4dd   : > { %5975 = shalt.err (!%p5972_p9)
}
 0x4de   : > { %s6063_s14 = smov 128   ;;  %s6064_s9 = smov 8   ;;  %v4987_v41 = vperm.slane %v4922_v59, %v8652_v28  ;;  %v4986_v60 = vperm.slane %v4921_v43, %v8556_v14  ;;  %v4984_v21 = vperm.slane %v4920_v25, %v8652_v28  ;;  %v4810_v24 = vpop.xlane.xlu2 %4809 }
 0x4df   : > { %5813 = dma.vmem_to_hbm [thread:$0]  (%p6143_p5), %s9170_s18, 256, %s9172_s19, %s5050_s23, %s6063_s14, %s6063_s14, %s6064_s9   ;;  %v4807_v5 = vpop.xlane.xlu1 %4806  ;;  %v4893_v32 = vadd.f32 %v9145_v19, %v4810_v24 }
 0x4e0   : > { %v4988_v8 = vsel %vm3804_vm3, %v4987_v41, %v4986_v60  ;;  %v4985_v0 = vsel %vm3804_vm3, %v4984_v21, %v4983_v53  ;;  %v4804_v10 = vpop.xlane.xlu0 %4803  ;;  %v4892_v7 = vadd.f32 %v9145_v19, %v4807_v5  ;;  %s9415_s18 = sshll.u32 %s6126_s28, 4  ;;  %s5084_s8 = sshll.u32 %s6497_s15, 4  ;;  %s5085_s8 = int_to_ptr.vmem [resolvable:$true] %s5084_s8 }
 0x4e1   : > { %v5031_v37 = vsel %vm3851_vm4, %v4988_v8, %v4985_v0  ;;  %v4891_v61 = vadd.f32 %v9145_v19, %v4804_v10  ;;  %v4925_v33 = vmax.f32 %v4893_v32, 0.0  ;;  %s5083_s29 = scalar_lea.hbm %s9340_s7, %s9415_s18  ;;  %s5055_s16 = scalar_lea.sflag [#allocation10], %s6171_s21 }
 0x4e2   : > { %v4924_v29 = vmax.f32 %v4892_v7, 0.0  ;;  %s5086_s28 = sshll.u32 %s5083_s29, 4  ;;  %s5996_s18 = scalar_lea.hbm %s9340_s7, 32  ;;  %s5087_s28 = int_to_ptr.hbm [resolvable:$true] %s5086_s28 }
 0x4e3   : > { %v4923_v51 = vmax.f32 %v4891_v61, 0.0  ;;  %v4992_v38 = vperm.slane %v4925_v33, %v8556_v14  ;;  %s5990_s22 = sshra.s32 %s5087_s28, 4  ;;  %s5991_s22 = int_to_ptr.hbm [resolvable:$true] %s5990_s22 }
 0x4e4   : > { %v4990_v47 = vperm.slane %v4924_v29, %v8652_v28  ;;  %s5992_s17 = scalar_lea.hbm %s5991_s22, 16  ;;  %p5997_p13 = scmp.lt.s32.totalorder %s5991_s22, %s9340_s7 }
 0x4e5   : > { %v4989_v44 = vperm.slane %v4923_v51, %v8556_v14  ;;  %p5993_p10 = scmp.ne.s32.totalorder %s5991_s22, %s5992_s17  ;;  %p5998_p0 = scmp.lt.s32.totalorder %s5996_s18, %s5992_s17 }
 0x4e6   : > { %v4819_v13 = vpop.xlane.xlu2 %4818 }
 0x4e7   : > { %v4816_v26 = vpop.xlane.xlu1 %4815  ;;  %v4896_v9 = vadd.f32 %v9145_v19, %v4819_v13  ;;  %v4991_v16 = vsel %vm3804_vm3, %v4990_v47, %v4989_v44  ;;  %p5994_p11 = pnand %p5993_p10, %p6143_p5  ;;  %p5999_p1 = por %p5998_p0, %p5997_p13 }
 0x4e8   : > { %v4813_v50 = vpop.xlane.xlu0 %4812  ;;  %v4895_v2 = vadd.f32 %v9145_v19, %v4816_v26  ;;  %v5032_v53 = vsel %vm3853_vm5, %v4991_v16, %v5031_v37 }
 0x4e9   : > { %v4894_v22 = vadd.f32 %v9145_v19, %v4813_v50  ;;  %v4928_v58 = vmax.f32 %v4896_v9, 0.0  ;;  %p5995_p12 = pneg %p5994_p11 }
 0x4ea   : > { %v4927_v49 = vmax.f32 %v4895_v2, 0.0 }
 0x4eb   : > { %v4926_v30 = vmax.f32 %v4894_v22, 0.0  ;;  %v4996_v4 = vperm.slane %v4928_v58, %v8652_v28  ;;  %p6000_p2 = pnand %p5999_p1, %p5995_p12 }
 0x4ec   : > { %v4995_v42 = vperm.slane %v4927_v49, %v8556_v14 }
 0x4ed   : > { %v4993_v57 = vperm.slane %v4926_v30, %v8652_v28 }
 0x4ee   : > { %v4828_v12 = vpop.xlane.xlu2 %4827  ;;  %v4997_v25 = vsel %vm3804_vm3, %v4996_v4, %v4995_v42 }
 0x4ef   : > { %v4825_v45 = vpop.xlane.xlu1 %4824  ;;  %v4899_v31 = vadd.f32 %v9145_v19, %v4828_v12  ;;  %v4994_v35 = vsel %vm3804_vm3, %v4993_v57, %v4992_v38 }
 0x4f0   : > { %v4822_v63 = vpop.xlane.xlu0 %4821  ;;  %v4898_v62 = vadd.f32 %v9145_v19, %v4825_v45  ;;  %v5033_v21 = vsel %vm3855_vm6, %v4994_v35, %v5032_v53 }
 0x4f1   : > { %v4897_v39 = vadd.f32 %v9145_v19, %v4822_v63  ;;  %v4931_v17 = vmax.f32 %v4899_v31, 0.0  ;;  %v5034_v63 = vsel %vm3857_vm7, %v4997_v25, %v5033_v21 }
 0x4f2   : > { %v4930_v40 = vmax.f32 %v4898_v62, 0.0 }
 0x4f3   : > { %v4929_v36 = vmax.f32 %v4897_v39, 0.0  ;;  %v5001_v37 = vperm.slane %v4931_v17, %v8556_v14 }
 0x4f4   : > { %v4999_v10 = vperm.slane %v4930_v40, %v8652_v28 }
 0x4f5   : > { %v4998_v26 = vperm.slane %v4929_v36, %v8556_v14 }
 0x4f6   : > { %v4843_v20 = vpop.xlane.xlu2 %4842 }
 0x4f7   : > { %v4840_v52 = vpop.xlane.xlu1 %4839  ;;  %v4904_v43 = vadd.f32 %v9145_v19, %v4843_v20 }
 0x4f8   : > { %v4831_v1 = vpop.xlane.xlu0 %4830  ;;  %v4903_v54 = vadd.f32 %v9145_v19, %v4840_v52 }
 0x4f9   : > { %v4900_v56 = vadd.f32 %v9145_v19, %v4831_v1  ;;  %v4936_v13 = vmax.f32 %v4904_v43, 0.0 }
 0x4fa   : > { %v4935_v50 = vmax.f32 %v4903_v54, 0.0 }
 0x4fb   : > { %v4932_v59 = vmax.f32 %v4900_v56, 0.0  ;;  %v5008_v2 = vperm.slane %v4936_v13, %v8652_v28 }
 0x4fc   : > { %v5007_v32 = vperm.slane %v4935_v50, %v8556_v14 }
 0x4fd   : > { %v5002_v45 = vperm.slane %v4932_v59, %v8652_v28 }
 0x4fe   : > { %v5009_v31 = vsel %vm3804_vm3, %v5008_v2, %v5007_v32 }
 0x4ff   : > { %v4849_v55 = vpop.xlane.xlu1 %4848  ;;  %v5003_v22 = vsel %vm3804_vm3, %v5002_v45, %v5001_v37 }
 0x500   : > { %v4846_v46 = vpop.xlane.xlu0 %4845  ;;  %v4906_v41 = vadd.f32 %v9145_v19, %v4849_v55 }
 0x501   : > { %v4905_v8 = vadd.f32 %v9145_v19, %v4846_v46 }
 0x502   : > { %v4852_v23 = vpop.xlane.xlu2 %4851  ;;  %v4938_v52 = vmax.f32 %v4906_v41, 0.0 }
 0x503   : > { %v4907_v0 = vadd.f32 %v9145_v19, %v4852_v23  ;;  %v4937_v1 = vmax.f32 %v4905_v8, 0.0  ;;  %v5000_v23 = vsel %vm3804_vm3, %v4999_v10, %v4998_v26 }
 0x504   : > { %v5011_v51 = vperm.slane %v4938_v52, %v8652_v28  ;;  %v5035_v57 = vsel %vm3859_vm8, %v5000_v23, %v5034_v63 }
 0x505   : > { %v4939_v55 = vmax.f32 %v4907_v0, 0.0 }
 0x507   : > { %v5013_v30 = vperm.slane %v4939_v55, %v8556_v14 }
 0x509   : > { %v4858_v27 = vpop.xlane.xlu1 %4857 }
 0x50a   : > { %v4909_v20 = vadd.f32 %v9145_v19, %v4858_v27 }
 0x50c   : > { %v4941_v49 = vmax.f32 %v4909_v20, 0.0 }
 0x50e   : > { %v4855_v34 = vpop.xlane.xlu0 %4854  ;;  %v5016_v40 = vperm.slane %v4941_v49, %v8556_v14 }
 0x50f   : > { %v4908_v5 = vadd.f32 %v9145_v19, %v4855_v34 }
 0x511   : > { %v4940_v46 = vmax.f32 %v4908_v5, 0.0 }
 0x512   : > { %v4861_v15 = vpop.xlane.xlu2 %4860 }
 0x513   : > { %v4910_v34 = vadd.f32 %v9145_v19, %v4861_v15  ;;  %v5014_v58 = vperm.slane %v4940_v46, %v8652_v28 }
 0x515   : > { %v4942_v47 = vmax.f32 %v4910_v34, 0.0  ;;  %v5015_v36 = vsel %vm3804_vm3, %v5014_v58, %v5013_v30 }
 0x518   : > { %v4867_v3 = vpop.xlane.xlu1 %4866 }
 0x519   : > { %v4912_v7 = vadd.f32 %v9145_v19, %v4867_v3  ;;  %v5010_v3 = vperm.slane %v4937_v1, %v8556_v14 }
 0x51b   : > { %v4944_v44 = vmax.f32 %v4912_v7, 0.0  ;;  %v5012_v35 = vsel %vm3804_vm3, %v5011_v51, %v5010_v3 }
 0x51c   : > { %v5038_v8 = vsel %vm3851_vm4, %v5012_v35, %v5009_v31 }
 0x51d   : > { %v5020_v17 = vperm.slane %v4944_v44, %v8652_v28  ;;  %v5039_v0 = vsel %vm3853_vm5, %v5015_v36, %v5038_v8 }
 0x51f   : > { %v4864_v6 = vpop.xlane.xlu0 %4863 }
 0x520   : > { %v4911_v9 = vadd.f32 %v9145_v19, %v4864_v6 }
 0x522   : > { %v4943_v62 = vmax.f32 %v4911_v9, 0.0 }
 0x523   : > { %v4870_v18 = vpop.xlane.xlu2 %4869 }
 0x524   : > { %v4913_v27 = vadd.f32 %v9145_v19, %v4870_v18  ;;  %v5019_v43 = vperm.slane %v4943_v62, %v8556_v14 }
 0x526   : > { %v4945_v56 = vmax.f32 %v4913_v27, 0.0  ;;  %v5021_v26 = vsel %vm3804_vm3, %v5020_v17, %v5019_v43 }
 0x52a   : > { %v9212_v11 = vpop.xlane.xlu1 %4875 }
 0x52b   : > { %v4915_v39 = vadd.f32 %v9145_v19, %v9212_v11  ;;  %v5017_v11 = vperm.slane %v4942_v47, %v8652_v28 }
 0x52d   : > { %v4947_v53 = vmax.f32 %v4915_v39, 0.0  ;;  %v5018_v5 = vsel %vm3804_vm3, %v5017_v11, %v5016_v40 }
 0x52e   : > { %v5040_v63 = vsel %vm3855_vm6, %v5018_v5, %v5039_v0 }
 0x52f   : > { %v5041_v52 = vsel %vm3857_vm7, %v5021_v26, %v5040_v63 }
 0x530   : > { %v4873_v48 = vpop.xlane.xlu0 %4872 }
 0x531   : > { %v4914_v33 = vadd.f32 %v9145_v19, %v4873_v48  ;;  %v5036_v48 = vsel %vm3861_vm9, %v5003_v22, %v5035_v57 }
 0x533   : > { %v4879_v12 = vpop.xlane.xlu2 %4878  ;;  %v4946_v42 = vmax.f32 %v4914_v33, 0.0 }
 0x534   : > { %v4916_v18 = vadd.f32 %v9145_v19, %v4879_v12 }
 0x535   : > { %v5023_v21 = vperm.slane %v4946_v42, %v8652_v28 }
 0x536   : > { %v4948_v25 = vmax.f32 %v4916_v18, 0.0 }
 0x538   : > { %v5026_v37 = vperm.slane %v4948_v25, %v8652_v28 }
 0x539   : > { %v4837_v60 = vpop.xlane.xlu1 %4836 }
 0x53a   : > { %v4902_v24 = vadd.f32 %v9145_v19, %v4837_v60  ;;  %v5022_v60 = vperm.slane %v4945_v56, %v8556_v14 }
 0x53c   : > { %v4934_v61 = vmax.f32 %v4902_v24, 0.0  ;;  %v5025_v24 = vperm.slane %v4947_v53, %v8556_v14  ;;  %v5024_v45 = vsel %vm3804_vm3, %v5023_v21, %v5022_v60 }
 0x53d   : > { %v5042_v55 = vsel %vm3859_vm8, %v5024_v45, %v5041_v52 }
 0x53e   : > { %v5005_v6 = vperm.slane %v4934_v61, %v8652_v28  ;;  %v5027_v20 = vsel %vm3804_vm3, %v5026_v37, %v5025_v24 }
 0x53f   : > { %v5043_v46 = vsel %vm3861_vm9, %v5027_v20, %v5042_v55 }
 0x540   : > { %v4834_v29 = vpop.xlane.xlu0 %4833 }
 0x541   : > { %v4901_v15 = vadd.f32 %v9145_v19, %v4834_v29 }
 0x543   : > { %v4933_v38 = vmax.f32 %v4901_v15, 0.0 }
 0x545   : > { %v5004_v4 = vperm.slane %v4933_v38, %v8556_v14  ;;  %v4882_v16 = vpop.xlane.xlu2 %4881 }
 0x546   : > { %v4917_v59 = vadd.f32 %v9145_v19, %v4882_v16 }
 0x547   : > { %v5006_v54 = vsel %vm3804_vm3, %v5005_v6, %v5004_v4 }
 0x548   : > { %v5037_v41 = vsel %vm3863_vm10, %v5006_v54, %v5036_v48  ;;  %v4949_v10 = vmax.f32 %v4917_v59, 0.0 }
 0x549   : > { %5047 = vst.msk [vmem:[%s6497_s15] sm:$0xff] %vm3874_vm11, %v5037_v41 }
 0x54a   : > { %v5028_v12 = vperm.slane %v4949_v10, %v8556_v14 }
 0x54c   : > { %v4885_v50 = vpop.xlane.xlu0 %4884 }
 0x54d   : > { %v4918_v13 = vadd.f32 %v9145_v19, %v4885_v50 }
 0x54f   : > { %v4950_v1 = vmax.f32 %v4918_v13, 0.0 }
 0x551   : > { %v5029_v19 = vperm.slane %v4950_v1, %v8652_v28 }
 0x553   : > { %v5030_v23 = vsel %vm3804_vm3, %v5029_v19, %v5028_v12 }
 0x554   : > { %v5044_v34 = vsel %vm3863_vm10, %v5030_v23, %v5043_v46 }
 0x555   : > { %5048 = vst.msk [vmem:[%s6497_s15 + $0x8] sm:$0xff] %vm3874_vm11, %v5044_v34 }
 0x556   : > { %6003 = shalt.err (!%p6000_p2)
}
 0x557   : > { %5814 = dma.vmem_to_hbm [thread:$0]  (%p6143_p5), %s5085_s8, 256, %s5087_s28, %s5055_s16, %s6063_s14, %s6063_s14, %s6064_s9  }
 0x558 PF: > { %p5835_p3 = scmp.ge.s32.totalorder %s6054_s27, 2  ;;  %s5101_s21 = sand.u32 1, %s6042_s24  }
 0x559   : > { %s5102_s15 = scalar_lea.sflag [#allocation4], %s5101_s21 }
 0x55a   : > { %p5825_p4 = pnand %p5835_p3, %p6147_p6 }
 0x55c   : > { %p5826_p7 = pneg %p5825_p4 }
 0x55e   : > { %6033 = dma.done.wait (%p5826_p7), %s5102_s15, 256  }
 0x55f   : > { %6035 = vsyncadd (%p5826_p7), %s5102_s15, 4294967040  ;;  %s5112_s29 = scalar_lea.sflag [#allocation10], %s5101_s21 }
 0x560   : > { %6037 = dma.done.wait (%p5826_p7), %s5112_s29, 256  }
 0x561   : > { %6039 = vsyncadd (%p5826_p7), %s5112_s29, 4294967040  ;;  %p23_p5 = scmp.ge.s32.totalorder %s6130_s30, 4   ;;  %s9416_s24 = smov %s6046_s25 }
 0x562   : > { %s9417_s25 = smov %s6050_s26  ;;  %s9418_s26 = smov %s6141_s10 }
 0x563   : > { %s9419_s27 = smov %s6130_s30  ;;  %25 = sbr.rel (!%p23_p5) target bundleno = 7 (0x7), region = 160 }
 0x568   :  { %5118 = vsyncpa [#allocation4], 1 }
 0x569   :  { %5120 = vsyncpa [#allocation4 + $0x1], 1 }
 0x56a   :  { %5121 = vsyncpa [#allocation10], 1 }
 0x56b   :  { %5123 = vsyncpa [#allocation10 + $0x1], 1 }
 0x56c   :  { %5124 = vsyncpa [#allocation5], 1 }
 0x56d   :  { %5126 = vsyncpa [#allocation5 + $0x1], 1 }
 0x56e   :  { %5127 = vsyncpa [#allocation7], 1 }

</bundles_post_ra>
